<compile_context>
chip_gen: v7x
topology: tpu7x:2x2x1
jax: 0.10.0
libtpu: 0.0.40
codegen_flags: <defaults>
</compile_context>

<pallas_src>
import jax
import jax.numpy as jnp
from jax import lax
from jax.experimental import pallas as pl
from jax.experimental.pallas import tpu as pltpu


def sppf_kernel(x_ref, w1_ref, w2_ref, bias_ref, o_ref, padw_ref, padh_ref):
    # x_ref   : (1, H, W, C1p)  one batch element, NHWC, lane-padded channels
    # w1_ref  : (C1p, C2p)      cv1 weight (transposed for right-matmul)
    # w2_ref  : (4*C2p, C2p)    cv2 weight, BN scale folded in, 4 row-blocks
    # bias_ref: (1, C2p)        folded BatchNorm bias
    # o_ref   : (1, H, W, C2p)
    # padw_ref: VMEM (H,   W+4, C2p)  -inf-bordered buffer for W-direction taps
    # padh_ref: VMEM (H+4, W,   C2p)  -inf-bordered buffer for H-direction taps
    _, H, W, C1 = x_ref.shape
    C2 = w1_ref.shape[1]
    K = 5
    P = K // 2

    # ---- -inf borders (cheap, once per grid step; interiors get overwritten
    #      by every pool stage).  Done per step so it is also correct when the
    #      batch axis is sharded across TensorCores. -----------------------
    neg_w = jnp.full((H, P, C2), -jnp.inf, dtype=jnp.float32)
    padw_ref[:, 0:P, :] = neg_w
    padw_ref[:, P + W:2 * P + W, :] = neg_w
    neg_h = jnp.full((P, W, C2), -jnp.inf, dtype=jnp.float32)
    padh_ref[0:P, :, :] = neg_h
    padh_ref[P + H:2 * P + H, :, :] = neg_h

    # ---- cv1: 1x1 conv == channel matmul (f32 accumulate) ----------------
    x2d = x_ref[0].reshape(H * W, C1)
    y = jnp.dot(x2d, w1_ref[...], preferred_element_type=jnp.float32)
    y = y.reshape(H, W, C2)                       # f32

    # ---- separable 5x5 / stride 1 / pad 2 max pool ------------------------
    def maxpool5(v):
        # W direction (sublane axis): 1 unaligned interior store + 4 unaligned
        # shifted reads.
        padw_ref[:, P:P + W, :] = v
        t = padw_ref[:, 0:W, :]
        for dj in range(1, K):
            t = jnp.maximum(t, padw_ref[:, dj:dj + W, :])
        # H direction (outer axis): aligned-ish cheap slices.
        padh_ref[P:P + H, :, :] = t
        m = padh_ref[0:H, :, :]
        for di in range(1, K):
            m = jnp.maximum(m, padh_ref[di:di + H, :, :])
        return m

    # ---- cv2 interleaved with the pool chain ------------------------------
    # concat([y0,y1,y2,y3], ch) @ W2  ==  sum_i  y_i @ W2_block_i
    cdt = w2_ref.dtype   # matmul operand dtype (f32 or bf16)

    z = jnp.dot(y.reshape(H * W, C2).astype(cdt), w2_ref[0 * C2:1 * C2, :],
                preferred_element_type=jnp.float32)
    y = maxpool5(y)
    z = z + jnp.dot(y.reshape(H * W, C2).astype(cdt), w2_ref[1 * C2:2 * C2, :],
                    preferred_element_type=jnp.float32)
    y = maxpool5(y)
    z = z + jnp.dot(y.reshape(H * W, C2).astype(cdt), w2_ref[2 * C2:3 * C2, :],
                    preferred_element_type=jnp.float32)
    y = maxpool5(y)
    z = z + jnp.dot(y.reshape(H * W, C2).astype(cdt), w2_ref[3 * C2:4 * C2, :],
                    preferred_element_type=jnp.float32)

    # ---- BN bias (scale already folded into w2) + SiLU --------------------
    z = z + bias_ref[...]
    sig = pl.reciprocal(1.0 + jnp.exp(-z), approx=True)   # EUP exp + EUP rcp
    z = z * sig

    o_ref[0] = z.reshape(H, W, C2).astype(o_ref.dtype)


def _round_up(n, m):
    return ((n + m - 1) // m) * m


def sppf_forward(x_nchw, w1, w2, gamma, beta, mean, var, eps=1e-5, k=5,
                 compute_dtype=jnp.float32):
    """x_nchw: (B, C1, H, W); w1: (C2, C1); w2: (C2, 4*C2). Returns (B, C2, H, W).

    compute_dtype controls the MXU operand dtype (f32 or bf16); accumulation,
    pooling, BN and SiLU are always f32.
    """
    assert k == 5, "kernel is written for k=5 (YOLO default)"
    B, C1, H, W = x_nchw.shape
    C2 = w1.shape[0]
    LANE = 128
    C1p = _round_up(C1, LANE)
    C2p = _round_up(C2, LANE)

    # NCHW -> NHWC, zero-pad channels to a lane multiple (padded channels stay
    # exactly zero through cv1 / pooling / cv2 and are sliced off at the end).
    x = jnp.transpose(x_nchw, (0, 2, 3, 1)).astype(jnp.float32)
    x = jnp.pad(x, ((0, 0), (0, 0), (0, 0), (0, C1p - C1))).astype(compute_dtype)

    # Folded eval-mode BatchNorm: scale goes into cv2 weight, bias stays.
    inv_std = 1.0 / jnp.sqrt(var.astype(jnp.float32) + eps)
    scale = gamma.astype(jnp.float32) * inv_std                      # (C2,)
    bias = beta.astype(jnp.float32) - mean.astype(jnp.float32) * scale

    w1_mat = jnp.transpose(w1).astype(jnp.float32)                   # (C1, C2)
    w1_mat = jnp.pad(w1_mat, ((0, C1p - C1), (0, C2p - C2))).astype(compute_dtype)

    w2_mat = jnp.transpose(w2).astype(jnp.float32) * scale[None, :]  # (4*C2, C2)
    w2_mat = w2_mat.reshape(4, C2, C2)
    w2_mat = jnp.pad(w2_mat, ((0, 0), (0, C2p - C2), (0, C2p - C2)))
    w2_mat = w2_mat.reshape(4 * C2p, C2p).astype(compute_dtype)

    bias_p = jnp.pad(bias, (0, C2p - C2)).reshape(1, C2p).astype(jnp.float32)

    out_nhwc = pl.pallas_call(
        sppf_kernel,
        out_shape=jax.ShapeDtypeStruct((B, H, W, C2p), jnp.float32),
        grid_spec=pltpu.PrefetchScalarGridSpec(
            num_scalar_prefetch=0,
            grid=(B,),
            in_specs=[
                pl.BlockSpec((1, H, W, C1p), lambda b: (b, 0, 0, 0)),
                pl.BlockSpec((C1p, C2p), lambda b: (0, 0)),
                pl.BlockSpec((4 * C2p, C2p), lambda b: (0, 0)),
                pl.BlockSpec((1, C2p), lambda b: (0, 0)),
            ],
            out_specs=pl.BlockSpec((1, H, W, C2p), lambda b: (b, 0, 0, 0)),
            scratch_shapes=[
                pltpu.VMEM((H, W + 4, C2p), jnp.float32),   # W-direction pad
                pltpu.VMEM((H + 4, W, C2p), jnp.float32),   # H-direction pad
            ],
        ),
        compiler_params=pltpu.CompilerParams(
            dimension_semantics=("parallel",),      # batch is independent
            vmem_limit_bytes=64 * 1024 * 1024,
        ),
    )(x, w1_mat, w2_mat, bias_p)

    out = out_nhwc[:, :, :, :C2]
    return jnp.transpose(out, (0, 3, 1, 2))   # back to NCHW


def sppf_reference(x_nchw, w1, w2, gamma, beta, mean, var, eps=1e-5, k=5):
    """Pure-JAX reference matching the PyTorch forward (eval-mode BN)."""
    p = k // 2
    y0 = jnp.einsum('nchw,dc->ndhw', x_nchw, w1)

    def mp(y):
        return lax.reduce_window(y, -jnp.inf, lax.max,
                                 (1, 1, k, k), (1, 1, 1, 1),
                                 [(0, 0), (0, 0), (p, p), (p, p)])

    y1 = mp(y0)
    y2 = mp(y1)
    y3 = mp(y2)
    cat = jnp.concatenate([y0, y1, y2, y3], axis=1)
    z = jnp.einsum('nehw,de->ndhw', cat, w2)
    scale = gamma / jnp.sqrt(var + eps)
    shift = beta - mean * scale
    z = z * scale[None, :, None, None] + shift[None, :, None, None]
    return z * jax.nn.sigmoid(z)


if __name__ == "__main__":
    key = jax.random.PRNGKey(0)
    k_x, k_w1, k_w2, k_g, k_b, k_m, k_v = jax.random.split(key, 7)

    B, C1, C2, H, W = 2, 4, 8, 16, 16
    x = jax.random.normal(k_x, (B, C1, H, W), dtype=jnp.float32)
    w1 = jax.random.normal(k_w1, (C2, C1), dtype=jnp.float32) * 0.2      # cv1
    w2 = jax.random.normal(k_w2, (C2, 4 * C2), dtype=jnp.float32) * 0.1  # cv2
    gamma = jax.random.normal(k_g, (C2,), dtype=jnp.float32) * 0.1 + 1.0
    beta = jax.random.normal(k_b, (C2,), dtype=jnp.float32) * 0.1
    mean = jax.random.normal(k_m, (C2,), dtype=jnp.float32) * 0.1
    var = jnp.abs(jax.random.normal(k_v, (C2,), dtype=jnp.float32)) + 0.5

    ref = sppf_reference(x, w1, w2, gamma, beta, mean, var)

    # f32 matmul path (only deviation from the reference is the EUP
    # approximate reciprocal inside SiLU).
    out_f32 = jax.block_until_ready(
        sppf_forward(x, w1, w2, gamma, beta, mean, var,
                     compute_dtype=jnp.float32))
    assert out_f32.shape == (B, C2, H, W)
    assert jnp.allclose(out_f32, ref, rtol=1e-2, atol=1e-2), "f32 mismatch"

    # bf16 matmul path (recommended for v6e/v7x, safe on v5e: bf16 operands
    # into the MXU, f32 accumulation / pooling / BN / SiLU).
    out_bf16 = jax.block_until_ready(
        sppf_forward(x, w1, w2, gamma, beta, mean, var,
                     compute_dtype=jnp.bfloat16))
    assert out_bf16.shape == (B, C2, H, W)
    assert jnp.allclose(out_bf16, ref, rtol=5e-2, atol=5e-2), "bf16 mismatch"

    print("KERNEL_OK")
</pallas_src>

<mosaic_0001>
module attributes {stable_mosaic.version = 11 : i64} {
  func.func @sppf_kernel(%arg0: i32, %arg1: memref<1x16x16x128xf32, #tpu.memory_space<vmem>>, %arg2: memref<128x128xf32, #tpu.memory_space<vmem>>, %arg3: memref<512x128xf32, #tpu.memory_space<vmem>>, %arg4: memref<1x128xf32, #tpu.memory_space<vmem>>, %arg5: memref<1x16x16x128xf32, #tpu.memory_space<vmem>>, %arg6: memref<16x20x128xf32, #tpu.memory_space<vmem>>, %arg7: memref<20x16x128xf32, #tpu.memory_space<vmem>>) attributes {dimension_semantics = [#tpu.dimension_semantics<parallel>], iteration_bounds = array<i64: 2>, scalar_prefetch = 0 : i64, scratch_operands = 2 : i64, tpu.core_type = #tpu.core_type<tc>, window_params = [{transform_indices = @transform_0, window_bounds = array<i64: 1, 16, 16, 128>}, {pipeline_mode = #tpu.pipeline_mode<synchronous>, transform_indices = @transform_1, window_bounds = array<i64: 128, 128>}, {pipeline_mode = #tpu.pipeline_mode<synchronous>, transform_indices = @transform_2, window_bounds = array<i64: 512, 128>}, {pipeline_mode = #tpu.pipeline_mode<synchronous>, transform_indices = @transform_3, window_bounds = array<i64: 1, 128>}, {transform_indices = @transform_4, window_bounds = array<i64: 1, 16, 16, 128>}]} {
    %cst = arith.constant 0xFF800000 : f32
    %0 = vector.broadcast %cst : f32 to vector<16x2x128xf32>
    %c0 = arith.constant 0 : index
    %c0_0 = arith.constant 0 : index
    %c0_1 = arith.constant 0 : index
    %1 = vector.load %arg6[%c0, %c0_0, %c0_1] : memref<16x20x128xf32, #tpu.memory_space<vmem>>, vector<16x2x128xf32>
    tpu.vector_store %arg6[%c0, %c0_0, %c0_1], %0 {strides = array<i32>} : memref<16x20x128xf32, #tpu.memory_space<vmem>>, vector<16x2x128xf32>,
    %c0_2 = arith.constant 0 : index
    %c18 = arith.constant 18 : index
    %c0_3 = arith.constant 0 : index
    %2 = vector.load %arg6[%c0_2, %c18, %c0_3] : memref<16x20x128xf32, #tpu.memory_space<vmem>>, vector<16x2x128xf32>
    tpu.vector_store %arg6[%c0_2, %c18, %c0_3], %0 {strides = array<i32>} : memref<16x20x128xf32, #tpu.memory_space<vmem>>, vector<16x2x128xf32>,
    %cst_4 = arith.constant 0xFF800000 : f32
    %3 = vector.broadcast %cst_4 : f32 to vector<2x16x128xf32>
    %c0_5 = arith.constant 0 : index
    %c0_6 = arith.constant 0 : index
    %c0_7 = arith.constant 0 : index
    %4 = vector.load %arg7[%c0_5, %c0_6, %c0_7] : memref<20x16x128xf32, #tpu.memory_space<vmem>>, vector<2x16x128xf32>
    tpu.vector_store %arg7[%c0_5, %c0_6, %c0_7], %3 {strides = array<i32>} : memref<20x16x128xf32, #tpu.memory_space<vmem>>, vector<2x16x128xf32>,
    %c18_8 = arith.constant 18 : index
    %c0_9 = arith.constant 0 : index
    %c0_10 = arith.constant 0 : index
    %5 = vector.load %arg7[%c18_8, %c0_9, %c0_10] : memref<20x16x128xf32, #tpu.memory_space<vmem>>, vector<2x16x128xf32>
    tpu.vector_store %arg7[%c18_8, %c0_9, %c0_10], %3 {strides = array<i32>} : memref<20x16x128xf32, #tpu.memory_space<vmem>>, vector<2x16x128xf32>,
    %c0_11 = arith.constant 0 : index
    %c0_12 = arith.constant 0 : index
    %c0_13 = arith.constant 0 : index
    %c0_14 = arith.constant 0 : index
    %6 = vector.load %arg1[%c0_11, %c0_12, %c0_13, %c0_14] : memref<1x16x16x128xf32, #tpu.memory_space<vmem>>, vector<1x16x16x128xf32>
    %7 = vector.shape_cast %6 : vector<1x16x16x128xf32> to vector<16x16x128xf32>
    %8 = vector.shape_cast %7 : vector<16x16x128xf32> to vector<256x128xf32>
    %c0_15 = arith.constant 0 : index
    %c0_16 = arith.constant 0 : index
    %9 = vector.load %arg2[%c0_15, %c0_16] : memref<128x128xf32, #tpu.memory_space<vmem>>, vector<128x128xf32>
    %cst_17 = arith.constant dense<0.000000e+00> : vector<256x128xf32>
    %10 = tpu.matmul %8, %9, %cst_17 {dimension_numbers = #tpu.dot_dimension_numbers<[1], [0], [0], [1], [0, 0, 1, 1], [], []>} : vector<256x128xf32>, vector<128x128xf32>, vector<256x128xf32> -> vector<256x128xf32>
    %11 = vector.shape_cast %10 : vector<256x128xf32> to vector<16x16x128xf32>
    %12 = vector.shape_cast %11 : vector<16x16x128xf32> to vector<256x128xf32>
    %c0_18 = arith.constant 0 : index
    %c0_19 = arith.constant 0 : index
    %13 = vector.load %arg3[%c0_18, %c0_19] : memref<512x128xf32, #tpu.memory_space<vmem>>, vector<128x128xf32>
    %cst_20 = arith.constant dense<0.000000e+00> : vector<256x128xf32>
    %14 = tpu.matmul %12, %13, %cst_20 {dimension_numbers = #tpu.dot_dimension_numbers<[1], [0], [0], [1], [0, 0, 1, 1], [], []>} : vector<256x128xf32>, vector<128x128xf32>, vector<256x128xf32> -> vector<256x128xf32>
    %c0_21 = arith.constant 0 : index
    %c2 = arith.constant 2 : index
    %c0_22 = arith.constant 0 : index
    %15 = vector.load %arg6[%c0_21, %c2, %c0_22] : memref<16x20x128xf32, #tpu.memory_space<vmem>>, vector<16x16x128xf32>
    tpu.vector_store %arg6[%c0_21, %c2, %c0_22], %11 {strides = array<i32>} : memref<16x20x128xf32, #tpu.memory_space<vmem>>, vector<16x16x128xf32>,
    %c0_23 = arith.constant 0 : index
    %c0_24 = arith.constant 0 : index
    %c0_25 = arith.constant 0 : index
    %16 = vector.load %arg6[%c0_23, %c0_24, %c0_25] : memref<16x20x128xf32, #tpu.memory_space<vmem>>, vector<16x16x128xf32>
    %c0_26 = arith.constant 0 : index
    %c1 = arith.constant 1 : index
    %c0_27 = arith.constant 0 : index
    %17 = vector.load %arg6[%c0_26, %c1, %c0_27] : memref<16x20x128xf32, #tpu.memory_space<vmem>>, vector<16x16x128xf32>
    %18 = arith.maximumf %16, %17 : vector<16x16x128xf32>
    %c0_28 = arith.constant 0 : index
    %c2_29 = arith.constant 2 : index
    %c0_30 = arith.constant 0 : index
    %19 = vector.load %arg6[%c0_28, %c2_29, %c0_30] : memref<16x20x128xf32, #tpu.memory_space<vmem>>, vector<16x16x128xf32>
    %20 = arith.maximumf %18, %19 : vector<16x16x128xf32>
    %c0_31 = arith.constant 0 : index
    %c3 = arith.constant 3 : index
    %c0_32 = arith.constant 0 : index
    %21 = vector.load %arg6[%c0_31, %c3, %c0_32] : memref<16x20x128xf32, #tpu.memory_space<vmem>>, vector<16x16x128xf32>
    %22 = arith.maximumf %20, %21 : vector<16x16x128xf32>
    %c0_33 = arith.constant 0 : index
    %c4 = arith.constant 4 : index
    %c0_34 = arith.constant 0 : index
    %23 = vector.load %arg6[%c0_33, %c4, %c0_34] : memref<16x20x128xf32, #tpu.memory_space<vmem>>, vector<16x16x128xf32>
    %24 = arith.maximumf %22, %23 : vector<16x16x128xf32>
    %c2_35 = arith.constant 2 : index
    %c0_36 = arith.constant 0 : index
    %c0_37 = arith.constant 0 : index
    %25 = vector.load %arg7[%c2_35, %c0_36, %c0_37] : memref<20x16x128xf32, #tpu.memory_space<vmem>>, vector<16x16x128xf32>
    tpu.vector_store %arg7[%c2_35, %c0_36, %c0_37], %24 {strides = array<i32>} : memref<20x16x128xf32, #tpu.memory_space<vmem>>, vector<16x16x128xf32>,
    %c0_38 = arith.constant 0 : index
    %c0_39 = arith.constant 0 : index
    %c0_40 = arith.constant 0 : index
    %26 = vector.load %arg7[%c0_38, %c0_39, %c0_40] : memref<20x16x128xf32, #tpu.memory_space<vmem>>, vector<16x16x128xf32>
    %c1_41 = arith.constant 1 : index
    %c0_42 = arith.constant 0 : index
    %c0_43 = arith.constant 0 : index
    %27 = vector.load %arg7[%c1_41, %c0_42, %c0_43] : memref<20x16x128xf32, #tpu.memory_space<vmem>>, vector<16x16x128xf32>
    %28 = arith.maximumf %26, %27 : vector<16x16x128xf32>
    %c2_44 = arith.constant 2 : index
    %c0_45 = arith.constant 0 : index
    %c0_46 = arith.constant 0 : index
    %29 = vector.load %arg7[%c2_44, %c0_45, %c0_46] : memref<20x16x128xf32, #tpu.memory_space<vmem>>, vector<16x16x128xf32>
    %30 = arith.maximumf %28, %29 : vector<16x16x128xf32>
    %c3_47 = arith.constant 3 : index
    %c0_48 = arith.constant 0 : index
    %c0_49 = arith.constant 0 : index
    %31 = vector.load %arg7[%c3_47, %c0_48, %c0_49] : memref<20x16x128xf32, #tpu.memory_space<vmem>>, vector<16x16x128xf32>
    %32 = arith.maximumf %30, %31 : vector<16x16x128xf32>
    %c4_50 = arith.constant 4 : index
    %c0_51 = arith.constant 0 : index
    %c0_52 = arith.constant 0 : index
    %33 = vector.load %arg7[%c4_50, %c0_51, %c0_52] : memref<20x16x128xf32, #tpu.memory_space<vmem>>, vector<16x16x128xf32>
    %34 = arith.maximumf %32, %33 : vector<16x16x128xf32>
    %35 = vector.shape_cast %34 : vector<16x16x128xf32> to vector<256x128xf32>
    %c128 = arith.constant 128 : index
    %c0_53 = arith.constant 0 : index
    %36 = vector.load %arg3[%c128, %c0_53] : memref<512x128xf32, #tpu.memory_space<vmem>>, vector<128x128xf32>
    %cst_54 = arith.constant dense<0.000000e+00> : vector<256x128xf32>
    %37 = tpu.matmul %35, %36, %cst_54 {dimension_numbers = #tpu.dot_dimension_numbers<[1], [0], [0], [1], [0, 0, 1, 1], [], []>} : vector<256x128xf32>, vector<128x128xf32>, vector<256x128xf32> -> vector<256x128xf32>
    %38 = arith.addf %14, %37 : vector<256x128xf32>
    %c0_55 = arith.constant 0 : index
    %c2_56 = arith.constant 2 : index
    %c0_57 = arith.constant 0 : index
    %39 = vector.load %arg6[%c0_55, %c2_56, %c0_57] : memref<16x20x128xf32, #tpu.memory_space<vmem>>, vector<16x16x128xf32>
    tpu.vector_store %arg6[%c0_55, %c2_56, %c0_57], %34 {strides = array<i32>} : memref<16x20x128xf32, #tpu.memory_space<vmem>>, vector<16x16x128xf32>,
    %c0_58 = arith.constant 0 : index
    %c0_59 = arith.constant 0 : index
    %c0_60 = arith.constant 0 : index
    %40 = vector.load %arg6[%c0_58, %c0_59, %c0_60] : memref<16x20x128xf32, #tpu.memory_space<vmem>>, vector<16x16x128xf32>
    %c0_61 = arith.constant 0 : index
    %c1_62 = arith.constant 1 : index
    %c0_63 = arith.constant 0 : index
    %41 = vector.load %arg6[%c0_61, %c1_62, %c0_63] : memref<16x20x128xf32, #tpu.memory_space<vmem>>, vector<16x16x128xf32>
    %42 = arith.maximumf %40, %41 : vector<16x16x128xf32>
    %c0_64 = arith.constant 0 : index
    %c2_65 = arith.constant 2 : index
    %c0_66 = arith.constant 0 : index
    %43 = vector.load %arg6[%c0_64, %c2_65, %c0_66] : memref<16x20x128xf32, #tpu.memory_space<vmem>>, vector<16x16x128xf32>
    %44 = arith.maximumf %42, %43 : vector<16x16x128xf32>
    %c0_67 = arith.constant 0 : index
    %c3_68 = arith.constant 3 : index
    %c0_69 = arith.constant 0 : index
    %45 = vector.load %arg6[%c0_67, %c3_68, %c0_69] : memref<16x20x128xf32, #tpu.memory_space<vmem>>, vector<16x16x128xf32>
    %46 = arith.maximumf %44, %45 : vector<16x16x128xf32>
    %c0_70 = arith.constant 0 : index
    %c4_71 = arith.constant 4 : index
    %c0_72 = arith.constant 0 : index
    %47 = vector.load %arg6[%c0_70, %c4_71, %c0_72] : memref<16x20x128xf32, #tpu.memory_space<vmem>>, vector<16x16x128xf32>
    %48 = arith.maximumf %46, %47 : vector<16x16x128xf32>
    %c2_73 = arith.constant 2 : index
    %c0_74 = arith.constant 0 : index
    %c0_75 = arith.constant 0 : index
    %49 = vector.load %arg7[%c2_73, %c0_74, %c0_75] : memref<20x16x128xf32, #tpu.memory_space<vmem>>, vector<16x16x128xf32>
    tpu.vector_store %arg7[%c2_73, %c0_74, %c0_75], %48 {strides = array<i32>} : memref<20x16x128xf32, #tpu.memory_space<vmem>>, vector<16x16x128xf32>,
    %c0_76 = arith.constant 0 : index
    %c0_77 = arith.constant 0 : index
    %c0_78 = arith.constant 0 : index
    %50 = vector.load %arg7[%c0_76, %c0_77, %c0_78] : memref<20x16x128xf32, #tpu.memory_space<vmem>>, vector<16x16x128xf32>
    %c1_79 = arith.constant 1 : index
    %c0_80 = arith.constant 0 : index
    %c0_81 = arith.constant 0 : index
    %51 = vector.load %arg7[%c1_79, %c0_80, %c0_81] : memref<20x16x128xf32, #tpu.memory_space<vmem>>, vector<16x16x128xf32>
    %52 = arith.maximumf %50, %51 : vector<16x16x128xf32>
    %c2_82 = arith.constant 2 : index
    %c0_83 = arith.constant 0 : index
    %c0_84 = arith.constant 0 : index
    %53 = vector.load %arg7[%c2_82, %c0_83, %c0_84] : memref<20x16x128xf32, #tpu.memory_space<vmem>>, vector<16x16x128xf32>
    %54 = arith.maximumf %52, %53 : vector<16x16x128xf32>
    %c3_85 = arith.constant 3 : index
    %c0_86 = arith.constant 0 : index
    %c0_87 = arith.constant 0 : index
    %55 = vector.load %arg7[%c3_85, %c0_86, %c0_87] : memref<20x16x128xf32, #tpu.memory_space<vmem>>, vector<16x16x128xf32>
    %56 = arith.maximumf %54, %55 : vector<16x16x128xf32>
    %c4_88 = arith.constant 4 : index
    %c0_89 = arith.constant 0 : index
    %c0_90 = arith.constant 0 : index
    %57 = vector.load %arg7[%c4_88, %c0_89, %c0_90] : memref<20x16x128xf32, #tpu.memory_space<vmem>>, vector<16x16x128xf32>
    %58 = arith.maximumf %56, %57 : vector<16x16x128xf32>
    %59 = vector.shape_cast %58 : vector<16x16x128xf32> to vector<256x128xf32>
    %c256 = arith.constant 256 : index
    %c0_91 = arith.constant 0 : index
    %60 = vector.load %arg3[%c256, %c0_91] : memref<512x128xf32, #tpu.memory_space<vmem>>, vector<128x128xf32>
    %cst_92 = arith.constant dense<0.000000e+00> : vector<256x128xf32>
    %61 = tpu.matmul %59, %60, %cst_92 {dimension_numbers = #tpu.dot_dimension_numbers<[1], [0], [0], [1], [0, 0, 1, 1], [], []>} : vector<256x128xf32>, vector<128x128xf32>, vector<256x128xf32> -> vector<256x128xf32>
    %62 = arith.addf %38, %61 : vector<256x128xf32>
    %c0_93 = arith.constant 0 : index
    %c2_94 = arith.constant 2 : index
    %c0_95 = arith.constant 0 : index
    %63 = vector.load %arg6[%c0_93, %c2_94, %c0_95] : memref<16x20x128xf32, #tpu.memory_space<vmem>>, vector<16x16x128xf32>
    tpu.vector_store %arg6[%c0_93, %c2_94, %c0_95], %58 {strides = array<i32>} : memref<16x20x128xf32, #tpu.memory_space<vmem>>, vector<16x16x128xf32>,
    %c0_96 = arith.constant 0 : index
    %c0_97 = arith.constant 0 : index
    %c0_98 = arith.constant 0 : index
    %64 = vector.load %arg6[%c0_96, %c0_97, %c0_98] : memref<16x20x128xf32, #tpu.memory_space<vmem>>, vector<16x16x128xf32>
    %c0_99 = arith.constant 0 : index
    %c1_100 = arith.constant 1 : index
    %c0_101 = arith.constant 0 : index
    %65 = vector.load %arg6[%c0_99, %c1_100, %c0_101] : memref<16x20x128xf32, #tpu.memory_space<vmem>>, vector<16x16x128xf32>
    %66 = arith.maximumf %64, %65 : vector<16x16x128xf32>
    %c0_102 = arith.constant 0 : index
    %c2_103 = arith.constant 2 : index
    %c0_104 = arith.constant 0 : index
    %67 = vector.load %arg6[%c0_102, %c2_103, %c0_104] : memref<16x20x128xf32, #tpu.memory_space<vmem>>, vector<16x16x128xf32>
    %68 = arith.maximumf %66, %67 : vector<16x16x128xf32>
    %c0_105 = arith.constant 0 : index
    %c3_106 = arith.constant 3 : index
    %c0_107 = arith.constant 0 : index
    %69 = vector.load %arg6[%c0_105, %c3_106, %c0_107] : memref<16x20x128xf32, #tpu.memory_space<vmem>>, vector<16x16x128xf32>
    %70 = arith.maximumf %68, %69 : vector<16x16x128xf32>
    %c0_108 = arith.constant 0 : index
    %c4_109 = arith.constant 4 : index
    %c0_110 = arith.constant 0 : index
    %71 = vector.load %arg6[%c0_108, %c4_109, %c0_110] : memref<16x20x128xf32, #tpu.memory_space<vmem>>, vector<16x16x128xf32>
    %72 = arith.maximumf %70, %71 : vector<16x16x128xf32>
    %c2_111 = arith.constant 2 : index
    %c0_112 = arith.constant 0 : index
    %c0_113 = arith.constant 0 : index
    %73 = vector.load %arg7[%c2_111, %c0_112, %c0_113] : memref<20x16x128xf32, #tpu.memory_space<vmem>>, vector<16x16x128xf32>
    tpu.vector_store %arg7[%c2_111, %c0_112, %c0_113], %72 {strides = array<i32>} : memref<20x16x128xf32, #tpu.memory_space<vmem>>, vector<16x16x128xf32>,
    %c0_114 = arith.constant 0 : index
    %c0_115 = arith.constant 0 : index
    %c0_116 = arith.constant 0 : index
    %74 = vector.load %arg7[%c0_114, %c0_115, %c0_116] : memref<20x16x128xf32, #tpu.memory_space<vmem>>, vector<16x16x128xf32>
    %c1_117 = arith.constant 1 : index
    %c0_118 = arith.constant 0 : index
    %c0_119 = arith.constant 0 : index
    %75 = vector.load %arg7[%c1_117, %c0_118, %c0_119] : memref<20x16x128xf32, #tpu.memory_space<vmem>>, vector<16x16x128xf32>
    %76 = arith.maximumf %74, %75 : vector<16x16x128xf32>
    %c2_120 = arith.constant 2 : index
    %c0_121 = arith.constant 0 : index
    %c0_122 = arith.constant 0 : index
    %77 = vector.load %arg7[%c2_120, %c0_121, %c0_122] : memref<20x16x128xf32, #tpu.memory_space<vmem>>, vector<16x16x128xf32>
    %78 = arith.maximumf %76, %77 : vector<16x16x128xf32>
    %c3_123 = arith.constant 3 : index
    %c0_124 = arith.constant 0 : index
    %c0_125 = arith.constant 0 : index
    %79 = vector.load %arg7[%c3_123, %c0_124, %c0_125] : memref<20x16x128xf32, #tpu.memory_space<vmem>>, vector<16x16x128xf32>
    %80 = arith.maximumf %78, %79 : vector<16x16x128xf32>
    %c4_126 = arith.constant 4 : index
    %c0_127 = arith.constant 0 : index
    %c0_128 = arith.constant 0 : index
    %81 = vector.load %arg7[%c4_126, %c0_127, %c0_128] : memref<20x16x128xf32, #tpu.memory_space<vmem>>, vector<16x16x128xf32>
    %82 = arith.maximumf %80, %81 : vector<16x16x128xf32>
    %83 = vector.shape_cast %82 : vector<16x16x128xf32> to vector<256x128xf32>
    %c384 = arith.constant 384 : index
    %c0_129 = arith.constant 0 : index
    %84 = vector.load %arg3[%c384, %c0_129] : memref<512x128xf32, #tpu.memory_space<vmem>>, vector<128x128xf32>
    %cst_130 = arith.constant dense<0.000000e+00> : vector<256x128xf32>
    %85 = tpu.matmul %83, %84, %cst_130 {dimension_numbers = #tpu.dot_dimension_numbers<[1], [0], [0], [1], [0, 0, 1, 1], [], []>} : vector<256x128xf32>, vector<128x128xf32>, vector<256x128xf32> -> vector<256x128xf32>
    %86 = arith.addf %62, %85 : vector<256x128xf32>
    %c0_131 = arith.constant 0 : index
    %c0_132 = arith.constant 0 : index
    %87 = vector.load %arg4[%c0_131, %c0_132] : memref<1x128xf32, #tpu.memory_space<vmem>>, vector<1x128xf32>
    %88 = vector.broadcast %87 : vector<1x128xf32> to vector<256x128xf32>
    %89 = arith.addf %86, %88 : vector<256x128xf32>
    %cst_133 = arith.constant 0.000000e+00 : f32
    %90 = vector.broadcast %cst_133 : f32 to vector<256x128xf32>
    %91 = arith.subf %90, %89 : vector<256x128xf32>
    %92 = math.exp %91 : vector<256x128xf32>
    %cst_134 = arith.constant 1.000000e+00 : f32
    %93 = vector.broadcast %cst_134 : f32 to vector<256x128xf32>
    %94 = arith.addf %93, %92 : vector<256x128xf32>
    %95 = tpu.reciprocal %94 {approx = true} : vector<256x128xf32> -> vector<256x128xf32>
    %96 = arith.mulf %89, %95 : vector<256x128xf32>
    %97 = vector.shape_cast %96 : vector<256x128xf32> to vector<16x16x128xf32>
    %c0_135 = arith.constant 0 : index
    %c0_136 = arith.constant 0 : index
    %c0_137 = arith.constant 0 : index
    %c0_138 = arith.constant 0 : index
    %98 = vector.load %arg5[%c0_135, %c0_136, %c0_137, %c0_138] : memref<1x16x16x128xf32, #tpu.memory_space<vmem>>, vector<1x16x16x128xf32>
    %99 = vector.shape_cast %98 : vector<1x16x16x128xf32> to vector<16x16x128xf32>
    %100 = vector.shape_cast %97 : vector<16x16x128xf32> to vector<1x16x16x128xf32>
    tpu.vector_store %arg5[%c0_135, %c0_136, %c0_137, %c0_138], %100 {strides = array<i32>} : memref<1x16x16x128xf32, #tpu.memory_space<vmem>>, vector<1x16x16x128xf32>,
    return
  }
  func.func @transform_0(%arg0: i32) -> (i32, i32, i32, i32) {
    %c0_i32 = arith.constant 0 : i32
    %c0_i32_0 = arith.constant 0 : i32
    %c0_i32_1 = arith.constant 0 : i32
    %c0_i32_2 = arith.constant 0 : i32
    return %arg0, %c0_i32, %c0_i32_0, %c0_i32_1 : i32, i32, i32, i32
  }
  func.func @transform_1(%arg0: i32) -> (i32, i32) {
    %c0_i32 = arith.constant 0 : i32
    %c0_i32_0 = arith.constant 0 : i32
    %c0_i32_1 = arith.constant 0 : i32
    return %c0_i32, %c0_i32_0 : i32, i32
  }
  func.func @transform_2(%arg0: i32) -> (i32, i32) {
    %c0_i32 = arith.constant 0 : i32
    %c0_i32_0 = arith.constant 0 : i32
    %c0_i32_1 = arith.constant 0 : i32
    return %c0_i32, %c0_i32_0 : i32, i32
  }
  func.func @transform_3(%arg0: i32) -> (i32, i32) {
    %c0_i32 = arith.constant 0 : i32
    %c0_i32_0 = arith.constant 0 : i32
    %c0_i32_1 = arith.constant 0 : i32
    return %c0_i32, %c0_i32_0 : i32, i32
  }
  func.func @transform_4(%arg0: i32) -> (i32, i32, i32, i32) {
    %c0_i32 = arith.constant 0 : i32
    %c0_i32_0 = arith.constant 0 : i32
    %c0_i32_1 = arith.constant 0 : i32
    %c0_i32_2 = arith.constant 0 : i32
    return %arg0, %c0_i32, %c0_i32_0, %c0_i32_1 : i32, i32, i32, i32
  }
}

</mosaic_0001>

<bundles_post_ra>
// kernel: tpu_custom_call.1
= control target key start
LH: loop header
LB: loop body
LE: loop exit
PB: predicated region body
PF: predicated region fallthrough
CT: control target
= control target key end

     0   :  { %9 = vsyncpa [#allocation5], 0  ;;  %s6933_s0 = inlined_call_operand.hbm [shape: f32[2,16,16,128], index: 0, kind: input, shape index: {}]   ;;  %s6934_s1 = inlined_call_operand.hbm [shape: f32[128,128], index: 1, kind: input, shape index: {}]   ;;  %s6935_s2 = inlined_call_operand.hbm [shape: f32[512,128], index: 2, kind: input, shape index: {}]   ;;  %s6936_s3 = inlined_call_operand.hbm [shape: f32[1,128], index: 3, kind: input, shape index: {}]   ;;  %s6937_s4 = inlined_call_operand.hbm [shape: f32[2,16,16,128], index: 4, kind: output, shape index: {}]  }
   0x1   :  { %11 = vsyncpa [#allocation5 + $0x1], 0 }
   0x2   :  { %12 = vsyncpa [#allocation8], 0 }
   0x3   :  { %13 = vsyncpa [#allocation11], 0 }
   0x4   :  { %14 = vsyncpa [#allocation6], 0 }
   0x5   :  { %16 = vsyncpa [#allocation6 + $0x1], 0  ;;  %s5273_s15 = smov 0   ;;  %s5275_s16 = smov 0  }
   0x6   :  { %s5277_s17 = smov 0   ;;  %s5279_s18 = smov 0  }
   0x7 LB: > { %s5294_s19 = sadd.s32 4294967295, %s5236_s18   ;;  %s3903_s20 = sadd.s32 4294967294, %s5236_s18   ;;  %s5236_s18 = sphi %s5279_s18, %s7032_s18   ;;  %s5232_s17 = sphi %s5277_s17, %s7031_s17   ;;  %s5228_s16 = sphi %s5275_s16, %s7030_s16   ;;  %s5224_s15 = sphi %s5273_s15, %s7029_s15  }
   0x8   : > { %p42_p0 = scmp.ne.s32.totalorder %s5228_s16, %s5224_s15  ;;  %p6938_p1 = scmp.eq.s32.totalorder %s5294_s19, 0 }
   0x9   : > { %p135_p3 = scmp.eq.s32.totalorder %s3903_s20, 1  ;;  %p3904_p5 = scmp.ge.s32.totalorder %s5236_s18, 1 }
   0xa   : > { %p5303_p4 = por %p6938_p1, %p42_p0  ;;  %p142_p7 = scmp.lt.s32.totalorder %s5236_s18, 3 }
   0xb   : > { %p5308_p6 = por %p135_p3, %p42_p0  ;;  %s5238_s24 = smov [#allocation7]  }
   0xc   : > { %s6965_s21 = scalar_select %p5303_p4, 1, 0 }
   0xd   : > { %s6966_s22 = scalar_select %p5308_p6, 1, 0 }
   0xe   : > { %p5313_p8 = pnand %p3904_p5, %p142_p7  ;;  %s154_s25 = sshll.u32 %s5238_s24, 4  ;;  %s5317_s25 = int_to_ptr.vmem [resolvable:$true] %s154_s25 }
   0xf   : > { %s5239_s27 = smov [#allocation9]   ;;  %s5240_s29 = smov [#allocation10]  }
  0x10   : > { %s6967_s23 = scalar_select %p5313_p8, 1, 0 }
  0x11   : > { %p4854_p9 = pneg %p5313_p8  ;;  %s167_s28 = sshll.u32 %s5239_s27, 4  ;;  %s5328_s28 = int_to_ptr.vmem [resolvable:$true] %s167_s28 }
  0x12   : > { %s5330_s30 = sshll.u32 %s5240_s29, 4  ;;  %s5048_s7 = scalar_lea.hbm %s6934_s1, 2048  ;;  %s182_s30 = int_to_ptr.vmem [resolvable:$true] %s5330_s30 }
  0x13   : > { %p5324_p11 = pnand %p4854_p9, %p6938_p1  ;;  %p5049_p12 = scmp.ne.s32.totalorder %s6934_s1, %s5048_s7 }
  0x14   : > { %p5055_p5 = scmp.lt.u32.totalorder %s5048_s7, %s6934_s1 }
  0x15   : > { %p5340_p13 = pneg %p5324_p11 }
  0x17   : > { %p5051_p0 = pnand %p5340_p13, %p5049_p12 }
  0x19   : > { %p5052_p3 = pneg %p5051_p0 }
  0x1b   : > { %p5057_p7 = pnand %p5055_p5, %p5052_p3 }
  0x1d   : > { %5060 = shalt.err (!%p5057_p7)
}
  0x1e   : > { %s5061_s13 = scalar_lea.vmem %s5317_s25, 2048  ;;  %p5069_p2 = scmp.lt.s32.totalorder %s5317_s25, %s5317_s25 }
  0x1f   : > { %p5062_p9 = scmp.ne.s32.totalorder %s5317_s25, %s5061_s13  ;;  %p5070_p6 = scmp.lt.s32.totalorder %s5061_s13, %s5061_s13 }
  0x21   : > { %p5064_p10 = pnand %p5062_p9, %p5340_p13  ;;  %p5071_p12 = por %p5070_p6, %p5069_p2 }
  0x23   : > { %p5065_p1 = pneg %p5064_p10 }
  0x25   : > { %p5072_p0 = pnand %p5071_p12, %p5065_p1 }
  0x27   : > { %5075 = shalt.err (!%p5072_p0)
}
  0x28   : > { %s5241_s14 = smov 128   ;;  %s5242_s20 = smov 8  }
  0x29   : > { %4857 = dma.hbm_to_vmem [thread:$0]  (!%p5324_p11), %s6934_s1, 2048, %s5317_s25, [#allocation8], %s5241_s14, %s5241_s14, %s5242_s20  }
  0x2a   : > { %s5076_s6 = scalar_lea.hbm %s6935_s2, 8192 }
  0x2b   : > { %p5077_p1 = scmp.ne.s32.totalorder %s6935_s2, %s5076_s6  ;;  %p5083_p10 = scmp.lt.u32.totalorder %s5076_s6, %s6935_s2 }
  0x2d   : > { %p5079_p2 = pnand %p5077_p1, %p5340_p13 }
  0x2f   : > { %p5080_p6 = pneg %p5079_p2 }
  0x31   : > { %p5085_p3 = pnand %p5083_p10, %p5080_p6 }
  0x33   : > { %5088 = shalt.err (!%p5085_p3)
}
  0x34   : > { %s5089_s25 = scalar_lea.vmem %s5328_s28, 8192  ;;  %p5097_p12 = scmp.lt.s32.totalorder %s5328_s28, %s5328_s28 }
  0x35   : > { %p5090_p5 = scmp.ne.s32.totalorder %s5328_s28, %s5089_s25  ;;  %p5098_p0 = scmp.lt.s32.totalorder %s5089_s25, %s5089_s25 }
  0x37   : > { %p5092_p7 = pnand %p5090_p5, %p5340_p13  ;;  %p5099_p1 = por %p5098_p0, %p5097_p12 }
  0x39   : > { %p5093_p9 = pneg %p5092_p7 }
  0x3b   : > { %p5100_p2 = pnand %p5099_p1, %p5093_p9 }
  0x3d   : > { %5103 = shalt.err (!%p5100_p2)
}
  0x3e   : > { %4860 = dma.hbm_to_vmem [thread:$0]  (!%p5324_p11), %s6935_s2, 8192, %s5328_s28, [#allocation8], %s5241_s14, %s5241_s14, %s5242_s20  }
  0x3f   : > { %s5104_s29 = scalar_lea.hbm %s6936_s3, 16 }
  0x40   : > { %p5105_p6 = scmp.ne.s32.totalorder %s6936_s3, %s5104_s29  ;;  %p5111_p5 = scmp.lt.u32.totalorder %s5104_s29, %s6936_s3 }
  0x42   : > { %p5107_p10 = pnand %p5105_p6, %p5340_p13 }
  0x44   : > { %p5108_p3 = pneg %p5107_p10 }
  0x46   : > { %p5113_p7 = pnand %p5111_p5, %p5108_p3 }
  0x48   : > { %5116 = shalt.err (!%p5113_p7)
}
  0x49   : > { %s5117_s9 = scalar_lea.vmem %s182_s30, 16  ;;  %s5124_s28 = scalar_lea.vmem %s182_s30, 32 }
  0x4a   : > { %p5118_p9 = scmp.ne.s32.totalorder %s182_s30, %s5117_s9  ;;  %p5125_p1 = scmp.lt.s32.totalorder %s182_s30, %s182_s30 }
  0x4b   : > { %p5126_p2 = scmp.lt.s32.totalorder %s5124_s28, %s5117_s9 }
  0x4c   : > { %p5120_p12 = pnand %p5118_p9, %p5340_p13 }
  0x4d   : > { %p5127_p4 = por %p5126_p2, %p5125_p1 }
  0x4e   : > { %p5121_p0 = pneg %p5120_p12 }
  0x50   : > { %p5128_p8 = pnand %p5127_p4, %p5121_p0 }
  0x52   : > { %5131 = shalt.err (!%p5128_p8)
}
  0x53   : > { %4863 = dma.hbm_to_vmem [thread:$0]  (!%p5324_p11), %s6936_s3, 16, %s182_s30, [#allocation11]  }
  0x54   : > { %s5410_s10 = sadd.s32 1, %s5236_s18   ;;  %s29_s26 = sadd.s32 1, %s5232_s17 }
  0x55   : > { %s26_s12 = ssub.s32 %s5236_s18, %s5410_s10  ;;  %p36_p8 = scmp.ne.s32.totalorder %s5232_s17, %s5228_s16 }
  0x56   : > { %p27_p4 = scmp.eq.s32.totalorder %s26_s12, 0  ;;  %p37_p13 = scmp.eq.s32.totalorder %s5236_s18, 0 }
  0x57   : > { %p4875_p6 = scmp.lt.s32.totalorder %s5236_s18, 2  ;;  %p6970_p3 = scmp.eq.s32.totalorder %s5294_s19, 1 }
  0x58   : > { %s5420_s13 = scalar_select %p27_p4, %s5232_s17, %s29_s26  }
  0x59   : > { %p38_p10 = por %p37_p13, %p36_p8  ;;  %p5424_p5 = por %p6970_p3, %p36_p8 }
  0x5a   : > { %s192_s27 = sand.u32 1, %s5232_s17   ;;  %s3924_s29 = sshll.u32 %s5236_s18, 12 }
  0x5b   : > { %s3909_s30 = sshll.u32 %s192_s27, 8  ;;  %s5433_s7 = scalar_lea.hbm %s6933_s0, %s3924_s29 }
  0x5c   : > { %s196_s8 = scalar_lea.vmem [#allocation4], %s3909_s30  ;;  %p5435_p11 = pnand %p4875_p6, %p38_p10 }
  0x5d   : > { %s203_s9 = sshll.u32 %s196_s8, 4  ;;  %s5441_s11 = scalar_lea.sflag [#allocation5], %s192_s27  ;;  %s5439_s9 = int_to_ptr.vmem [resolvable:$true] %s203_s9 }
  0x5e   : > { %s5132_s25 = scalar_lea.hbm %s5433_s7, 4096  ;;  %p5134_p9 = pneg %p5435_p11 }
  0x5f   : > { %p5133_p7 = scmp.ne.s32.totalorder %s5433_s7, %s5132_s25  ;;  %s5137_s29 = scalar_lea.hbm %s6933_s0, 8192 }
  0x60   : > { %p5138_p1 = scmp.lt.u32.totalorder %s5433_s7, %s6933_s0  ;;  %p5139_p2 = scmp.lt.u32.totalorder %s5137_s29, %s5132_s25 }
  0x61   : > { %p5135_p12 = pnand %p5134_p9, %p5133_p7  ;;  %p5141_p8 = scmp.lt.u32.totalorder %s5132_s25, %s5433_s7 }
  0x62   : > { %p5140_p4 = por %p5139_p2, %p5138_p1 }
  0x63   : > { %p5136_p0 = pneg %p5135_p12 }
  0x64   : > { %p5142_p13 = por %p5141_p8, %p5140_p4 }
  0x66   : > { %p5143_p6 = pnand %p5142_p13, %p5136_p0 }
  0x68   : > { %5146 = shalt.err (!%p5143_p6)
}
  0x69   : > { %s5147_s27 = scalar_lea.vmem %s5439_s9, 4096  ;;  %s5243_s6 = smov [#allocation4]  }
  0x6a   : > { %p5148_p10 = scmp.ne.s32.totalorder %s5439_s9, %s5147_s27  ;;  %s5152_s8 = sshll.u32 %s5243_s6, 4  ;;  %s5153_s8 = int_to_ptr.vmem [resolvable:$false] %s5152_s8 }
  0x6b   : > { %s5154_s12 = scalar_lea.vmem %s5153_s8, 8192  ;;  %p5155_p12 = scmp.lt.s32.totalorder %s5439_s9, %s5153_s8 }
  0x6c   : > { %p5150_p3 = pnand %p5148_p10, %p5134_p9  ;;  %p5156_p1 = scmp.lt.s32.totalorder %s5154_s12, %s5147_s27 }
  0x6e   : > { %p5151_p7 = pneg %p5150_p3  ;;  %p5157_p2 = por %p5156_p1, %p5155_p12 }
  0x70   : > { %p5158_p4 = pnand %p5157_p2, %p5151_p7 }
  0x72   : > { %5161 = shalt.err (!%p5158_p4)
}
  0x73   : > { %4867 = dma.hbm_to_vmem [thread:$0]  (!%p5435_p11), %s5433_s7, 4096, %s5439_s9, %s5441_s11, %s5241_s14, %s5241_s14, %s5242_s20  }
  0x74   : > { %p6973_p9 = scmp.ne.s32.totalorder %s6967_s23, 0 }
  0x76   : > { %215 = sbr.rel (%p6973_p9) target bundleno = 880 (0x370), region = 36 }
  0x7d   : > { %s5475_s25 = sand.u32 1, %s5228_s16   ;;  %p6974_p0 = scmp.ne.s32.totalorder %s6965_s21, 0 }
  0x7e   : > { %s3913_s26 = sshll.u32 %s5475_s25, 8  ;;  %s218_s29 = scalar_lea.sflag [#allocation5], %s5475_s25 }
  0x7f   : > { %s5481_s28 = scalar_lea.vmem [#allocation4], %s3913_s26 }
  0x80   : > { %5207 = dma.done.wait (%p6974_p0), %s218_s29, 4096  }
  0x81   : > { %5209 = vsyncadd (%p6974_p0), %s218_s29, 4294963200  ;;  %p6975_p11 = scmp.eq.s32.totalorder %s5294_s19, 0 }
  0x83   : > { %5211 = dma.done.wait (%p6975_p11), [#allocation8], 10240   ;;  %p6976_p8 = pmov %p6975_p11 }
  0x85   : > { %5213 = vsyncadd (%p6976_p8), [#allocation8], 4294957056  ;;  %p6977_p13 = pmov %p6976_p8 }
  0x86   : > { %p6978_p6 = pmov %p6976_p8 }
  0x87   : > { %5215 = dma.done.wait (%p6977_p13), [#allocation11], 16  }
  0x88   : > { %5217 = vsyncadd (%p6978_p6), [#allocation11], 4294967280  ;;  %v331_v0 = vld [vmem:[#allocation7] sm:$0xff]  ;;  %v332_v1 = vld [vmem:[#allocation7 + $0x8] sm:$0xff]  ;;  %s6740_s21 = scalar_lea.vmem [#allocation12], %s3913_s26  ;;  %s3925_s23 = sshll.u32 %s5294_s19, 12 }
  0x89   : > { %v333_v2 = vld [vmem:[#allocation7 + $0x10] sm:$0xff]  ;;  %v4566_v3 = vpack.c.bf16 %v332_v1, %v331_v0  ;;  %v334_v4 = vld [vmem:[#allocation7 + $0x18] sm:$0xff]  ;;  %v335_v6 = vld [vmem:[#allocation7 + $0x20] sm:$0xff]  ;;  %v5244_v1 = vmov -inf   ;;  %s3801_s14 = sshll.u32 %s6740_s21, 4  ;;  %s6885_s9 = scalar_lea.hbm %s6937_s4, %s3925_s23  ;;  %s6887_s14 = int_to_ptr.vmem [resolvable:$true] %s3801_s14 }
  0x8a   : > { %v4570_v5 = vpack.c.bf16 %v334_v4, %v333_v2  ;;  %v336_v7 = vld [vmem:[#allocation7 + $0x28] sm:$0xff]  ;;  %v299_v9 = vld [vmem:[%s5481_s28] sm:$0xff]  ;;  %v337_v10 = vld [vmem:[#allocation7 + $0x30] sm:$0xff]  ;;  %258 = vst [vmem:[#allocation2] sm:$0x3] %v5244_v1  ;;  %s3788_s19 = scalar_lea.sflag [#allocation6], %s5475_s25 }
  0x8b   : > { %4567 = vmatprep.subr.bf16.mxu0 %v4566_v3  ;;  %v4574_v8 = vpack.c.bf16 %v336_v7, %v335_v6  ;;  %v338_v11 = vld [vmem:[#allocation7 + $0x38] sm:$0xff]  ;;  %4198 = vmatprep.mubr.f32.mxu0 %v299_v9  ;;  %v339_v13 = vld [vmem:[#allocation7 + $0x40] sm:$0xff]  ;;  %v340_v14 = vld [vmem:[#allocation7 + $0x48] sm:$0xff]  ;;  %259 = vst [vmem:[#allocation2 + $0x18] sm:$0x3] %v5244_v1  ;;  %s5162_s11 = scalar_lea.vmem %s6887_s14, 4096 }
  0x8c   : > { %4569 = vmatpush3.bf16.msra.mxu0 %v4566_v3  ;;  %v4578_v12 = vpack.c.bf16 %v338_v11, %v337_v10  ;;  %v4582_v15 = vpack.c.bf16 %v340_v14, %v339_v13  ;;  %v341_v16 = vld [vmem:[#allocation7 + $0x50] sm:$0xff]  ;;  %v342_v17 = vld [vmem:[#allocation7 + $0x58] sm:$0xff]  ;;  %v343_v19 = vld [vmem:[#allocation7 + $0x60] sm:$0xff]  ;;  %260 = vst [vmem:[#allocation2 + $0x30] sm:$0x3] %v5244_v1  ;;  %p5163_p10 = scmp.ne.s32.totalorder %s6887_s14, %s5162_s11  ;;  %s5245_s30 = smov [#allocation12]  }
  0x8d   : > { %4571 = vmatprep.subr.bf16.mxu0 %v4570_v5  ;;  %v4586_v18 = vpack.c.bf16 %v342_v17, %v341_v16  ;;  %v344_v20 = vld [vmem:[#allocation7 + $0x68] sm:$0xff]  ;;  %v345_v22 = vld [vmem:[#allocation7 + $0x70] sm:$0xff]  ;;  %v346_v23 = vld [vmem:[#allocation7 + $0x78] sm:$0xff]  ;;  %261 = vst [vmem:[#allocation2 + $0x48] sm:$0x3] %v5244_v1  ;;  %s5166_s5 = sshll.u32 %s5245_s30, 4  ;;  %s5167_s5 = int_to_ptr.vmem [resolvable:$false] %s5166_s5 }
  0x8e   : > { %v4590_v21 = vpack.c.bf16 %v344_v20, %v343_v19  ;;  %v4594_v24 = vpack.c.bf16 %v346_v23, %v345_v22  ;;  %v1232_v25 = vld [vmem:[#allocation9 + $0x80] sm:$0xff]  ;;  %v1233_v26 = vld [vmem:[#allocation9 + $0x88] sm:$0xff]  ;;  %v301_v29 = vld [vmem:[%s5481_s28 + $0x10] sm:$0xff]  ;;  %262 = vst [vmem:[#allocation2 + $0x60] sm:$0x3] %v5244_v1  ;;  %p5164_p3 = pnand %p5163_p10, %p5424_p5  ;;  %s5168_s27 = scalar_lea.vmem %s5167_s5, 8192 }
  0x8f   : > { %v4598_v27 = vpack.c.bf16 %v1233_v26, %v1232_v25  ;;  %v300_v28 = vld [vmem:[%s5481_s28 + $0x8] sm:$0xff]  ;;  %v302_v30 = vld [vmem:[%s5481_s28 + $0x18] sm:$0xff]  ;;  %v303_v31 = vld [vmem:[%s5481_s28 + $0x20] sm:$0xff]  ;;  %263 = vst [vmem:[#allocation2 + $0x78] sm:$0x3] %v5244_v1  ;;  %p5169_p12 = scmp.lt.s32.totalorder %s6887_s14, %s5167_s5  ;;  %p5170_p1 = scmp.lt.s32.totalorder %s5168_s27, %s5162_s11 }
  0x90   : > { %4573 = vmatpush3.bf16.msra.mxu0 %v4570_v5  ;;  %v304_v32 = vld [vmem:[%s5481_s28 + $0x28] sm:$0xff]  ;;  %v305_v33 = vld [vmem:[%s5481_s28 + $0x30] sm:$0xff]  ;;  %v306_v34 = vld [vmem:[%s5481_s28 + $0x38] sm:$0xff]  ;;  %264 = vst [vmem:[#allocation2 + $0x90] sm:$0x3] %v5244_v1  ;;  %p5165_p7 = pneg %p5164_p3 }
  0x91   : > { %4575 = vmatprep.subr.bf16.mxu0 %v4574_v8  ;;  %v307_v35 = vld [vmem:[%s5481_s28 + $0x40] sm:$0xff]  ;;  %v308_v36 = vld [vmem:[%s5481_s28 + $0x48] sm:$0xff]  ;;  %v309_v37 = vld [vmem:[%s5481_s28 + $0x50] sm:$0xff]  ;;  %265 = vst [vmem:[#allocation2 + $0xa8] sm:$0x3] %v5244_v1  ;;  %p5171_p2 = por %p5170_p1, %p5169_p12 }
  0x92   : > { %v310_v38 = vld [vmem:[%s5481_s28 + $0x58] sm:$0xff]  ;;  %v311_v39 = vld [vmem:[%s5481_s28 + $0x60] sm:$0xff]  ;;  %v312_v40 = vld [vmem:[%s5481_s28 + $0x68] sm:$0xff]  ;;  %266 = vst [vmem:[#allocation2 + $0xc0] sm:$0x3] %v5244_v1 }
  0x93   : > { %v313_v41 = vld [vmem:[%s5481_s28 + $0x70] sm:$0xff]  ;;  %v314_v42 = vld [vmem:[%s5481_s28 + $0x78] sm:$0xff]  ;;  %v315_v43 = vld [vmem:[%s5481_s28 + $0x80] sm:$0xff]  ;;  %267 = vst [vmem:[#allocation2 + $0xd8] sm:$0x3] %v5244_v1  ;;  %p5172_p4 = pnand %p5171_p2, %p5165_p7 }
  0x94   : > { %4577 = vmatpush3.bf16.msra.mxu0 %v4574_v8  ;;  %v316_v44 = vld [vmem:[%s5481_s28 + $0x88] sm:$0xff]  ;;  %v317_v45 = vld [vmem:[%s5481_s28 + $0x90] sm:$0xff]  ;;  %v318_v46 = vld [vmem:[%s5481_s28 + $0x98] sm:$0xff]  ;;  %268 = vst [vmem:[#allocation2 + $0xf0] sm:$0x3] %v5244_v1 }
  0x95   : > { %4579 = vmatprep.subr.bf16.mxu0 %v4578_v12  ;;  %v319_v47 = vld [vmem:[%s5481_s28 + $0xa0] sm:$0xff]  ;;  %v320_v48 = vld [vmem:[%s5481_s28 + $0xa8] sm:$0xff]  ;;  %v321_v49 = vld [vmem:[%s5481_s28 + $0xb0] sm:$0xff]  ;;  %269 = vst [vmem:[#allocation2 + $0x108] sm:$0x3] %v5244_v1 }
  0x96   : > { %v322_v50 = vld [vmem:[%s5481_s28 + $0xb8] sm:$0xff]  ;;  %v323_v51 = vld [vmem:[%s5481_s28 + $0xc0] sm:$0xff]  ;;  %v324_v52 = vld [vmem:[%s5481_s28 + $0xc8] sm:$0xff]  ;;  %270 = vst [vmem:[#allocation2 + $0x120] sm:$0x3] %v5244_v1 }
  0x97   : > { %v325_v53 = vld [vmem:[%s5481_s28 + $0xd0] sm:$0xff]  ;;  %v326_v54 = vld [vmem:[%s5481_s28 + $0xd8] sm:$0xff]  ;;  %v327_v55 = vld [vmem:[%s5481_s28 + $0xe0] sm:$0xff]  ;;  %271 = vst [vmem:[#allocation2 + $0x138] sm:$0x3] %v5244_v1 }
  0x98   : > { %4581 = vmatpush3.bf16.msra.mxu0 %v4578_v12  ;;  %v328_v56 = vld [vmem:[%s5481_s28 + $0xe8] sm:$0xff]  ;;  %v329_v57 = vld [vmem:[%s5481_s28 + $0xf0] sm:$0xff]  ;;  %v330_v58 = vld [vmem:[%s5481_s28 + $0xf8] sm:$0xff]  ;;  %272 = vst [vmem:[#allocation2 + $0x150] sm:$0x3] %v5244_v1 }
  0x99   : > { %4583 = vmatprep.subr.bf16.mxu0 %v4582_v15  ;;  %v1234_v59 = vld [vmem:[#allocation9 + $0x90] sm:$0xff]  ;;  %v1235_v60 = vld [vmem:[#allocation9 + $0x98] sm:$0xff]  ;;  %v572_v62 = vld [vmem:[#allocation9] sm:$0xff]  ;;  %273 = vst [vmem:[#allocation2 + $0x168] sm:$0x3] %v5244_v1 }
  0x9a   : > { %v4602_v61 = vpack.c.bf16 %v1235_v60, %v1234_v59  ;;  %v573_v63 = vld [vmem:[#allocation9 + $0x8] sm:$0xff]  ;;  %274 = vst [vmem:[#allocation2 + $0x12] sm:$0x3] %v5244_v1  ;;  %275 = vst [vmem:[#allocation2 + $0x2a] sm:$0x3] %v5244_v1  ;;  %v1236_v2 = vld [vmem:[#allocation9 + $0xa0] sm:$0xff] }
  0x9b   : > { %v5527_v0 = vpack.c.bf16 %v573_v63, %v572_v62  ;;  %276 = vst [vmem:[#allocation2 + $0x42] sm:$0x3] %v5244_v1  ;;  %277 = vst [vmem:[#allocation2 + $0x5a] sm:$0x3] %v5244_v1  ;;  %v1237_v3 = vld [vmem:[#allocation9 + $0xa8] sm:$0xff]  ;;  %v574_v5 = vld [vmem:[#allocation9 + $0x10] sm:$0xff] }
  0x9c   : > { %4585 = vmatpush3.bf16.msra.mxu0 %v4582_v15  ;;  %278 = vst [vmem:[#allocation2 + $0x72] sm:$0x3] %v5244_v1  ;;  %279 = vst [vmem:[#allocation2 + $0x8a] sm:$0x3] %v5244_v1  ;;  %v4606_v4 = vpack.c.bf16 %v1237_v3, %v1236_v2  ;;  %v575_v6 = vld [vmem:[#allocation9 + $0x18] sm:$0xff]  ;;  %v1238_v8 = vld [vmem:[#allocation9 + $0xb0] sm:$0xff] }
  0x9d   : > { %4587 = vmatprep.subr.bf16.mxu0 %v4586_v18  ;;  %280 = vst [vmem:[#allocation2 + $0xa2] sm:$0x3] %v5244_v1  ;;  %281 = vst [vmem:[#allocation2 + $0xba] sm:$0x3] %v5244_v1  ;;  %4726 = vmatprep.subr.bf16.mxu1 %v5527_v0  ;;  %v5531_v7 = vpack.c.bf16 %v575_v6, %v574_v5  ;;  %v1239_v9 = vld [vmem:[#allocation9 + $0xb8] sm:$0xff]  ;;  %v576_v11 = vld [vmem:[#allocation9 + $0x20] sm:$0xff] }
  0x9e   : > { %282 = vst [vmem:[#allocation2 + $0xd2] sm:$0x3] %v5244_v1  ;;  %283 = vst [vmem:[#allocation2 + $0xea] sm:$0x3] %v5244_v1  ;;  %4734 = vmatpush3.bf16.msra.mxu1 %v5527_v0  ;;  %v4610_v10 = vpack.c.bf16 %v1239_v9, %v1238_v8  ;;  %v577_v12 = vld [vmem:[#allocation9 + $0x28] sm:$0xff]  ;;  %v1240_v14 = vld [vmem:[#allocation9 + $0xc0] sm:$0xff] }
  0x9f   : > { %284 = vst [vmem:[#allocation2 + $0x102] sm:$0x3] %v5244_v1  ;;  %285 = vst [vmem:[#allocation2 + $0x11a] sm:$0x3] %v5244_v1  ;;  %4727 = vmatprep.subr.bf16.mxu1 %v5531_v7  ;;  %v5535_v13 = vpack.c.bf16 %v577_v12, %v576_v11  ;;  %v1241_v15 = vld [vmem:[#allocation9 + $0xc8] sm:$0xff]  ;;  %v578_v17 = vld [vmem:[#allocation9 + $0x30] sm:$0xff] }
  0xa0   : > { %4589 = vmatpush3.bf16.msra.mxu0 %v4586_v18  ;;  %286 = vst [vmem:[#allocation2 + $0x132] sm:$0x3] %v5244_v1  ;;  %287 = vst [vmem:[#allocation2 + $0x14a] sm:$0x3] %v5244_v1  ;;  %v4614_v16 = vpack.c.bf16 %v1241_v15, %v1240_v14  ;;  %v579_v18 = vld [vmem:[#allocation9 + $0x38] sm:$0xff]  ;;  %v1242_v20 = vld [vmem:[#allocation9 + $0xd0] sm:$0xff] }
  0xa1   : > { %4591 = vmatprep.subr.bf16.mxu0 %v4590_v21  ;;  %288 = vst [vmem:[#allocation2 + $0x162] sm:$0x3] %v5244_v1  ;;  %289 = vst [vmem:[#allocation2 + $0x17a] sm:$0x3] %v5244_v1  ;;  %v5539_v19 = vpack.c.bf16 %v579_v18, %v578_v17  ;;  %v580_v23 = vld [vmem:[#allocation9 + $0x40] sm:$0xff]  ;;  %v2340_v2 = vld [vmem:[#allocation9 + $0x110] sm:$0xff] }
  0xa2   : > { %4735 = vmatpush3.bf16.msra.mxu1 %v5531_v7  ;;  %v1244_v26 = vld [vmem:[#allocation9 + $0xe0] sm:$0xff]  ;;  %v2341_v3 = vld [vmem:[#allocation9 + $0x118] sm:$0xff]  ;;  %v2343_v8 = vld [vmem:[#allocation9 + $0x128] sm:$0xff] }
  0xa3   : > { %4728 = vmatprep.subr.bf16.mxu1 %v5535_v13  ;;  %v2342_v6 = vld [vmem:[#allocation9 + $0x120] sm:$0xff]  ;;  %v2344_v14 = vld [vmem:[#allocation9 + $0x130] sm:$0xff]  ;;  %v2345_v15 = vld [vmem:[#allocation9 + $0x138] sm:$0xff] }
  0xa4   : > { %4593 = vmatpush3.bf16.msra.mxu0 %v4590_v21  ;;  %v1243_v21 = vld [vmem:[#allocation9 + $0xd8] sm:$0xff] }
  0xa5   : > { %4595 = vmatprep.subr.bf16.mxu0 %v4594_v24  ;;  %v4618_v22 = vpack.c.bf16 %v1243_v21, %v1242_v20 }
  0xa6   : > { %4736 = vmatpush3.bf16.msra.mxu1 %v5535_v13 }
  0xa7   : > { %4729 = vmatprep.subr.bf16.mxu1 %v5539_v19 }
  0xa8   : > { %4597 = vmatpush3.bf16.msra.mxu0 %v4594_v24  ;;  %v581_v24 = vld [vmem:[#allocation9 + $0x48] sm:$0xff] }
  0xa9   : > { %4599 = vmatprep.subr.bf16.mxu0 %v4598_v27  ;;  %v5543_v25 = vpack.c.bf16 %v581_v24, %v580_v23  ;;  %v2346_v23 = vld [vmem:[#allocation9 + $0x140] sm:$0xff]  ;;  %v2347_v24 = vld [vmem:[#allocation9 + $0x148] sm:$0xff] }
  0xaa   : > { %4737 = vmatpush3.bf16.msra.mxu1 %v5539_v19 }
  0xab   : > { %4199 = vmatmul.mubr.f32.vlgmr.msra.gmra.mrb[0].mxu0 %v300_v28  ;;  %4730 = vmatprep.subr.bf16.mxu1 %v5543_v25 }
  0xac   : > { %4201 = vmatprep.mubr.f32.mxu0 %v301_v29  ;;  %4601 = vmatpush3.bf16.msra.mxu0 %v4598_v27  ;;  %v1245_v27 = vld [vmem:[#allocation9 + $0xe8] sm:$0xff]  ;;  %v582_v29 = vld [vmem:[#allocation9 + $0x50] sm:$0xff] }
  0xad   : > { %4603 = vmatprep.subr.bf16.mxu0 %v4602_v61  ;;  %v4622_v28 = vpack.c.bf16 %v1245_v27, %v1244_v26 }
  0xae   : > { %4738 = vmatpush3.bf16.msra.mxu1 %v5543_v25 }
  0xaf   : > { %4202 = vmatmul.mubr.f32.gmra.mrb[2].mxu0 %v302_v30  ;;  %v583_v30 = vld [vmem:[#allocation9 + $0x58] sm:$0xff] }
  0xb0   : > { %4204 = vmatprep.mubr.f32.mxu0 %v303_v31  ;;  %4605 = vmatpush3.bf16.msra.mxu0 %v4602_v61  ;;  %v5547_v31 = vpack.c.bf16 %v583_v30, %v582_v29 }
  0xb1   : > { %4607 = vmatprep.subr.bf16.mxu0 %v4606_v4 }
  0xb2   : > { %4731 = vmatprep.subr.bf16.mxu1 %v5547_v31 }
  0xb3   : > { %4205 = vmatmul.mubr.f32.gmra.mrb[4].mxu0 %v304_v32  ;;  %v1246_v32 = vld [vmem:[#allocation9 + $0xf0] sm:$0xff]  ;;  %4739 = vmatpush3.bf16.msra.mxu1 %v5547_v31 }
  0xb4   : > { %4207 = vmatprep.mubr.f32.mxu0 %v305_v33  ;;  %4609 = vmatpush3.bf16.msra.mxu0 %v4606_v4  ;;  %v1247_v33 = vld [vmem:[#allocation9 + $0xf8] sm:$0xff] }
  0xb5   : > { %4611 = vmatprep.subr.bf16.mxu0 %v4610_v10 }
  0xb7   : > { %4208 = vmatmul.mubr.f32.gmra.mrb[6].mxu0 %v306_v34  ;;  %v4626_v34 = vpack.c.bf16 %v1247_v33, %v1246_v32  ;;  %v2348_v32 = vld [vmem:[#allocation9 + $0x150] sm:$0xff]  ;;  %v2349_v33 = vld [vmem:[#allocation9 + $0x158] sm:$0xff] }
  0xb8   : > { %4210 = vmatprep.mubr.f32.mxu0 %v307_v35  ;;  %4613 = vmatpush3.bf16.msra.mxu0 %v4610_v10  ;;  %v584_v35 = vld [vmem:[#allocation9 + $0x60] sm:$0xff] }
  0xb9   : > { %4615 = vmatprep.subr.bf16.mxu0 %v4614_v16 }
  0xbb   : > { %4211 = vmatmul.mubr.f32.gmra.mrb[8].mxu0 %v308_v36  ;;  %v585_v36 = vld [vmem:[#allocation9 + $0x68] sm:$0xff] }
  0xbc   : > { %4213 = vmatprep.mubr.f32.mxu0 %v309_v37  ;;  %4617 = vmatpush3.bf16.msra.mxu0 %v4614_v16  ;;  %v5551_v37 = vpack.c.bf16 %v585_v36, %v584_v35 }
  0xbd   : > { %4619 = vmatprep.subr.bf16.mxu0 %v4618_v22 }
  0xbe   : > { %4732 = vmatprep.subr.bf16.mxu1 %v5551_v37 }
  0xbf   : > { %4214 = vmatmul.mubr.f32.gmra.mrb[10].mxu0 %v310_v38  ;;  %4740 = vmatpush3.bf16.msra.mxu1 %v5551_v37  ;;  %v586_v38 = vld [vmem:[#allocation9 + $0x70] sm:$0xff] }
  0xc0   : > { %4216 = vmatprep.mubr.f32.mxu0 %v311_v39  ;;  %4621 = vmatpush3.bf16.msra.mxu0 %v4618_v22  ;;  %v587_v39 = vld [vmem:[#allocation9 + $0x78] sm:$0xff] }
  0xc1   : > { %4623 = vmatprep.subr.bf16.mxu0 %v4622_v28 }
  0xc3   : > { %4217 = vmatmul.mubr.f32.gmra.mrb[12].mxu0 %v312_v40  ;;  %v5556_v40 = vpack.c.bf16 %v587_v39, %v586_v38  ;;  %v5597_v39 = vpack.c.bf16 %v2341_v3, %v2340_v2 }
  0xc4   : > { %4219 = vmatprep.mubr.f32.mxu0 %v313_v41  ;;  %4625 = vmatpush3.bf16.msra.mxu0 %v4622_v28  ;;  %v2338_v41 = vld [vmem:[#allocation9 + $0x100] sm:$0xff] }
  0xc5   : > { %4627 = vmatprep.subr.bf16.mxu0 %v4626_v34  ;;  %4733 = vmatprep.subr.bf16.mxu1 %v5556_v40 }
  0xc6   : > { %4741 = vmatpush3.bf16.msra.mxu1 %v5556_v40 }
  0xc7   : > { %4220 = vmatmul.mubr.f32.gmra.mrb[14].mxu0 %v314_v42  ;;  %v2339_v42 = vld [vmem:[#allocation9 + $0x108] sm:$0xff] }
  0xc8   : > { %4222 = vmatprep.mubr.f32.mxu0 %v315_v43  ;;  %4629 = vmatpush3.bf16.msra.mxu0 %v4626_v34  ;;  %v5560_v43 = vpack.c.bf16 %v2339_v42, %v2338_v41  ;;  %v2350_v41 = vld [vmem:[#allocation9 + $0x160] sm:$0xff]  ;;  %v2351_v42 = vld [vmem:[#allocation9 + $0x168] sm:$0xff] }
  0xc9   : > { %4631 = vmatprep.subr.bf16.mxu0 %v5527_v0 }
  0xca   : > { %4663 = vmatprep.subr.bf16.mxu1 %v5560_v43 }
  0xcb   : > { %4223 = vmatmul.mubr.f32.gmra.mrb[16].mxu0 %v316_v44 }
  0xcc   : > { %4225 = vmatprep.mubr.f32.mxu0 %v317_v45 }
  0xcf   : > { %4226 = vmatmul.mubr.f32.gmra.mrb[18].mxu0 %v318_v46 }
  0xd0   : > { %4228 = vmatprep.mubr.f32.mxu0 %v319_v47 }
  0xd3   : > { %4229 = vmatmul.mubr.f32.gmra.mrb[20].mxu0 %v320_v48 }
  0xd4   : > { %4231 = vmatprep.mubr.f32.mxu0 %v321_v49 }
  0xd7   : > { %4232 = vmatmul.mubr.f32.gmra.mrb[22].mxu0 %v322_v50 }
  0xd8   : > { %4234 = vmatprep.mubr.f32.mxu0 %v323_v51 }
  0xdb   : > { %4235 = vmatmul.mubr.f32.gmra.mrb[24].mxu0 %v324_v52 }
  0xdc   : > { %4237 = vmatprep.mubr.f32.mxu0 %v325_v53 }
  0xdf   : > { %4238 = vmatmul.mubr.f32.gmra.mrb[26].mxu0 %v326_v54 }
  0xe0   : > { %4240 = vmatprep.mubr.f32.mxu0 %v327_v55 }
  0xe3   : > { %4241 = vmatmul.mubr.f32.gmra.mrb[28].mxu0 %v328_v56 }
  0xe4   : > { %4243 = vmatprep.mubr.f32.mxu0 %v329_v57 }
  0xe7   : > { %4244 = vmatmul.mubr.f32.gmra.mrb[30].mxu0 %v330_v58 }
 0x17e   : > { %v5563_v44 = vpop.f32.mrb[0].mxu0 }
 0x17f   : > { %6979 = vst [vmem:[#allocation17_spill] sm:$0xff] %v5563_v44  ;;  %589 = vst [vmem:[#allocation2 + $0xa] sm:$0xff] %v5563_v44  ;;  %v5566_v45 = vpop.f32.mrb[1].mxu0 }
 0x180   : > { %6980 = vst [vmem:[#allocation18_spill] sm:$0xff] %v5566_v45  ;;  %588 = vst [vmem:[#allocation2 + $0x2] sm:$0xff] %v5566_v45 }
 0x182   : > { %v5569_v46 = vpop.f32.mrb[2].mxu0 }
 0x183   : > { %6981 = vst [vmem:[#allocation19_spill] sm:$0xff] %v5569_v46  ;;  %591 = vst [vmem:[#allocation2 + $0x22] sm:$0xff] %v5569_v46  ;;  %v5572_v47 = vpop.f32.mrb[3].mxu0 }
 0x184   : > { %6982 = vst [vmem:[#allocation20_spill] sm:$0xff] %v5572_v47  ;;  %590 = vst [vmem:[#allocation2 + $0x1a] sm:$0xff] %v5572_v47 }
 0x186   : > { %v5575_v48 = vpop.f32.mrb[4].mxu0  ;;  %v781_v12 = vld [vmem:[#allocation2 + $0xb] sm:$0xff] }
 0x187   : > { %6983 = vst [vmem:[#allocation21_spill] sm:$0xff] %v5575_v48  ;;  %593 = vst [vmem:[#allocation2 + $0x3a] sm:$0xff] %v5575_v48  ;;  %v5578_v49 = vpop.f32.mrb[5].mxu0  ;;  %v620_v50 = vld [vmem:[#allocation2] sm:$0xff]  ;;  %v621_v53 = vld [vmem:[#allocation2 + $0x8] sm:$0xff] }
 0x188   : > { %6984 = vst [vmem:[#allocation22_spill] sm:$0xff] %v5578_v49  ;;  %v652_v51 = vld [vmem:[#allocation2 + $0x1] sm:$0xff]  ;;  %592 = vst [vmem:[#allocation2 + $0x32] sm:$0xff] %v5578_v49  ;;  %v653_v54 = vld [vmem:[#allocation2 + $0x9] sm:$0xff] }
 0x189   : > { %v684_v52 = vmax.f32 %v620_v50, %v652_v51  ;;  %v685_v55 = vmax.f32 %v621_v53, %v653_v54  ;;  %v780_v4 = vld [vmem:[#allocation2 + $0x3] sm:$0xff]  ;;  %v2352_v50 = vld [vmem:[#allocation9 + $0x170] sm:$0xff]  ;;  %v2353_v51 = vld [vmem:[#allocation9 + $0x178] sm:$0xff] }
 0x18a   : > { %v5581_v56 = vpop.f32.mrb[6].mxu0  ;;  %v783_v30 = vld [vmem:[#allocation2 + $0x23] sm:$0xff] }
 0x18b   : > { %6985 = vst [vmem:[#allocation23_spill] sm:$0xff] %v5581_v56  ;;  %v748_v57 = vmax.f32 %v684_v52, %v5566_v45  ;;  %595 = vst [vmem:[#allocation2 + $0x52] sm:$0xff] %v5581_v56  ;;  %v5585_v58 = vpop.f32.mrb[7].mxu0  ;;  %v622_v59 = vld [vmem:[#allocation2 + $0x18] sm:$0xff]  ;;  %v749_v61 = vmax.f32 %v685_v55, %v5563_v44  ;;  %v623_v63 = vld [vmem:[#allocation2 + $0x20] sm:$0xff] }
 0x18c   : > { %6986 = vst [vmem:[#allocation24_spill] sm:$0xff] %v5585_v58  ;;  %v654_v60 = vld [vmem:[#allocation2 + $0x19] sm:$0xff]  ;;  %594 = vst [vmem:[#allocation2 + $0x4a] sm:$0xff] %v5585_v58  ;;  %v655_v1 = vld [vmem:[#allocation2 + $0x21] sm:$0xff] }
 0x18d   : > { %v686_v62 = vmax.f32 %v622_v59, %v654_v60  ;;  %v687_v5 = vmax.f32 %v623_v63, %v655_v1  ;;  %v812_v11 = vmax.f32 %v748_v57, %v780_v4  ;;  %v782_v20 = vld [vmem:[#allocation2 + $0x1b] sm:$0xff]  ;;  %v813_v22 = vmax.f32 %v749_v61, %v781_v12  ;;  %v844_v34 = vld [vmem:[#allocation2 + $0x4] sm:$0xff]  ;;  %v845_v57 = vld [vmem:[#allocation2 + $0xc] sm:$0xff] }
 0x18e   : > { %v5589_v9 = vpop.f32.mrb[8].mxu0  ;;  %v846_v35 = vld [vmem:[#allocation2 + $0x1c] sm:$0xff]  ;;  %v847_v59 = vld [vmem:[#allocation2 + $0x24] sm:$0xff]  ;;  %v5604_v60 = vpack.c.bf16 %v2343_v8, %v2342_v6  ;;  %v3253_v63 = vld [vmem:[#allocation9 + $0x190] sm:$0xff] }
 0x18f   : > { %6987 = vst [vmem:[#allocation25_spill] sm:$0xff] %v5589_v9  ;;  %v750_v10 = vmax.f32 %v686_v62, %v5572_v47  ;;  %597 = vst [vmem:[#allocation2 + $0x6a] sm:$0xff] %v5589_v9  ;;  %v5593_v16 = vpop.f32.mrb[9].mxu0  ;;  %v624_v17 = vld [vmem:[#allocation2 + $0x30] sm:$0xff]  ;;  %v751_v21 = vmax.f32 %v687_v5, %v5569_v46  ;;  %v625_v28 = vld [vmem:[#allocation2 + $0x38] sm:$0xff]  ;;  %v876_v54 = vmax.f32 %v812_v11, %v844_v34 }
 0x190   : > { %6988 = vst [vmem:[#allocation26_spill] sm:$0xff] %v5593_v16  ;;  %v656_v18 = vld [vmem:[#allocation2 + $0x31] sm:$0xff]  ;;  %596 = vst [vmem:[#allocation2 + $0x62] sm:$0xff] %v5593_v16  ;;  %v657_v29 = vld [vmem:[#allocation2 + $0x39] sm:$0xff]  ;;  %v877_v5 = vmax.f32 %v813_v22, %v845_v57  ;;  %v5619_v34 = vpack.c.bf16 %v2349_v33, %v2348_v32 }
 0x191   : > { %v688_v26 = vmax.f32 %v624_v17, %v656_v18  ;;  %v814_v27 = vmax.f32 %v750_v10, %v782_v20  ;;  %v689_v36 = vmax.f32 %v625_v28, %v657_v29  ;;  %v815_v38 = vmax.f32 %v751_v21, %v783_v30  ;;  %v3251_v61 = vld [vmem:[#allocation9 + $0x180] sm:$0xff]  ;;  %v3252_v62 = vld [vmem:[#allocation9 + $0x188] sm:$0xff]  ;;  %v3254_v1 = vld [vmem:[#allocation9 + $0x198] sm:$0xff] }
 0x192   : > { %v5599_v52 = vpop.f32.mrb[10].mxu0  ;;  %v784_v3 = vld [vmem:[#allocation2 + $0x33] sm:$0xff]  ;;  %v5612_v17 = vpack.c.bf16 %v2345_v15, %v2344_v14  ;;  %v785_v18 = vld [vmem:[#allocation2 + $0x3b] sm:$0xff]  ;;  %v3256_v15 = vld [vmem:[#allocation9 + $0x1a8] sm:$0xff] }
 0x193   : > { %6989 = vst [vmem:[#allocation27_spill] sm:$0xff] %v5599_v52  ;;  %v752_v53 = vmax.f32 %v688_v26, %v5578_v49  ;;  %v5602_v55 = vmax.f32 %v814_v27, %v846_v35  ;;  %599 = vst [vmem:[#allocation2 + $0x82] sm:$0xff] %v5599_v52  ;;  %v5607_v2 = vpop.f32.mrb[11].mxu0  ;;  %v753_v4 = vmax.f32 %v689_v36, %v5575_v48  ;;  %v626_v11 = vld [vmem:[#allocation2 + $0x48] sm:$0xff]  ;;  %v627_v21 = vld [vmem:[#allocation2 + $0x50] sm:$0xff] }
 0x194   : > { %6990 = vst [vmem:[#allocation28_spill] sm:$0xff] %v5607_v2  ;;  %v5610_v10 = vmax.f32 %v815_v38, %v847_v59  ;;  %v658_v12 = vld [vmem:[#allocation2 + $0x49] sm:$0xff]  ;;  %598 = vst [vmem:[#allocation2 + $0x7a] sm:$0xff] %v5607_v2  ;;  %v659_v26 = vld [vmem:[#allocation2 + $0x51] sm:$0xff]  ;;  %v5616_v27 = vpack.c.bf16 %v2347_v24, %v2346_v23  ;;  %v5626_v23 = vpack.c.bf16 %v2351_v42, %v2350_v41 }
 0x195   : > { %v816_v6 = vmax.f32 %v752_v53, %v784_v3  ;;  %v1010_v8 = vmax.f32 %v876_v54, %v5602_v55  ;;  %v690_v20 = vmax.f32 %v626_v11, %v658_v12  ;;  %v848_v28 = vld [vmem:[#allocation2 + $0x34] sm:$0xff]  ;;  %v817_v29 = vmax.f32 %v753_v4, %v785_v18  ;;  %v3255_v14 = vld [vmem:[#allocation9 + $0x1a0] sm:$0xff]  ;;  %v3260_v3 = vld [vmem:[#allocation9 + $0x1c8] sm:$0xff] }
 0x196   : > { %v1011_v22 = vmax.f32 %v877_v5, %v5610_v10  ;;  %v691_v30 = vmax.f32 %v627_v21, %v659_v26  ;;  %v3257_v35 = vld [vmem:[#allocation9 + $0x1b0] sm:$0xff]  ;;  %v3258_v36 = vld [vmem:[#allocation9 + $0x1b8] sm:$0xff]  ;;  %v5621_v38 = vpop.f32.mrb[12].mxu0  ;;  %v5628_v24 = vpack.c.bf16 %v2353_v51, %v2352_v50  ;;  %v3259_v59 = vld [vmem:[#allocation9 + $0x1c0] sm:$0xff]  ;;  %v5638_v41 = vpack.c.bf16 %v3254_v1, %v3253_v63 }
 0x197   : > { %6991 = vst [vmem:[#allocation29_spill] sm:$0xff] %v5621_v38  ;;  %v5623_v53 = vmax.f32 %v816_v6, %v848_v28  ;;  %v849_v54 = vld [vmem:[#allocation2 + $0x3c] sm:$0xff]  ;;  %v754_v57 = vmax.f32 %v690_v20, %v5585_v58  ;;  %v3261_v4 = vld [vmem:[#allocation9 + $0x1d0] sm:$0xff]  ;;  %601 = vst [vmem:[#allocation2 + $0x9a] sm:$0xff] %v5621_v38  ;;  %v5631_v33 = vpop.f32.mrb[13].mxu0  ;;  %v5636_v20 = vpack.c.bf16 %v3252_v62, %v3251_v61 }
 0x198   : > { %v3262_v32 = vld [vmem:[#allocation9 + $0x1d8] sm:$0xff]  ;;  %6992 = vst [vmem:[#allocation30_spill] sm:$0xff] %v5631_v33  ;;  %v5633_v5 = vmax.f32 %v817_v29, %v849_v54  ;;  %v786_v11 = vld [vmem:[#allocation2 + $0x4b] sm:$0xff]  ;;  %v755_v12 = vmax.f32 %v691_v30, %v5581_v56  ;;  %v628_v6 = vld [vmem:[#allocation2 + $0x60] sm:$0xff] }
 0x199   : > { %v660_v18 = vld [vmem:[#allocation2 + $0x61] sm:$0xff]  ;;  %600 = vst [vmem:[#allocation2 + $0x92] sm:$0xff] %v5631_v33  ;;  %v5642_v42 = vmax.f32 %v1010_v8, %v5623_v53  ;;  %v818_v50 = vmax.f32 %v754_v57, %v786_v11  ;;  %v787_v51 = vld [vmem:[#allocation2 + $0x53] sm:$0xff]  ;;  %v661_v28 = vld [vmem:[#allocation2 + $0x69] sm:$0xff]  ;;  %v1012_v29 = vmax.f32 %v5602_v55, %v5623_v53  ;;  %v5658_v11 = vpack.c.bf16 %v3256_v15, %v3255_v14 }
 0x19a   : > { %v692_v21 = vmax.f32 %v628_v6, %v660_v18  ;;  %v629_v26 = vld [vmem:[#allocation2 + $0x68] sm:$0xff]  ;;  %v5647_v30 = vmax.f32 %v1011_v22, %v5633_v5  ;;  %v819_v62 = vmax.f32 %v755_v12, %v787_v51  ;;  %v1013_v1 = vmax.f32 %v5610_v10, %v5633_v5  ;;  %v5651_v54 = vpop.f32.mrb[14].mxu0  ;;  %v851_v57 = vld [vmem:[#allocation2 + $0x54] sm:$0xff]  ;;  %v3263_v12 = vld [vmem:[#allocation9 + $0x1e0] sm:$0xff] }
 0x19b   : > { %v850_v61 = vld [vmem:[#allocation2 + $0x4c] sm:$0xff]  ;;  %v693_v63 = vmax.f32 %v629_v26, %v661_v28  ;;  %6993 = vst [vmem:[#allocation31_spill] sm:$0xff] %v5651_v54  ;;  %4278 = vmatprep.mubr.f32.mxu0 %v5642_v42  ;;  %1698 = vst [vmem:[#allocation2 + $0x2] sm:$0xff] %v5642_v42  ;;  %v5660_v22 = vpack.c.bf16 %v3258_v36, %v3257_v35  ;;  %v3266_v51 = vld [vmem:[#allocation9 + $0x1f8] sm:$0xff]  ;;  %v5663_v10 = vpop.f32.mrb[15].mxu0  ;;  %v5670_v36 = vpack.c.bf16 %v3260_v3, %v3259_v59 }
 0x19c   : > { %v5655_v8 = vmax.f32 %v818_v50, %v850_v61  ;;  %v756_v55 = vmax.f32 %v692_v21, %v5593_v16  ;;  %v3264_v6 = vld [vmem:[#allocation9 + $0x1e8] sm:$0xff]  ;;  %v3265_v18 = vld [vmem:[#allocation9 + $0x1f0] sm:$0xff]  ;;  %603 = vst [vmem:[#allocation2 + $0xb2] sm:$0xff] %v5651_v54  ;;  %6995 = vst [vmem:[#allocation33_spill] sm:$0xff] %v5663_v10  ;;  %4279 = vmatmul.mubr.f32.vlgmr.msra.gmra.mrb[32].mxu0 %v5647_v30  ;;  %v5667_v50 = vmax.f32 %v819_v62, %v851_v57 }
 0x19d   : > { %6994 = vst [vmem:[#allocation32_spill] sm:$0xff] %v5660_v22  ;;  %1699 = vst [vmem:[#allocation2 + $0xa] sm:$0xff] %v5647_v30  ;;  %v788_v26 = vld [vmem:[#allocation2 + $0x63] sm:$0xff]  ;;  %v757_v14 = vmax.f32 %v693_v63, %v5589_v9  ;;  %v630_v15 = vld [vmem:[#allocation2 + $0x78] sm:$0xff]  ;;  %v5672_v21 = vpack.c.bf16 %v3262_v32, %v3261_v4  ;;  %4633 = vmatpush3.bf16.msra.mxu0 %v5527_v0 }
 0x19e   : > { %v662_v35 = vld [vmem:[#allocation2 + $0x79] sm:$0xff]  ;;  %6996 = vst [vmem:[#allocation34_spill] sm:$0xff] %v5670_v36  ;;  %602 = vst [vmem:[#allocation2 + $0xaa] sm:$0xff] %v5663_v10  ;;  %v5677_v28 = vmax.f32 %v5642_v42, %v5655_v8  ;;  %v820_v61 = vmax.f32 %v756_v55, %v788_v26  ;;  %v789_v16 = vld [vmem:[#allocation2 + $0x6b] sm:$0xff]  ;;  %v5680_v62 = vmax.f32 %v1012_v29, %v5655_v8  ;;  %4635 = vmatprep.subr.bf16.mxu0 %v5531_v7  ;;  %v5691_v55 = vpop.f32.mrb[16].mxu0 }
 0x19f   : > { %6997 = vst [vmem:[#allocation35_spill] sm:$0xff] %v5672_v21  ;;  %v694_v56 = vmax.f32 %v630_v15, %v662_v35  ;;  %v631_v57 = vld [vmem:[#allocation2 + $0x80] sm:$0xff]  ;;  %v5685_v59 = vmax.f32 %v5647_v30, %v5667_v50  ;;  %v821_v4 = vmax.f32 %v757_v14, %v789_v16  ;;  %v5688_v9 = vmax.f32 %v1013_v1, %v5667_v50  ;;  %v853_v0 = vld [vmem:[#allocation2 + $0x6c] sm:$0xff]  ;;  %v5703_v14 = vpop.f32.mrb[17].mxu0 }
 0x1a0   : > { %v663_v63 = vld [vmem:[#allocation2 + $0x81] sm:$0xff]  ;;  %4281 = vmatprep.mubr.f32.mxu0 %v5677_v28  ;;  %1700 = vst [vmem:[#allocation2 + $0x1a] sm:$0xff] %v5677_v28  ;;  %v1014_v16 = vmax.f32 %v5623_v53, %v5655_v8  ;;  %v1015_v1 = vmax.f32 %v5633_v5, %v5667_v50  ;;  %605 = vst [vmem:[#allocation2 + $0xca] sm:$0xff] %v5691_v55  ;;  %v5712_v53 = vpack.c.bf16 %v3266_v51, %v3265_v18 }
 0x1a1   : > { %v852_v3 = vld [vmem:[#allocation2 + $0x64] sm:$0xff]  ;;  %v695_v32 = vmax.f32 %v631_v57, %v663_v63  ;;  %v758_v26 = vmax.f32 %v694_v56, %v5607_v2  ;;  %4282 = vmatmul.mubr.f32.gmra.mrb[34].mxu0 %v5685_v59  ;;  %1701 = vst [vmem:[#allocation2 + $0x22] sm:$0xff] %v5685_v59  ;;  %v5707_v15 = vmax.f32 %v821_v4, %v853_v0  ;;  %v790_v35 = vld [vmem:[#allocation2 + $0x7b] sm:$0xff]  ;;  %v632_v56 = vld [vmem:[#allocation2 + $0x90] sm:$0xff] }
 0x1a2   : > { %v5695_v29 = vmax.f32 %v820_v61, %v852_v3  ;;  %v664_v57 = vld [vmem:[#allocation2 + $0x91] sm:$0xff]  ;;  %v5710_v63 = vpack.c.bf16 %v3264_v6, %v3263_v12  ;;  %6999 = vst [vmem:[#allocation37_spill] sm:$0xff] %v5712_v53  ;;  %604 = vst [vmem:[#allocation2 + $0xc2] sm:$0xff] %v5703_v14  ;;  %4382 = vmatprep.mubr.f32.mxu1 %v5703_v14  ;;  %v791_v0 = vld [vmem:[#allocation2 + $0x83] sm:$0xff]  ;;  %4637 = vmatpush3.bf16.msra.mxu0 %v5531_v7 }
 0x1a3   : > { %v759_v61 = vmax.f32 %v695_v32, %v5599_v52  ;;  %v822_v3 = vmax.f32 %v758_v26, %v790_v35  ;;  %v696_v32 = vmax.f32 %v632_v56, %v664_v57  ;;  %v633_v52 = vld [vmem:[#allocation2 + $0x98] sm:$0xff]  ;;  %4383 = vmatmul.mubr.f32.vlgmr.msra.gmra.mrb[0].mxu1 %v5691_v55  ;;  %v5725_v12 = vmax.f32 %v5685_v59, %v5707_v15  ;;  %v855_v56 = vld [vmem:[#allocation2 + $0x84] sm:$0xff] }
 0x1a4   : > { %6998 = vst [vmem:[#allocation36_spill] sm:$0xff] %v5710_v63  ;;  %v5718_v5 = vmax.f32 %v5677_v28, %v5695_v29  ;;  %v1141_v4 = vmax.f32 %v5680_v62, %v5695_v29  ;;  %v665_v2 = vld [vmem:[#allocation2 + $0x99] sm:$0xff]  ;;  %v1142_v51 = vmax.f32 %v5688_v9, %v5707_v15  ;;  %v1078_v26 = vmax.f32 %v1014_v16, %v5695_v29  ;;  %v5731_v62 = vpop.f32.mrb[18].mxu0  ;;  %v1762_v45 = vld [vmem:[#allocation2 + $0x1] sm:$0xff] }
 0x1a5   : > { %v854_v6 = vld [vmem:[#allocation2 + $0x7c] sm:$0xff]  ;;  %v823_v18 = vmax.f32 %v759_v61, %v791_v0  ;;  %4665 = vmatpush3.bf16.msra.mxu1 %v5560_v43  ;;  %v760_v57 = vmax.f32 %v696_v32, %v5631_v33  ;;  %v697_v58 = vmax.f32 %v633_v52, %v665_v2  ;;  %607 = vst [vmem:[#allocation2 + $0xe2] sm:$0xff] %v5731_v62  ;;  %v5739_v61 = vpop.f32.mrb[19].mxu0  ;;  %1703 = vst [vmem:[#allocation2 + $0x3a] sm:$0xff] %v5725_v12  ;;  %v792_v9 = vld [vmem:[#allocation2 + $0x93] sm:$0xff] }
 0x1a6   : > { %4284 = vmatprep.mubr.f32.mxu0 %v5718_v5  ;;  %1702 = vst [vmem:[#allocation2 + $0x32] sm:$0xff] %v5718_v5  ;;  %v5735_v35 = vmax.f32 %v822_v3, %v854_v6  ;;  %4667 = vmatprep.subr.bf16.mxu1 %v5597_v39  ;;  %v1079_v16 = vmax.f32 %v1015_v1, %v5707_v15  ;;  %v634_v3 = vld [vmem:[#allocation2 + $0xa8] sm:$0xff]  ;;  %606 = vst [vmem:[#allocation2 + $0xda] sm:$0xff] %v5739_v61  ;;  %v667_v33 = vld [vmem:[#allocation2 + $0xb1] sm:$0xff] }
 0x1a7   : > { %4285 = vmatmul.mubr.f32.gmra.mrb[36].mxu0 %v5725_v12  ;;  %v5744_v43 = vmax.f32 %v823_v18, %v855_v56  ;;  %v666_v0 = vld [vmem:[#allocation2 + $0xa9] sm:$0xff]  ;;  %v1016_v52 = vmax.f32 %v5655_v8, %v5695_v29  ;;  %4385 = vmatprep.mubr.f32.mxu1 %v5739_v61  ;;  %v824_v32 = vmax.f32 %v760_v57, %v792_v9  ;;  %v856_v8 = vld [vmem:[#allocation2 + $0x94] sm:$0xff] }
 0x1a8   : > { %v5752_v2 = vmax.f32 %v1141_v4, %v5735_v35  ;;  %v1143_v6 = vmax.f32 %v1078_v26, %v5735_v35  ;;  %v761_v18 = vmax.f32 %v697_v58, %v5621_v38  ;;  %v635_v56 = vld [vmem:[#allocation2 + $0xb0] sm:$0xff]  ;;  %4386 = vmatmul.mubr.f32.gmra.mrb[2].mxu1 %v5731_v62  ;;  %v793_v48 = vld [vmem:[#allocation2 + $0x9b] sm:$0xff]  ;;  %v698_v49 = vmax.f32 %v634_v3, %v666_v0  ;;  %v5765_v26 = vpop.f32.mrb[20].mxu0 }
 0x1a9   : > { %v5758_v1 = vmax.f32 %v1142_v51, %v5744_v43  ;;  %v1144_v53 = vmax.f32 %v1079_v16, %v5744_v43  ;;  %v5762_v4 = vmax.f32 %v1016_v52, %v5735_v35  ;;  %4669 = vmatpush3.bf16.msra.mxu1 %v5597_v39  ;;  %v5769_v58 = vmax.f32 %v824_v32, %v856_v8  ;;  %v5772_v9 = vpop.f32.mrb[21].mxu0  ;;  %v857_v39 = vld [vmem:[#allocation2 + $0x9c] sm:$0xff]  ;;  %v669_v8 = vld [vmem:[#allocation2 + $0xc9] sm:$0xff] }
 0x1aa   : > { %4287 = vmatprep.mubr.f32.mxu0 %v5752_v2  ;;  %1704 = vst [vmem:[#allocation2 + $0x4a] sm:$0xff] %v5752_v2  ;;  %v825_v51 = vmax.f32 %v761_v18, %v793_v48  ;;  %v699_v57 = vmax.f32 %v635_v56, %v667_v33  ;;  %609 = vst [vmem:[#allocation2 + $0xfa] sm:$0xff] %v5765_v26  ;;  %4671 = vmatprep.subr.bf16.mxu1 %v5604_v60  ;;  %v636_v0 = vld [vmem:[#allocation2 + $0xc0] sm:$0xff]  ;;  %v794_v18 = vld [vmem:[#allocation2 + $0xab] sm:$0xff] }
 0x1ab   : > { %4288 = vmatmul.mubr.f32.gmra.mrb[38].mxu0 %v5758_v1  ;;  %1705 = vst [vmem:[#allocation2 + $0x52] sm:$0xff] %v5758_v1  ;;  %v762_v16 = vmax.f32 %v698_v49, %v5663_v10  ;;  %v1017_v3 = vmax.f32 %v5667_v50, %v5707_v15  ;;  %v668_v52 = vld [vmem:[#allocation2 + $0xc1] sm:$0xff]  ;;  %v1018_v48 = vmax.f32 %v5695_v29, %v5735_v35  ;;  %608 = vst [vmem:[#allocation2 + $0xf2] sm:$0xff] %v5772_v9  ;;  %v795_v10 = vld [vmem:[#allocation2 + $0xb3] sm:$0xff] }
 0x1ac   : > { %4388 = vmatprep.mubr.f32.mxu1 %v5772_v9  ;;  %v5785_v33 = vmax.f32 %v1143_v6, %v5769_v58  ;;  %v5787_v32 = vmax.f32 %v825_v51, %v857_v39  ;;  %v1145_v49 = vmax.f32 %v5762_v4, %v5769_v58  ;;  %v763_v50 = vmax.f32 %v699_v57, %v5651_v54  ;;  %v637_v56 = vld [vmem:[#allocation2 + $0xc8] sm:$0xff]  ;;  %v5798_v51 = vpop.f32.mrb[22].mxu0  ;;  %v1732_v63 = vld [vmem:[#allocation2 + $0x18] sm:$0xff] }
 0x1ad   : > { %4389 = vmatmul.mubr.f32.gmra.mrb[4].mxu1 %v5765_v26  ;;  %v826_v29 = vmax.f32 %v762_v16, %v794_v18  ;;  %v1081_v38 = vmax.f32 %v1017_v3, %v5744_v43  ;;  %v700_v46 = vmax.f32 %v636_v0, %v668_v52  ;;  %v5795_v6 = vmax.f32 %v1018_v48, %v5769_v58  ;;  %v858_v57 = vld [vmem:[#allocation2 + $0xac] sm:$0xff]  ;;  %v5806_v3 = vpop.f32.mrb[23].mxu0  ;;  %v638_v18 = vld [vmem:[#allocation2 + $0xd8] sm:$0xff] }
 0x1ae   : > { %4673 = vmatpush3.bf16.msra.mxu1 %v5604_v60  ;;  %4290 = vmatprep.mubr.f32.mxu0 %v5785_v33  ;;  %1706 = vst [vmem:[#allocation2 + $0x62] sm:$0xff] %v5785_v33  ;;  %v5803_v4 = vmax.f32 %v1144_v53, %v5787_v32  ;;  %v827_v39 = vmax.f32 %v763_v50, %v795_v10  ;;  %611 = vst [vmem:[#allocation2 + $0x112] sm:$0xff] %v5798_v51  ;;  %v859_v60 = vld [vmem:[#allocation2 + $0xb4] sm:$0xff]  ;;  %v796_v50 = vld [vmem:[#allocation2 + $0xc3] sm:$0xff] }
 0x1af   : > { %v701_v16 = vmax.f32 %v637_v56, %v669_v8  ;;  %4675 = vmatprep.subr.bf16.mxu1 %v5612_v17  ;;  %v5809_v0 = vmax.f32 %v826_v29, %v858_v57  ;;  %v1146_v52 = vmax.f32 %v1081_v38, %v5787_v32  ;;  %v764_v48 = vmax.f32 %v700_v46, %v5703_v14  ;;  %v670_v54 = vld [vmem:[#allocation2 + $0xd9] sm:$0xff]  ;;  %v671_v14 = vld [vmem:[#allocation2 + $0xe1] sm:$0xff]  ;;  %v797_v57 = vld [vmem:[#allocation2 + $0xcb] sm:$0xff] }
 0x1b0   : > { %v1019_v53 = vmax.f32 %v5707_v15, %v5744_v43  ;;  %610 = vst [vmem:[#allocation2 + $0x10a] sm:$0xff] %v5806_v3  ;;  %4291 = vmatmul.mubr.f32.gmra.mrb[40].mxu0 %v5803_v4  ;;  %1707 = vst [vmem:[#allocation2 + $0x6a] sm:$0xff] %v5803_v4  ;;  %4391 = vmatprep.mubr.f32.mxu1 %v5806_v3  ;;  %v5819_v10 = vmax.f32 %v827_v39, %v859_v60  ;;  %v639_v46 = vld [vmem:[#allocation2 + $0xe0] sm:$0xff]  ;;  %v5830_v39 = vpop.f32.mrb[24].mxu0  ;;  %v861_v60 = vld [vmem:[#allocation2 + $0xcc] sm:$0xff] }
 0x1b1   : > { %v765_v38 = vmax.f32 %v701_v16, %v5691_v55  ;;  %v702_v56 = vmax.f32 %v638_v18, %v670_v54  ;;  %4392 = vmatmul.mubr.f32.gmra.mrb[6].mxu1 %v5798_v51  ;;  %v5824_v15 = vmax.f32 %v1145_v49, %v5809_v0  ;;  %v828_v8 = vmax.f32 %v764_v48, %v796_v50  ;;  %v860_v55 = vld [vmem:[#allocation2 + $0xc4] sm:$0xff] }
 0x1b2   : > { %v1147_v29 = vmax.f32 %v5795_v6, %v5809_v0  ;;  %v1083_v47 = vmax.f32 %v1019_v53, %v5787_v32  ;;  %4677 = vmatpush3.bf16.msra.mxu1 %v5612_v17  ;;  %v5833_v54 = vmax.f32 %v1146_v52, %v5819_v10  ;;  %v1020_v48 = vmax.f32 %v5735_v35, %v5769_v58  ;;  %v5841_v17 = vpop.f32.mrb[25].mxu0  ;;  %v798_v53 = vld [vmem:[#allocation2 + $0xdb] sm:$0xff]  ;;  %v672_v50 = vld [vmem:[#allocation2 + $0xf1] sm:$0xff] }
 0x1b3   : > { %v829_v16 = vmax.f32 %v765_v38, %v797_v57  ;;  %v766_v49 = vmax.f32 %v702_v56, %v5739_v61  ;;  %613 = vst [vmem:[#allocation2 + $0x12a] sm:$0xff] %v5830_v39  ;;  %4293 = vmatprep.mubr.f32.mxu0 %v5824_v15  ;;  %1708 = vst [vmem:[#allocation2 + $0x7a] sm:$0xff] %v5824_v15  ;;  %4679 = vmatprep.subr.bf16.mxu1 %v5616_v27  ;;  %v640_v61 = vld [vmem:[#allocation2 + $0xf0] sm:$0xff]  ;;  %v673_v44 = vld [vmem:[#allocation2 + $0xf9] sm:$0xff] }
 0x1b4   : > { %v5844_v6 = vmax.f32 %v828_v8, %v860_v55  ;;  %v1148_v52 = vmax.f32 %v1083_v47, %v5819_v10  ;;  %v703_v18 = vmax.f32 %v639_v46, %v671_v14  ;;  %612 = vst [vmem:[#allocation2 + $0x122] sm:$0xff] %v5841_v17  ;;  %4294 = vmatmul.mubr.f32.gmra.mrb[42].mxu0 %v5833_v54  ;;  %1709 = vst [vmem:[#allocation2 + $0x82] sm:$0xff] %v5833_v54  ;;  %v862_v46 = vld [vmem:[#allocation2 + $0xdc] sm:$0xff] }
 0x1b5   : > { %4394 = vmatprep.mubr.f32.mxu1 %v5841_v17  ;;  %v5851_v35 = vmax.f32 %v829_v16, %v861_v60  ;;  %v830_v38 = vmax.f32 %v766_v49, %v798_v53  ;;  %v1084_v56 = vmax.f32 %v1020_v48, %v5809_v0  ;;  %v1021_v8 = vmax.f32 %v5744_v43, %v5787_v32  ;;  %v641_v55 = vld [vmem:[#allocation2 + $0xf8] sm:$0xff]  ;;  %v5862_v16 = vpop.f32.mrb[26].mxu0  ;;  %v799_v48 = vld [vmem:[#allocation2 + $0xe3] sm:$0xff] }
 0x1b6   : > { %4395 = vmatmul.mubr.f32.gmra.mrb[8].mxu1 %v5830_v39  ;;  %v5856_v47 = vmax.f32 %v1147_v29, %v5844_v6  ;;  %v767_v14 = vmax.f32 %v703_v18, %v5731_v62  ;;  %v704_v57 = vmax.f32 %v640_v61, %v672_v50  ;;  %v1022_v62 = vmax.f32 %v5769_v58, %v5809_v0  ;;  %v863_v50 = vld [vmem:[#allocation2 + $0xe4] sm:$0xff] }
 0x1b7   : > { %4681 = vmatpush3.bf16.msra.mxu1 %v5616_v27  ;;  %v5865_v60 = vmax.f32 %v1148_v52, %v5851_v35  ;;  %v5867_v49 = vmax.f32 %v830_v38, %v862_v46  ;;  %v1149_v29 = vmax.f32 %v1084_v56, %v5844_v6  ;;  %615 = vst [vmem:[#allocation2 + $0x142] sm:$0xff] %v5862_v16  ;;  %v5875_v27 = vpop.f32.mrb[27].mxu0  ;;  %v642_v18 = vld [vmem:[#allocation2 + $0x108] sm:$0xff]  ;;  %v800_v38 = vld [vmem:[#allocation2 + $0xf3] sm:$0xff] }
 0x1b8   : > { %4296 = vmatprep.mubr.f32.mxu0 %v5856_v47  ;;  %1710 = vst [vmem:[#allocation2 + $0x92] sm:$0xff] %v5856_v47  ;;  %4683 = vmatprep.subr.bf16.mxu1 %v5619_v34  ;;  %v831_v43 = vmax.f32 %v767_v14, %v799_v48  ;;  %v1085_v52 = vmax.f32 %v1021_v8, %v5819_v10  ;;  %v674_v61 = vld [vmem:[#allocation2 + $0x109] sm:$0xff]  ;;  %614 = vst [vmem:[#allocation2 + $0x13a] sm:$0xff] %v5875_v27  ;;  %v1730_v14 = vld [vmem:[#allocation2] sm:$0xff]  ;;  %v5895_v21 = vpop.f32.mrb[28].mxu0 }
 0x1b9   : > { %v768_v53 = vmax.f32 %v704_v57, %v5772_v9  ;;  %4297 = vmatmul.mubr.f32.gmra.mrb[44].mxu0 %v5865_v60  ;;  %1711 = vst [vmem:[#allocation2 + $0x9a] sm:$0xff] %v5865_v60  ;;  %4397 = vmatprep.mubr.f32.mxu1 %v5875_v27  ;;  %v5885_v58 = vmax.f32 %v1149_v29, %v5867_v49  ;;  %v1764_v29 = vld [vmem:[#allocation2 + $0x19] sm:$0xff]  ;;  %617 = vst [vmem:[#allocation2 + $0x15a] sm:$0xff] %v5895_v21  ;;  %v643_v36 = vld [vmem:[#allocation2 + $0x110] sm:$0xff] }
 0x1ba   : > { %v1086_v56 = vmax.f32 %v1022_v62, %v5844_v6  ;;  %v705_v46 = vmax.f32 %v641_v55, %v673_v44  ;;  %4398 = vmatmul.mubr.f32.gmra.mrb[10].mxu1 %v5862_v16  ;;  %v5889_v9 = vmax.f32 %v831_v43, %v863_v50  ;;  %v1150_v8 = vmax.f32 %v1085_v52, %v5851_v35  ;;  %v864_v44 = vld [vmem:[#allocation2 + $0xf4] sm:$0xff] }
 0x1bb   : > { %7000 = vst [vmem:[#allocation38_spill] sm:$0xff] %v5885_v58  ;;  %v832_v57 = vmax.f32 %v768_v53, %v800_v38  ;;  %v1023_v48 = vmax.f32 %v5787_v32, %v5819_v10  ;;  %4685 = vmatpush3.bf16.msra.mxu1 %v5619_v34  ;;  %4299 = vmatprep.mubr.f32.mxu0 %v5885_v58  ;;  %1712 = vst [vmem:[#allocation2 + $0xaa] sm:$0xff] %v5885_v58  ;;  %v5902_v32 = vpop.f32.mrb[29].mxu0  ;;  %v801_v53 = vld [vmem:[#allocation2 + $0xfb] sm:$0xff]  ;;  %v802_v58 = vld [vmem:[#allocation2 + $0x10b] sm:$0xff] }
 0x1bc   : > { %v1151_v55 = vmax.f32 %v1086_v56, %v5867_v49  ;;  %v769_v62 = vmax.f32 %v705_v46, %v5765_v26  ;;  %v706_v43 = vmax.f32 %v642_v18, %v674_v61  ;;  %v5905_v52 = vmax.f32 %v1150_v8, %v5889_v9  ;;  %4687 = vmatprep.subr.bf16.mxu1 %v5626_v23  ;;  %v1734_v56 = vld [vmem:[#allocation2 + $0x30] sm:$0xff]  ;;  %v644_v22 = vld [vmem:[#allocation2 + $0x120] sm:$0xff] }
 0x1bd   : > { %v5908_v34 = vmax.f32 %v832_v57, %v864_v44  ;;  %v1087_v50 = vmax.f32 %v1023_v48, %v5851_v35  ;;  %v1024_v38 = vmax.f32 %v5809_v0, %v5844_v6  ;;  %v1766_v26 = vld [vmem:[#allocation2 + $0x31] sm:$0xff]  ;;  %616 = vst [vmem:[#allocation2 + $0x152] sm:$0xff] %v5902_v32  ;;  %4400 = vmatprep.mubr.f32.mxu1 %v5902_v32  ;;  %v865_v48 = vld [vmem:[#allocation2 + $0xfc] sm:$0xff] }
 0x1be   : > { %7001 = vst [vmem:[#allocation39_spill] sm:$0xff] %v5905_v52  ;;  %v833_v18 = vmax.f32 %v769_v62, %v801_v53  ;;  %v770_v61 = vmax.f32 %v706_v43, %v5806_v3  ;;  %v1794_v46 = vmax.f32 %v1730_v14, %v1762_v45  ;;  %v1796_v8 = vmax.f32 %v1732_v63, %v1764_v29  ;;  %v675_v57 = vld [vmem:[#allocation2 + $0x111] sm:$0xff]  ;;  %v5925_v45 = vpop.f32.mrb[30].mxu0  ;;  %v1890_v43 = vld [vmem:[#allocation2 + $0x3] sm:$0xff]  ;;  %v1892_v53 = vld [vmem:[#allocation2 + $0x1b] sm:$0xff] }
 0x1bf   : > { %4300 = vmatmul.mubr.f32.gmra.mrb[46].mxu0 %v5905_v52  ;;  %1713 = vst [vmem:[#allocation2 + $0xb2] sm:$0xff] %v5905_v52  ;;  %4401 = vmatmul.mubr.f32.gmra.mrb[12].mxu1 %v5895_v21  ;;  %v5920_v0 = vmax.f32 %v1151_v55, %v5908_v34  ;;  %v1152_v44 = vmax.f32 %v1087_v50, %v5889_v9  ;;  %619 = vst [vmem:[#allocation2 + $0x172] sm:$0xff] %v5925_v45  ;;  %v5933_v55 = vpop.f32.mrb[31].mxu0  ;;  %v1763_v52 = vld [vmem:[#allocation2 + $0x9] sm:$0xff] }
 0x1c0   : > { %v1088_v62 = vmax.f32 %v1024_v38, %v5867_v49  ;;  %4689 = vmatpush3.bf16.msra.mxu1 %v5626_v23  ;;  %v5927_v63 = vmax.f32 %v833_v18, %v865_v48  ;;  %v834_v3 = vmax.f32 %v770_v61, %v802_v58  ;;  %v1798_v14 = vmax.f32 %v1734_v56, %v1766_v26  ;;  %v866_v23 = vld [vmem:[#allocation2 + $0x10c] sm:$0xff]  ;;  %v1954_v56 = vld [vmem:[#allocation2 + $0x4] sm:$0xff] }
 0x1c1   : > { %7002 = vst [vmem:[#allocation40_spill] sm:$0xff] %v5920_v0  ;;  %v1858_v29 = vmax.f32 %v1794_v46, %v5642_v42  ;;  %4302 = vmatprep.mubr.f32.mxu0 %v5920_v0  ;;  %1714 = vst [vmem:[#allocation2 + $0xc2] sm:$0xff] %v5920_v0  ;;  %4691 = vmatprep.subr.bf16.mxu1 %v5628_v24  ;;  %v1860_v58 = vmax.f32 %v1796_v8, %v5677_v28  ;;  %v1894_v38 = vld [vmem:[#allocation2 + $0x33] sm:$0xff]  ;;  %v1731_v26 = vld [vmem:[#allocation2 + $0x8] sm:$0xff] }
 0x1c2   : > { %v1153_v50 = vmax.f32 %v1088_v62, %v5908_v34  ;;  %v707_v42 = vmax.f32 %v643_v36, %v675_v57  ;;  %v1733_v18 = vld [vmem:[#allocation2 + $0x20] sm:$0xff]  ;;  %618 = vst [vmem:[#allocation2 + $0x16a] sm:$0xff] %v5933_v55  ;;  %v5940_v61 = vmax.f32 %v1152_v44, %v5927_v63  ;;  %4403 = vmatprep.mubr.f32.mxu1 %v5933_v55  ;;  %v1735_v62 = vld [vmem:[#allocation2 + $0x38] sm:$0xff] }
 0x1c3   : > { %v5943_v46 = vmax.f32 %v834_v3, %v866_v23  ;;  %v1862_v48 = vmax.f32 %v1798_v14, %v5718_v5  ;;  %v1922_v0 = vmax.f32 %v1858_v29, %v1890_v43  ;;  %v1765_v28 = vld [vmem:[#allocation2 + $0x21] sm:$0xff]  ;;  %4404 = vmatmul.mubr.f32.gmra.mrb[14].mxu1 %v5925_v45  ;;  %v1924_v36 = vmax.f32 %v1860_v58, %v1892_v53  ;;  %v1767_v44 = vld [vmem:[#allocation2 + $0x39] sm:$0xff] }
 0x1c4   : > { %v771_v8 = vmax.f32 %v707_v42, %v5798_v51  ;;  %v1025_v57 = vmax.f32 %v5819_v10, %v5851_v35  ;;  %v676_v3 = vld [vmem:[#allocation2 + $0x121] sm:$0xff]  ;;  %4303 = vmatmul.mubr.f32.gmra.mrb[48].mxu0 %v5940_v61  ;;  %1715 = vst [vmem:[#allocation2 + $0xca] sm:$0xff] %v5940_v61  ;;  %4693 = vmatpush3.bf16.msra.mxu1 %v5628_v24  ;;  %v803_v43 = vld [vmem:[#allocation2 + $0x113] sm:$0xff] }
 0x1c5   : > { %v5955_v5 = vmax.f32 %v1153_v50, %v5943_v46  ;;  %v1926_v14 = vmax.f32 %v1862_v48, %v1894_v38  ;;  %v1956_v29 = vld [vmem:[#allocation2 + $0x1c] sm:$0xff]  ;;  %v1986_v51 = vmax.f32 %v1922_v0, %v1954_v56  ;;  %v1958_v53 = vld [vmem:[#allocation2 + $0x34] sm:$0xff]  ;;  %4695 = vmatprep.subr.bf16.mxu1 %v5636_v20  ;;  %v1795_v58 = vmax.f32 %v1731_v26, %v1763_v52  ;;  %v1736_v56 = vld [vmem:[#allocation2 + $0x48] sm:$0xff] }
 0x1c6   : > { %v5957_v10 = vmax.f32 %v1924_v36, %v1956_v29  ;;  %v835_v7 = vmax.f32 %v771_v8, %v803_v43  ;;  %v1089_v23 = vmax.f32 %v1025_v57, %v5889_v9  ;;  %v867_v50 = vld [vmem:[#allocation2 + $0x114] sm:$0xff]  ;;  %v1797_v38 = vmax.f32 %v1733_v18, %v1765_v28  ;;  %v1768_v48 = vld [vmem:[#allocation2 + $0x49] sm:$0xff]  ;;  %4639 = vmatprep.subr.bf16.mxu0 %v5535_v13 }
 0x1c7   : > { %4305 = vmatprep.mubr.f32.mxu0 %v5955_v5  ;;  %1716 = vst [vmem:[#allocation2 + $0xda] sm:$0xff] %v5955_v5  ;;  %v5963_v24 = vmax.f32 %v1926_v14, %v1958_v53  ;;  %v1799_v42 = vmax.f32 %v1735_v62, %v1767_v44  ;;  %v708_v0 = vmax.f32 %v644_v22, %v676_v3  ;;  %v1891_v26 = vld [vmem:[#allocation2 + $0xb] sm:$0xff]  ;;  %v1893_v29 = vld [vmem:[#allocation2 + $0x23] sm:$0xff]  ;;  %v1895_v62 = vld [vmem:[#allocation2 + $0x3b] sm:$0xff] }
 0x1c8   : > { %v2118_v36 = vmax.f32 %v1986_v51, %v5957_v10  ;;  %v5966_v8 = vmax.f32 %v835_v7, %v867_v50  ;;  %v1154_v57 = vmax.f32 %v1089_v23, %v5927_v63  ;;  %v1859_v52 = vmax.f32 %v1795_v58, %v5647_v30  ;;  %v645_v44 = vld [vmem:[#allocation2 + $0x128] sm:$0xff]  ;;  %4641 = vmatpush3.bf16.msra.mxu0 %v5535_v13  ;;  %v1959_v58 = vld [vmem:[#allocation2 + $0x3c] sm:$0xff]  ;;  %v1769_v13 = vld [vmem:[#allocation2 + $0x51] sm:$0xff] }
 0x1c9   : > { %v1861_v14 = vmax.f32 %v1797_v38, %v5685_v59  ;;  %v1863_v18 = vmax.f32 %v1799_v42, %v5725_v12  ;;  %v772_v22 = vmax.f32 %v708_v0, %v5841_v17  ;;  %v1026_v28 = vmax.f32 %v5844_v6, %v5867_v49  ;;  %v677_v3 = vld [vmem:[#allocation2 + $0x129] sm:$0xff]  ;;  %4643 = vmatprep.subr.bf16.mxu0 %v5539_v19 }
 0x1ca   : > { %v2182_v30 = vmax.f32 %v2118_v36, %v5963_v24  ;;  %v5979_v51 = vmax.f32 %v1154_v57, %v5966_v8  ;;  %v1923_v43 = vmax.f32 %v1859_v52, %v1891_v26  ;;  %v1955_v53 = vld [vmem:[#allocation2 + $0xc] sm:$0xff]  ;;  %v1957_v59 = vld [vmem:[#allocation2 + $0x24] sm:$0xff]  ;;  %v1800_v12 = vmax.f32 %v1736_v56, %v1768_v48  ;;  %v646_v36 = vld [vmem:[#allocation2 + $0x138] sm:$0xff] }
 0x1cb   : > { %v804_v7 = vld [vmem:[#allocation2 + $0x123] sm:$0xff]  ;;  %v1925_v17 = vmax.f32 %v1861_v14, %v1893_v29  ;;  %v1927_v23 = vmax.f32 %v1863_v18, %v1895_v62  ;;  %v1090_v50 = vmax.f32 %v1026_v28, %v5908_v34  ;;  %v1737_v38 = vld [vmem:[#allocation2 + $0x50] sm:$0xff]  ;;  %v709_v48 = vmax.f32 %v645_v44, %v677_v3  ;;  %v678_v57 = vld [vmem:[#allocation2 + $0x139] sm:$0xff] }
 0x1cc   : > { %v836_v6 = vmax.f32 %v772_v22, %v804_v7  ;;  %4438 = vmatprep.mubr.f32.mxu1 %v2182_v30  ;;  %4306 = vmatmul.mubr.f32.gmra.mrb[50].mxu0 %v5979_v51  ;;  %1717 = vst [vmem:[#allocation2 + $0xe2] sm:$0xff] %v5979_v51  ;;  %v1987_v42 = vmax.f32 %v1923_v43, %v1955_v53  ;;  %2611 = vst [vmem:[#allocation2 + $0x2] sm:$0xff] %v2182_v30  ;;  %v868_v0 = vld [vmem:[#allocation2 + $0x124] sm:$0xff] }
 0x1cd   : > { %v1864_v56 = vmax.f32 %v1800_v12, %v5752_v2  ;;  %v5986_v52 = vmax.f32 %v1925_v17, %v1957_v59  ;;  %v5988_v26 = vmax.f32 %v1927_v23, %v1959_v58  ;;  %v1155_v14 = vmax.f32 %v1090_v50, %v5943_v46  ;;  %v1896_v18 = vld [vmem:[#allocation2 + $0x4b] sm:$0xff]  ;;  %4645 = vmatpush3.bf16.msra.mxu0 %v5539_v19  ;;  %v1738_v44 = vld [vmem:[#allocation2 + $0x60] sm:$0xff] }
 0x1ce   : > { %v5990_v29 = vmax.f32 %v836_v6, %v868_v0  ;;  %v773_v22 = vmax.f32 %v709_v48, %v5830_v39  ;;  %v1027_v2 = vmax.f32 %v5851_v35, %v5889_v9  ;;  %v1801_v28 = vmax.f32 %v1737_v38, %v1769_v13  ;;  %v1770_v3 = vld [vmem:[#allocation2 + $0x61] sm:$0xff]  ;;  %4647 = vmatprep.subr.bf16.mxu0 %v5543_v25  ;;  %v1960_v59 = vld [vmem:[#allocation2 + $0x4c] sm:$0xff] }
 0x1cf   : > { %v1928_v62 = vmax.f32 %v1864_v56, %v1896_v18  ;;  %v2119_v43 = vmax.f32 %v1987_v42, %v5986_v52  ;;  %v805_v7 = vld [vmem:[#allocation2 + $0x12b] sm:$0xff]  ;;  %v710_v12 = vmax.f32 %v646_v36, %v678_v57  ;;  %v1028_v19 = vmax.f32 %v5867_v49, %v5908_v34  ;;  %v647_v58 = vld [vmem:[#allocation2 + $0x140] sm:$0xff]  ;;  %v1897_v13 = vld [vmem:[#allocation2 + $0x53] sm:$0xff] }
 0x1d0   : > { %v6000_v53 = vmax.f32 %v1155_v14, %v5990_v29  ;;  %v837_v17 = vmax.f32 %v773_v22, %v805_v7  ;;  %v1091_v35 = vmax.f32 %v1027_v2, %v5927_v63  ;;  %v1865_v23 = vmax.f32 %v1801_v28, %v5758_v1  ;;  %v679_v6 = vld [vmem:[#allocation2 + $0x141] sm:$0xff]  ;;  %v869_v38 = vld [vmem:[#allocation2 + $0x12c] sm:$0xff] }
 0x1d1   : > { %v6004_v39 = vmax.f32 %v1928_v62, %v1960_v59  ;;  %v2183_v50 = vmax.f32 %v2119_v43, %v5988_v26  ;;  %v774_v42 = vmax.f32 %v710_v12, %v5875_v27  ;;  %v1092_v49 = vmax.f32 %v1028_v19, %v5943_v46  ;;  %v806_v57 = vld [vmem:[#allocation2 + $0x13b] sm:$0xff]  ;;  %v1739_v14 = vld [vmem:[#allocation2 + $0x68] sm:$0xff]  ;;  %4649 = vmatpush3.bf16.msra.mxu0 %v5543_v25 }
 0x1d2   : > { %4308 = vmatprep.mubr.f32.mxu0 %v6000_v53  ;;  %1718 = vst [vmem:[#allocation2 + $0xf2] sm:$0xff] %v6000_v53  ;;  %v1802_v0 = vmax.f32 %v1738_v44, %v1770_v3  ;;  %v6014_v48 = vmax.f32 %v837_v17, %v869_v38  ;;  %v1156_v1 = vmax.f32 %v1091_v35, %v5966_v8  ;;  %v1771_v18 = vld [vmem:[#allocation2 + $0x69] sm:$0xff]  ;;  %v1961_v62 = vld [vmem:[#allocation2 + $0x54] sm:$0xff]  ;;  %v870_v25 = vld [vmem:[#allocation2 + $0x13c] sm:$0xff] }
 0x1d3   : > { %v2246_v56 = vmax.f32 %v2182_v30, %v6004_v39  ;;  %v1929_v36 = vmax.f32 %v1865_v23, %v1897_v13  ;;  %4439 = vmatmul.mubr.f32.vlgmr.msra.gmra.mrb[16].mxu1 %v2183_v50  ;;  %2612 = vst [vmem:[#allocation2 + $0xa] sm:$0xff] %v2183_v50  ;;  %v838_v22 = vmax.f32 %v774_v42, %v806_v57  ;;  %v648_v30 = vld [vmem:[#allocation2 + $0x150] sm:$0xff]  ;;  %v1898_v59 = vld [vmem:[#allocation2 + $0x63] sm:$0xff]  ;;  %v1740_v17 = vld [vmem:[#allocation2 + $0x78] sm:$0xff] }
 0x1d4   : > { %v1157_v27 = vmax.f32 %v1092_v49, %v5990_v29  ;;  %v1866_v2 = vmax.f32 %v1802_v0, %v5785_v33  ;;  %v711_v28 = vmax.f32 %v647_v58, %v679_v6  ;;  %v680_v44 = vld [vmem:[#allocation2 + $0x151] sm:$0xff]  ;;  %4697 = vmatpush3.bf16.msra.mxu1 %v5636_v20  ;;  %v6022_v3 = vmax.f32 %v1156_v1, %v6014_v48  ;;  %v1772_v35 = vld [vmem:[#allocation2 + $0x79] sm:$0xff]  ;;  %v1962_v58 = vld [vmem:[#allocation2 + $0x64] sm:$0xff] }
 0x1d5   : > { %4441 = vmatprep.mubr.f32.mxu1 %v2246_v56  ;;  %2613 = vst [vmem:[#allocation2 + $0x1a] sm:$0xff] %v2246_v56  ;;  %v6024_v43 = vmax.f32 %v1929_v36, %v1961_v62  ;;  %v1029_v7 = vmax.f32 %v5889_v9, %v5927_v63  ;;  %v6028_v12 = vmax.f32 %v838_v22, %v870_v25  ;;  %v807_v6 = vld [vmem:[#allocation2 + $0x143] sm:$0xff]  ;;  %v1899_v36 = vld [vmem:[#allocation2 + $0x6b] sm:$0xff]  ;;  %v681_v62 = vld [vmem:[#allocation2 + $0x159] sm:$0xff] }
 0x1d6   : > { %v1930_v33 = vmax.f32 %v1866_v2, %v1898_v59  ;;  %v775_v19 = vmax.f32 %v711_v28, %v5862_v16  ;;  %4699 = vmatprep.subr.bf16.mxu1 %v5638_v41  ;;  %v1803_v20 = vmax.f32 %v1739_v14, %v1771_v18  ;;  %4309 = vmatmul.mubr.f32.gmra.mrb[52].mxu0 %v6022_v3  ;;  %v871_v0 = vld [vmem:[#allocation2 + $0x144] sm:$0xff]  ;;  %v649_v18 = vld [vmem:[#allocation2 + $0x158] sm:$0xff] }
 0x1d7   : > { %1719 = vst [vmem:[#allocation2 + $0xfa] sm:$0xff] %v6022_v3  ;;  %v2247_v23 = vmax.f32 %v2183_v50, %v6024_v43  ;;  %v1093_v9 = vmax.f32 %v1029_v7, %v5966_v8  ;;  %v712_v38 = vmax.f32 %v648_v30, %v680_v44  ;;  %v1030_v13 = vmax.f32 %v5908_v34, %v5943_v46  ;;  %v808_v2 = vld [vmem:[#allocation2 + $0x153] sm:$0xff]  ;;  %v1741_v28 = vld [vmem:[#allocation2 + $0x80] sm:$0xff] }
 0x1d8   : > { %v6039_v16 = vmax.f32 %v1157_v27, %v6028_v12  ;;  %v6041_v42 = vmax.f32 %v1930_v33, %v1962_v58  ;;  %v839_v49 = vmax.f32 %v775_v19, %v807_v6  ;;  %v1867_v1 = vmax.f32 %v1803_v20, %v5803_v4  ;;  %4651 = vmatprep.subr.bf16.mxu0 %v5547_v31  ;;  %v1773_v30 = vld [vmem:[#allocation2 + $0x81] sm:$0xff]  ;;  %v872_v33 = vld [vmem:[#allocation2 + $0x154] sm:$0xff]  ;;  %v682_v6 = vld [vmem:[#allocation2 + $0x169] sm:$0xff] }
 0x1d9   : > { %4442 = vmatmul.mubr.f32.gmra.mrb[18].mxu1 %v2247_v23  ;;  %2614 = vst [vmem:[#allocation2 + $0x22] sm:$0xff] %v2247_v23  ;;  %v1158_v50 = vmax.f32 %v1093_v9, %v6014_v48  ;;  %v776_v57 = vmax.f32 %v712_v38, %v5902_v32  ;;  %v1094_v34 = vmax.f32 %v1030_v13, %v5990_v29  ;;  %v1963_v32 = vld [vmem:[#allocation2 + $0x6c] sm:$0xff]  ;;  %v1900_v19 = vld [vmem:[#allocation2 + $0x7b] sm:$0xff] }
 0x1da   : > { %v1804_v14 = vmax.f32 %v1740_v17, %v1772_v35  ;;  %4311 = vmatprep.mubr.f32.mxu0 %v6039_v16  ;;  %1720 = vst [vmem:[#allocation2 + $0x10a] sm:$0xff] %v6039_v16  ;;  %v2310_v4 = vmax.f32 %v2246_v56, %v6041_v42  ;;  %v6051_v22 = vmax.f32 %v839_v49, %v871_v0  ;;  %v1964_v38 = vld [vmem:[#allocation2 + $0x7c] sm:$0xff]  ;;  %v1742_v0 = vld [vmem:[#allocation2 + $0x90] sm:$0xff] }
 0x1db   : > { %v1931_v27 = vmax.f32 %v1867_v1, %v1899_v36  ;;  %4701 = vmatpush3.bf16.msra.mxu1 %v5638_v41  ;;  %v840_v44 = vmax.f32 %v776_v57, %v808_v2  ;;  %v1159_v25 = vmax.f32 %v1094_v34, %v6028_v12  ;;  %v2120_v7 = vmax.f32 %v5957_v10, %v5963_v24  ;;  %v1774_v1 = vld [vmem:[#allocation2 + $0x91] sm:$0xff]  ;;  %v809_v34 = vld [vmem:[#allocation2 + $0x15b] sm:$0xff] }
 0x1dc   : > { %v1868_v59 = vmax.f32 %v1804_v14, %v5824_v15  ;;  %4653 = vmatpush3.bf16.msra.mxu0 %v5547_v31  ;;  %4444 = vmatprep.mubr.f32.mxu1 %v2310_v4  ;;  %2615 = vst [vmem:[#allocation2 + $0x32] sm:$0xff] %v2310_v4  ;;  %v6060_v56 = vmax.f32 %v1158_v50, %v6051_v22  ;;  %v650_v31 = vld [vmem:[#allocation2 + $0x168] sm:$0xff]  ;;  %v651_v4 = vld [vmem:[#allocation2 + $0x170] sm:$0xff] }
 0x1dd   : > { %v6062_v41 = vmax.f32 %v1931_v27, %v1963_v32  ;;  %v713_v20 = vmax.f32 %v649_v18, %v681_v62  ;;  %v1031_v17 = vmax.f32 %v5927_v63, %v5966_v8  ;;  %v6066_v35 = vmax.f32 %v840_v44, %v872_v33  ;;  %4703 = vmatprep.subr.bf16.mxu1 %v5658_v11  ;;  %v683_v27 = vld [vmem:[#allocation2 + $0x171] sm:$0xff]  ;;  %v1965_v44 = vld [vmem:[#allocation2 + $0x84] sm:$0xff] }
 0x1de   : > { %v1932_v15 = vmax.f32 %v1868_v59, %v1900_v19  ;;  %v2184_v10 = vmax.f32 %v2120_v7, %v6004_v39  ;;  %v1805_v58 = vmax.f32 %v1741_v28, %v1773_v30  ;;  %4312 = vmatmul.mubr.f32.gmra.mrb[54].mxu0 %v6060_v56  ;;  %1721 = vst [vmem:[#allocation2 + $0x112] sm:$0xff] %v6060_v56  ;;  %v810_v19 = vld [vmem:[#allocation2 + $0x16b] sm:$0xff] }
 0x1df   : > { %v2311_v9 = vmax.f32 %v2247_v23, %v6062_v41  ;;  %v777_v13 = vmax.f32 %v713_v20, %v5895_v21  ;;  %v1095_v63 = vmax.f32 %v1031_v17, %v6014_v48  ;;  %v2121_v49 = vmax.f32 %v5986_v52, %v5988_v26  ;;  %4705 = vmatpush3.bf16.msra.mxu1 %v5658_v11  ;;  %v1901_v52 = vld [vmem:[#allocation2 + $0x83] sm:$0xff] }
 0x1e0   : > { %v6078_v50 = vmax.f32 %v1159_v25, %v6066_v35  ;;  %v6080_v36 = vmax.f32 %v1932_v15, %v1964_v38  ;;  %v2248_v57 = vmax.f32 %v2184_v10, %v6041_v42  ;;  %v1869_v23 = vmax.f32 %v1805_v58, %v5833_v54  ;;  %v873_v54 = vld [vmem:[#allocation2 + $0x15c] sm:$0xff]  ;;  %4655 = vmatprep.subr.bf16.mxu0 %v5551_v37  ;;  %v874_v38 = vld [vmem:[#allocation2 + $0x16c] sm:$0xff] }
 0x1e1   : > { %4445 = vmatmul.mubr.f32.gmra.mrb[20].mxu1 %v2311_v9  ;;  %2616 = vst [vmem:[#allocation2 + $0x3a] sm:$0xff] %v2311_v9  ;;  %v841_v21 = vmax.f32 %v777_v13, %v809_v34  ;;  %v1160_v14 = vmax.f32 %v1095_v63, %v6051_v22  ;;  %v2185_v18 = vmax.f32 %v2121_v49, %v6024_v43  ;;  %v1744_v49 = vld [vmem:[#allocation2 + $0xa8] sm:$0xff] }
 0x1e2   : > { %v714_v62 = vmax.f32 %v650_v31, %v682_v6  ;;  %4314 = vmatprep.mubr.f32.mxu0 %v6078_v50  ;;  %1722 = vst [vmem:[#allocation2 + $0x122] sm:$0xff] %v6078_v50  ;;  %v2312_v2 = vmax.f32 %v2248_v57, %v6080_v36  ;;  %v1933_v28 = vmax.f32 %v1869_v23, %v1901_v52  ;;  %v1743_v31 = vld [vmem:[#allocation2 + $0x98] sm:$0xff] }
 0x1e3   : > { %v1032_v11 = vmax.f32 %v5943_v46, %v5990_v29  ;;  %v1806_v30 = vmax.f32 %v1742_v0, %v1774_v1  ;;  %v6092_v32 = vmax.f32 %v841_v21, %v873_v54  ;;  %v2249_v25 = vmax.f32 %v2185_v18, %v6062_v41  ;;  %v1775_v6 = vld [vmem:[#allocation2 + $0x99] sm:$0xff]  ;;  %4657 = vmatpush3.bf16.msra.mxu0 %v5551_v37  ;;  %v1776_v0 = vld [vmem:[#allocation2 + $0xa9] sm:$0xff] }
 0x1e4   : > { %v778_v59 = vmax.f32 %v714_v62, %v5933_v55  ;;  %v2122_v7 = vmax.f32 %v5963_v24, %v6004_v39  ;;  %4447 = vmatprep.mubr.f32.mxu1 %v2312_v2  ;;  %2617 = vst [vmem:[#allocation2 + $0x4a] sm:$0xff] %v2312_v2  ;;  %v6099_v33 = vmax.f32 %v1933_v28, %v1965_v44  ;;  %v1902_v55 = vld [vmem:[#allocation2 + $0x93] sm:$0xff] }
 0x1e5   : > { %v1096_v46 = vmax.f32 %v1032_v11, %v6028_v12  ;;  %v1870_v20 = vmax.f32 %v1806_v30, %v5856_v47  ;;  %v715_v17 = vmax.f32 %v651_v4, %v683_v27  ;;  %v6104_v15 = vmax.f32 %v1160_v14, %v6092_v32  ;;  %4659 = vmatprep.subr.bf16.mxu0 %v5556_v40  ;;  %v1966_v1 = vld [vmem:[#allocation2 + $0x94] sm:$0xff] }
 0x1e6   : > { %v842_v10 = vmax.f32 %v778_v59, %v810_v19  ;;  %v2186_v58 = vmax.f32 %v2122_v7, %v6041_v42  ;;  %v1033_v24 = vmax.f32 %v5966_v8, %v6014_v48  ;;  %v6111_v9 = vmax.f32 %v2249_v25, %v6099_v33  ;;  %v811_v57 = vld [vmem:[#allocation2 + $0x173] sm:$0xff]  ;;  %v7004_v59 = vld [vmem:[#allocation38_spill] sm:$0xff] }
 0x1e7   : > { %v1161_v47 = vmax.f32 %v1096_v46, %v6066_v35  ;;  %v1934_v13 = vmax.f32 %v1870_v20, %v1902_v55  ;;  %v779_v63 = vmax.f32 %v715_v17, %v5925_v45  ;;  %4315 = vmatmul.mubr.f32.gmra.mrb[56].mxu0 %v6104_v15  ;;  %1723 = vst [vmem:[#allocation2 + $0x12a] sm:$0xff] %v6104_v15  ;;  %v875_v62 = vld [vmem:[#allocation2 + $0x174] sm:$0xff]  ;;  %v1746_v46 = vld [vmem:[#allocation2 + $0xc0] sm:$0xff] }
 0x1e8   : > { %v906_v8 = vmax.f32 %v842_v10, %v874_v38  ;;  %v2250_v37 = vmax.f32 %v2186_v58, %v6080_v36  ;;  %v1097_v34 = vmax.f32 %v1033_v24, %v6051_v22  ;;  %v1034_v23 = vmax.f32 %v5990_v29, %v6028_v12  ;;  %4448 = vmatmul.mubr.f32.gmra.mrb[22].mxu1 %v6111_v9  ;;  %v1777_v30 = vld [vmem:[#allocation2 + $0xb1] sm:$0xff]  ;;  %v7003_v44 = vld [vmem:[#allocation32_spill] sm:$0xff] }
 0x1e9   : > { %2618 = vst [vmem:[#allocation2 + $0x52] sm:$0xff] %v6111_v9  ;;  %v6124_v45 = vmax.f32 %v1934_v13, %v1966_v1  ;;  %v843_v21 = vmax.f32 %v779_v63, %v811_v57  ;;  %v1807_v14 = vmax.f32 %v1743_v31, %v1775_v6  ;;  %v2123_v52 = vmax.f32 %v5988_v26, %v6024_v43  ;;  %v1745_v26 = vld [vmem:[#allocation2 + $0xb0] sm:$0xff]  ;;  %v1778_v20 = vld [vmem:[#allocation2 + $0xc1] sm:$0xff] }
 0x1ea   : > { %v6128_v18 = vmax.f32 %v1161_v47, %v906_v8  ;;  %v1162_v4 = vmax.f32 %v1097_v34, %v6092_v32  ;;  %v1098_v27 = vmax.f32 %v1034_v23, %v6066_v35  ;;  %v1808_v2 = vmax.f32 %v1744_v49, %v1776_v0  ;;  %4661 = vmatpush3.bf16.msra.mxu0 %v5556_v40  ;;  %v1903_v40 = vld [vmem:[#allocation2 + $0x9b] sm:$0xff]  ;;  %v1904_v58 = vld [vmem:[#allocation2 + $0xab] sm:$0xff] }
 0x1eb   : > { %v6134_v29 = vmax.f32 %v2250_v37, %v6124_v45  ;;  %v6136_v54 = vmax.f32 %v843_v21, %v875_v62  ;;  %v1871_v28 = vmax.f32 %v1807_v14, %v5865_v60  ;;  %v2187_v11 = vmax.f32 %v2123_v52, %v6062_v41  ;;  %4707 = vmatprep.subr.bf16.mxu1 %v7003_v44  ;;  %v1968_v13 = vld [vmem:[#allocation2 + $0xac] sm:$0xff]  ;;  %v7006_v14 = vld [vmem:[#allocation40_spill] sm:$0xff] }
 0x1ec   : > { %4317 = vmatprep.mubr.f32.mxu0 %v6128_v18  ;;  %1724 = vst [vmem:[#allocation2 + $0x13a] sm:$0xff] %v6128_v18  ;;  %v6143_v25 = vmax.f32 %v1098_v27, %v906_v8  ;;  %v1872_v7 = vmax.f32 %v1808_v2, %v7004_v59  ;;  %v2124_v19 = vmax.f32 %v6004_v39, %v6041_v42  ;;  %v1967_v39 = vld [vmem:[#allocation2 + $0x9c] sm:$0xff]  ;;  %v1747_v49 = vld [vmem:[#allocation2 + $0xc8] sm:$0xff]  ;;  %v7005_v34 = vld [vmem:[#allocation39_spill] sm:$0xff] }
 0x1ed   : > { %v1035_v60 = vmax.f32 %v6014_v48, %v6051_v22  ;;  %4450 = vmatprep.mubr.f32.mxu1 %v6134_v29  ;;  %2619 = vst [vmem:[#allocation2 + $0x62] sm:$0xff] %v6134_v29  ;;  %v6153_v17 = vmax.f32 %v1162_v4, %v6136_v54  ;;  %v1935_v10 = vmax.f32 %v1871_v28, %v1903_v40  ;;  %v1779_v0 = vld [vmem:[#allocation2 + $0xc9] sm:$0xff] }
 0x1ee   : > { %v2251_v55 = vmax.f32 %v2187_v11, %v6099_v33  ;;  %v1036_v24 = vmax.f32 %v6028_v12, %v6066_v35  ;;  %1726 = vst [vmem:[#allocation2 + $0x152] sm:$0xff] %v6143_v25  ;;  %v1936_v48 = vmax.f32 %v1872_v7, %v1904_v58  ;;  %v2188_v31 = vmax.f32 %v2124_v19, %v6080_v36  ;;  %v7007_v4 = vld [vmem:[#allocation34_spill] sm:$0xff]  ;;  %v1749_v19 = vld [vmem:[#allocation2 + $0xe0] sm:$0xff] }
 0x1ef   : > { %v1099_v6 = vmax.f32 %v1035_v60, %v6092_v32  ;;  %v1809_v38 = vmax.f32 %v1745_v26, %v1777_v30  ;;  %4709 = vmatpush3.bf16.msra.mxu1 %v7003_v44  ;;  %4318 = vmatmul.mubr.f32.gmra.mrb[58].mxu0 %v6153_v17  ;;  %1725 = vst [vmem:[#allocation2 + $0x142] sm:$0xff] %v6153_v17  ;;  %v1906_v28 = vld [vmem:[#allocation2 + $0xc3] sm:$0xff]  ;;  %v1748_v30 = vld [vmem:[#allocation2 + $0xd8] sm:$0xff]  ;;  %v1907_v58 = vld [vmem:[#allocation2 + $0xcb] sm:$0xff] }
 0x1f0   : > { %v6164_v47 = vmax.f32 %v1935_v10, %v1967_v39  ;;  %v6166_v63 = vmax.f32 %v1036_v24, %v906_v8  ;;  %v2125_v12 = vmax.f32 %v6024_v43, %v6062_v41  ;;  %v1810_v35 = vmax.f32 %v1746_v46, %v1778_v20  ;;  %4320 = vmatprep.mubr.f32.mxu0 %v6143_v25  ;;  %v1905_v43 = vld [vmem:[#allocation2 + $0xb3] sm:$0xff]  ;;  %v1781_v60 = vld [vmem:[#allocation2 + $0xe1] sm:$0xff] }
 0x1f1   : > { %v6171_v1 = vmax.f32 %v1936_v48, %v1968_v13  ;;  %v2252_v37 = vmax.f32 %v2188_v31, %v6124_v45  ;;  %v6175_v57 = vmax.f32 %v1099_v6, %v6136_v54  ;;  %v1873_v23 = vmax.f32 %v1809_v38, %v7005_v34  ;;  %4711 = vmatprep.subr.bf16.mxu1 %v7007_v4  ;;  %v1780_v44 = vld [vmem:[#allocation2 + $0xd9] sm:$0xff]  ;;  %v1750_v38 = vld [vmem:[#allocation2 + $0xf0] sm:$0xff] }
 0x1f2   : > { %v6179_v8 = vmax.f32 %v2251_v55, %v6164_v47  ;;  %1728 = vst [vmem:[#allocation2 + $0x16a] sm:$0xff] %v6166_v63  ;;  %v2189_v21 = vmax.f32 %v2125_v12, %v6099_v33  ;;  %v1874_v52 = vmax.f32 %v1810_v35, %v7006_v14  ;;  %v2126_v62 = vmax.f32 %v6041_v42, %v6080_v36  ;;  %v1969_v42 = vld [vmem:[#allocation2 + $0xb4] sm:$0xff]  ;;  %v7009_v34 = vld [vmem:[#allocation18_spill] sm:$0xff] }
 0x1f3   : > { %v6188_v27 = vmax.f32 %v2252_v37, %v6171_v1  ;;  %1727 = vst [vmem:[#allocation2 + $0x15a] sm:$0xff] %v6175_v57  ;;  %v1937_v2 = vmax.f32 %v1873_v23, %v1905_v43  ;;  %v1037_v11 = vmax.f32 %v6051_v22, %v6092_v32  ;;  %v1811_v26 = vmax.f32 %v1747_v49, %v1779_v0  ;;  %v1970_v32 = vld [vmem:[#allocation2 + $0xc4] sm:$0xff]  ;;  %v7008_v48 = vld [vmem:[#allocation35_spill] sm:$0xff]  ;;  %v1908_v43 = vld [vmem:[#allocation2 + $0xdb] sm:$0xff] }
 0x1f4   : > { %4713 = vmatpush3.bf16.msra.mxu1 %v7007_v4  ;;  %2620 = vst [vmem:[#allocation2 + $0x6a] sm:$0xff] %v6179_v8  ;;  %4321 = vmatmul.mubr.f32.gmra.mrb[60].mxu0 %v6175_v57  ;;  %v2253_v40 = vmax.f32 %v2189_v21, %v6164_v47  ;;  %v1938_v59 = vmax.f32 %v1874_v52, %v1906_v28  ;;  %v1782_v13 = vld [vmem:[#allocation2 + $0xf1] sm:$0xff]  ;;  %v1909_v52 = vld [vmem:[#allocation2 + $0xe3] sm:$0xff] }
 0x1f5   : > { %4451 = vmatmul.mubr.f32.gmra.mrb[24].mxu1 %v6179_v8  ;;  %v2190_v7 = vmax.f32 %v2126_v62, %v6124_v45  ;;  %2621 = vst [vmem:[#allocation2 + $0x7a] sm:$0xff] %v6188_v27  ;;  %4323 = vmatprep.mubr.f32.mxu0 %v6166_v63  ;;  %v6202_v22 = vmax.f32 %v1937_v2, %v1969_v42  ;;  %v1751_v37 = vld [vmem:[#allocation2 + $0xf8] sm:$0xff] }
 0x1f6   : > { %4453 = vmatprep.mubr.f32.mxu1 %v6188_v27  ;;  %v6205_v46 = vmax.f32 %v1037_v11, %v6136_v54  ;;  %v1875_v20 = vmax.f32 %v1811_v26, %v5940_v61  ;;  %v6208_v10 = vmax.f32 %v1938_v59, %v1970_v32  ;;  %v2127_v24 = vmax.f32 %v6062_v41, %v6099_v33  ;;  %v1971_v41 = vld [vmem:[#allocation2 + $0xcc] sm:$0xff]  ;;  %v1972_v2 = vld [vmem:[#allocation2 + $0xdc] sm:$0xff] }
 0x1f7   : > { %v2254_v55 = vmax.f32 %v2190_v7, %v6171_v1  ;;  %v1812_v39 = vmax.f32 %v1748_v30, %v1780_v44  ;;  %4715 = vmatprep.subr.bf16.mxu1 %v7008_v48  ;;  %v6215_v31 = vmax.f32 %v2253_v40, %v6202_v22  ;;  %v2128_v61 = vmax.f32 %v6080_v36, %v6124_v45  ;;  %v1783_v36 = vld [vmem:[#allocation2 + $0xf9] sm:$0xff]  ;;  %v1784_v44 = vld [vmem:[#allocation2 + $0x109] sm:$0xff] }
 0x1f8   : > { %1729 = vst [vmem:[#allocation2 + $0x172] sm:$0xff] %v6205_v46  ;;  %v1939_v54 = vmax.f32 %v1875_v20, %v1907_v58  ;;  %v1813_v6 = vmax.f32 %v1749_v19, %v1781_v60  ;;  %4717 = vmatpush3.bf16.msra.mxu1 %v7008_v48  ;;  %4324 = vmatmul.mubr.f32.gmra.mrb[62].mxu0 %v6205_v46  ;;  %v7010_v42 = vld [vmem:[#allocation36_spill] sm:$0xff]  ;;  %v7011_v7 = vld [vmem:[#allocation17_spill] sm:$0xff] }
 0x1f9   : > { %v6222_v12 = vmax.f32 %v2254_v55, %v6208_v10  ;;  %v2191_v35 = vmax.f32 %v2127_v24, %v6164_v47  ;;  %v1876_v49 = vmax.f32 %v1812_v39, %v5955_v5  ;;  %v2129_v0 = vmax.f32 %v6099_v33, %v6164_v47  ;;  %4454 = vmatmul.mubr.f32.gmra.mrb[26].mxu1 %v6215_v31  ;;  %v1973_v19 = vld [vmem:[#allocation2 + $0xe4] sm:$0xff]  ;;  %v7012_v20 = vld [vmem:[#allocation20_spill] sm:$0xff] }
 0x1fa   : > { %2622 = vst [vmem:[#allocation2 + $0x82] sm:$0xff] %v6215_v31  ;;  %4358 = vmatprep.mubr.f32.mxu0 %v7009_v34  ;;  %v6232_v23 = vmax.f32 %v1939_v54, %v1971_v41  ;;  %v2192_v21 = vmax.f32 %v2128_v61, %v6171_v1  ;;  %v1877_v14 = vmax.f32 %v1813_v6, %v5979_v51  ;;  %v1752_v51 = vld [vmem:[#allocation2 + $0x108] sm:$0xff]  ;;  %v1910_v55 = vld [vmem:[#allocation2 + $0xf3] sm:$0xff]  ;;  %v1911_v54 = vld [vmem:[#allocation2 + $0xfb] sm:$0xff] }
 0x1fb   : > { %4456 = vmatprep.mubr.f32.mxu1 %v6222_v12  ;;  %2623 = vst [vmem:[#allocation2 + $0x92] sm:$0xff] %v6222_v12  ;;  %v2255_v5 = vmax.f32 %v2191_v35, %v6202_v22  ;;  %v1940_v33 = vmax.f32 %v1876_v49, %v1908_v43  ;;  %v2193_v62 = vmax.f32 %v2129_v0, %v6202_v22  ;;  %v1974_v41 = vld [vmem:[#allocation2 + $0xf4] sm:$0xff]  ;;  %v1754_v0 = vld [vmem:[#allocation2 + $0x120] sm:$0xff] }
 0x1fc   : > { %v1814_v4 = vmax.f32 %v1750_v38, %v1782_v13  ;;  %v2256_v28 = vmax.f32 %v2192_v21, %v6208_v10  ;;  %v1941_v11 = vmax.f32 %v1877_v14, %v1909_v52  ;;  %v2130_v26 = vmax.f32 %v6124_v45, %v6171_v1  ;;  %4719 = vmatprep.subr.bf16.mxu1 %v7010_v42  ;;  %v1753_v38 = vld [vmem:[#allocation2 + $0x110] sm:$0xff]  ;;  %v1975_v34 = vld [vmem:[#allocation2 + $0xfc] sm:$0xff] }
 0x1fd   : > { %v1815_v30 = vmax.f32 %v1751_v37, %v1783_v36  ;;  %v6245_v40 = vmax.f32 %v2255_v5, %v6232_v23  ;;  %v6247_v59 = vmax.f32 %v1940_v33, %v1972_v2  ;;  %4359 = vmatmul.mubr.f32.vlgmr.msra.gmra.mrb[32].mxu0 %v7011_v7  ;;  %v2257_v60 = vmax.f32 %v2193_v62, %v6232_v23  ;;  %v1785_v13 = vld [vmem:[#allocation2 + $0x111] sm:$0xff]  ;;  %v1786_v37 = vld [vmem:[#allocation2 + $0x121] sm:$0xff] }
 0x1fe   : > { %v1878_v32 = vmax.f32 %v1814_v4, %v6000_v53  ;;  %4361 = vmatprep.mubr.f32.mxu0 %v7012_v20  ;;  %v6253_v45 = vmax.f32 %v1941_v11, %v1973_v19  ;;  %v2194_v58 = vmax.f32 %v2130_v26, %v6208_v10  ;;  %v2131_v39 = vmax.f32 %v6164_v47, %v6202_v22  ;;  %v7013_v36 = vld [vmem:[#allocation19_spill] sm:$0xff]  ;;  %v7014_v14 = vld [vmem:[#allocation22_spill] sm:$0xff] }
 0x1ff   : > { %v1879_v24 = vmax.f32 %v1815_v30, %v6022_v3  ;;  %4457 = vmatmul.mubr.f32.gmra.mrb[28].mxu1 %v6245_v40  ;;  %2624 = vst [vmem:[#allocation2 + $0x9a] sm:$0xff] %v6245_v40  ;;  %v6262_v48 = vmax.f32 %v2256_v28, %v6247_v59  ;;  %v1816_v61 = vmax.f32 %v1752_v51, %v1784_v44  ;;  %v1912_v52 = vld [vmem:[#allocation2 + $0x10b] sm:$0xff]  ;;  %v1756_v19 = vld [vmem:[#allocation2 + $0x138] sm:$0xff] }
 0x200   : > { %v1942_v53 = vmax.f32 %v1878_v32, %v1910_v55  ;;  %v2132_v6 = vmax.f32 %v6171_v1, %v6208_v10  ;;  %v6267_v3 = vmax.f32 %v2257_v60, %v6253_v45  ;;  %v2258_v47 = vmax.f32 %v2194_v58, %v6247_v59  ;;  %4721 = vmatpush3.bf16.msra.mxu1 %v7010_v42  ;;  %v1755_v2 = vld [vmem:[#allocation2 + $0x128] sm:$0xff]  ;;  %v1788_v60 = vld [vmem:[#allocation2 + $0x139] sm:$0xff] }
 0x201   : > { %v1943_v35 = vmax.f32 %v1879_v24, %v1911_v54  ;;  %v2195_v49 = vmax.f32 %v2131_v39, %v6232_v23  ;;  %4459 = vmatprep.mubr.f32.mxu1 %v6262_v48  ;;  %2625 = vst [vmem:[#allocation2 + $0xaa] sm:$0xff] %v6262_v48  ;;  %4362 = vmatmul.mubr.f32.gmra.mrb[34].mxu0 %v7013_v36  ;;  %v1787_v28 = vld [vmem:[#allocation2 + $0x129] sm:$0xff]  ;;  %v1913_v58 = vld [vmem:[#allocation2 + $0x113] sm:$0xff] }
 0x202   : > { %v6274_v1 = vmax.f32 %v1942_v53, %v1974_v41  ;;  %v1880_v43 = vmax.f32 %v1816_v61, %v6039_v16  ;;  %v2196_v21 = vmax.f32 %v2132_v6, %v6247_v59  ;;  %2626 = vst [vmem:[#allocation2 + $0xb2] sm:$0xff] %v6267_v3  ;;  %4364 = vmatprep.mubr.f32.mxu0 %v7014_v14  ;;  %v1976_v44 = vld [vmem:[#allocation2 + $0x10c] sm:$0xff]  ;;  %v7015_v32 = vld [vmem:[#allocation37_spill] sm:$0xff]  ;;  %v7017_v39 = vld [vmem:[#allocation24_spill] sm:$0xff] }
 0x203   : > { %v6281_v5 = vmax.f32 %v1943_v35, %v1975_v34  ;;  %v2259_v33 = vmax.f32 %v2195_v49, %v6253_v45  ;;  %v1817_v62 = vmax.f32 %v1753_v38, %v1785_v13  ;;  %v2133_v4 = vmax.f32 %v6202_v22, %v6232_v23  ;;  %4460 = vmatmul.mubr.f32.gmra.mrb[30].mxu1 %v6267_v3  ;;  %v7016_v55 = vld [vmem:[#allocation21_spill] sm:$0xff]  ;;  %v1915_v34 = vld [vmem:[#allocation2 + $0x12b] sm:$0xff] }
 0x204   : > { %v6288_v16 = vmax.f32 %v2258_v47, %v6274_v1  ;;  %v1944_v11 = vmax.f32 %v1880_v43, %v1912_v52  ;;  %v2260_v26 = vmax.f32 %v2196_v21, %v6274_v1  ;;  %v1818_v30 = vmax.f32 %v1754_v0, %v1786_v37  ;;  %4723 = vmatprep.subr.bf16.mxu1 %v7015_v32  ;;  %v1914_v54 = vld [vmem:[#allocation2 + $0x123] sm:$0xff]  ;;  %v7018_v21 = vld [vmem:[#allocation23_spill] sm:$0xff] }
 0x205   : > { %v6292_v51 = vmax.f32 %v2259_v33, %v6281_v5  ;;  %v1881_v42 = vmax.f32 %v1817_v62, %v6060_v56  ;;  %v2197_v7 = vmax.f32 %v2133_v4, %v6253_v45  ;;  %v2134_v22 = vmax.f32 %v6208_v10, %v6247_v59  ;;  %4365 = vmatmul.mubr.f32.gmra.mrb[36].mxu0 %v7016_v55  ;;  %v1757_v35 = vld [vmem:[#allocation2 + $0x140] sm:$0xff]  ;;  %v1758_v52 = vld [vmem:[#allocation2 + $0x150] sm:$0xff] }
 0x206   : > { %4462 = vmatprep.mubr.f32.mxu1 %v6288_v16  ;;  %2627 = vst [vmem:[#allocation2 + $0xc2] sm:$0xff] %v6288_v16  ;;  %v6301_v20 = vmax.f32 %v1944_v11, %v1976_v44  ;;  %v1882_v56 = vmax.f32 %v1818_v30, %v6078_v50  ;;  %v1819_v24 = vmax.f32 %v1755_v2, %v1787_v28  ;;  %v1977_v50 = vld [vmem:[#allocation2 + $0x114] sm:$0xff]  ;;  %v1789_v49 = vld [vmem:[#allocation2 + $0x141] sm:$0xff]  ;;  %v7019_v2 = vld [vmem:[#allocation26_spill] sm:$0xff] }
 0x207   : > { %2628 = vst [vmem:[#allocation2 + $0xca] sm:$0xff] %v6292_v51  ;;  %4367 = vmatprep.mubr.f32.mxu0 %v7017_v39  ;;  %v1945_v10 = vmax.f32 %v1881_v42, %v1913_v58  ;;  %v2261_v53 = vmax.f32 %v2197_v7, %v6281_v5  ;;  %v2198_v61 = vmax.f32 %v2134_v22, %v6274_v1  ;;  %v1978_v37 = vld [vmem:[#allocation2 + $0x124] sm:$0xff]  ;;  %v1790_v62 = vld [vmem:[#allocation2 + $0x151] sm:$0xff]  ;;  %v1916_v11 = vld [vmem:[#allocation2 + $0x13b] sm:$0xff] }
 0x208   : > { %v2135_v6 = vmax.f32 %v6232_v23, %v6253_v45  ;;  %4463 = vmatmul.mubr.f32.gmra.mrb[0].mxu1 %v6292_v51  ;;  %v6313_v38 = vmax.f32 %v2260_v26, %v6301_v20  ;;  %v1946_v13 = vmax.f32 %v1882_v56, %v1914_v54  ;;  %v1883_v41 = vmax.f32 %v1819_v24, %v6104_v15  ;;  %v1759_v22 = vld [vmem:[#allocation2 + $0x158] sm:$0xff]  ;;  %v1760_v24 = vld [vmem:[#allocation2 + $0x168] sm:$0xff] }
 0x209   : > { %v1820_v47 = vmax.f32 %v1756_v19, %v1788_v60  ;;  %v6316_v0 = vmax.f32 %v1945_v10, %v1977_v50  ;;  %v2262_v36 = vmax.f32 %v2198_v61, %v6301_v20  ;;  %v2136_v43 = vmax.f32 %v6247_v59, %v6274_v1  ;;  %4725 = vmatpush3.bf16.msra.mxu1 %v7015_v32  ;;  %v1979_v59 = vld [vmem:[#allocation2 + $0x12c] sm:$0xff]  ;;  %v1791_v19 = vld [vmem:[#allocation2 + $0x159] sm:$0xff]  ;;  %v1917_v54 = vld [vmem:[#allocation2 + $0x143] sm:$0xff] }
 0x20a   : > { %v2199_v23 = vmax.f32 %v2135_v6, %v6281_v5  ;;  %4465 = vmatprep.mubr.f32.mxu1 %v6313_v38  ;;  %2629 = vst [vmem:[#allocation2 + $0xda] sm:$0xff] %v6313_v38  ;;  %v6325_v15 = vmax.f32 %v1946_v13, %v1978_v37  ;;  %4368 = vmatmul.mubr.f32.gmra.mrb[38].mxu0 %v7018_v21  ;;  %v1980_v60 = vld [vmem:[#allocation2 + $0x13c] sm:$0xff]  ;;  %v1792_v39 = vld [vmem:[#allocation2 + $0x169] sm:$0xff] }
 0x20b   : > { %v1947_v14 = vmax.f32 %v1883_v41, %v1915_v34  ;;  %v1884_v33 = vmax.f32 %v1820_v47, %v6128_v18  ;;  %v6330_v4 = vmax.f32 %v2261_v53, %v6316_v0  ;;  %4370 = vmatprep.mubr.f32.mxu0 %v7019_v2  ;;  %v2200_v26 = vmax.f32 %v2136_v43, %v6301_v20  ;;  %v7020_v53 = vld [vmem:[#allocation25_spill] sm:$0xff]  ;;  %v7021_v61 = vld [vmem:[#allocation28_spill] sm:$0xff]  ;;  %v1761_v34 = vld [vmem:[#allocation2 + $0x170] sm:$0xff] }
 0x20c   : > { %v2263_v28 = vmax.f32 %v2199_v23, %v6316_v0  ;;  %v1821_v30 = vmax.f32 %v1757_v35, %v1789_v49  ;;  %v6336_v44 = vmax.f32 %v2262_v36, %v6325_v15  ;;  %v2137_v7 = vmax.f32 %v6253_v45, %v6281_v5  ;;  %v1918_v49 = vld [vmem:[#allocation2 + $0x153] sm:$0xff] }
 0x20d   : > { %v6338_v42 = vmax.f32 %v1947_v14, %v1979_v59  ;;  %v1948_v18 = vmax.f32 %v1884_v33, %v1916_v11  ;;  %4466 = vmatmul.mubr.f32.gmra.mrb[2].mxu1 %v6330_v4  ;;  %2630 = vst [vmem:[#allocation2 + $0xe2] sm:$0xff] %v6330_v4  ;;  %v2264_v32 = vmax.f32 %v2200_v26, %v6325_v15  ;;  %v1793_v23 = vld [vmem:[#allocation2 + $0x171] sm:$0xff] }
 0x20e   : > { %v1885_v55 = vmax.f32 %v1821_v30, %v6153_v17  ;;  %v1822_v58 = vmax.f32 %v1758_v52, %v1790_v62  ;;  %v2138_v56 = vmax.f32 %v6274_v1, %v6301_v20  ;;  %4468 = vmatprep.mubr.f32.mxu1 %v6336_v44  ;;  %2631 = vst [vmem:[#allocation2 + $0xf2] sm:$0xff] %v6336_v44  ;;  %v1981_v1 = vld [vmem:[#allocation2 + $0x144] sm:$0xff]  ;;  %v1982_v33 = vld [vmem:[#allocation2 + $0x154] sm:$0xff] }
 0x20f   : > { %v6351_v45 = vmax.f32 %v2263_v28, %v6338_v42  ;;  %v6353_v10 = vmax.f32 %v1948_v18, %v1980_v60  ;;  %4371 = vmatmul.mubr.f32.gmra.mrb[40].mxu0 %v7020_v53  ;;  %v2201_v17 = vmax.f32 %v2137_v7, %v6316_v0  ;;  %v1823_v41 = vmax.f32 %v1759_v22, %v1791_v19  ;;  %v7022_v52 = vld [vmem:[#allocation27_spill] sm:$0xff]  ;;  %v1983_v7 = vld [vmem:[#allocation2 + $0x15c] sm:$0xff] }
 0x210   : > { %4373 = vmatprep.mubr.f32.mxu0 %v7021_v61  ;;  %v1949_v6 = vmax.f32 %v1885_v55, %v1917_v54  ;;  %v1886_v50 = vmax.f32 %v1822_v58, %v6143_v25  ;;  %v2202_v13 = vmax.f32 %v2138_v56, %v6325_v15  ;;  %v2139_v37 = vmax.f32 %v6281_v5, %v6316_v0  ;;  %v1919_v5 = vld [vmem:[#allocation2 + $0x15b] sm:$0xff]  ;;  %v1920_v30 = vld [vmem:[#allocation2 + $0x16b] sm:$0xff] }
 0x211   : > { %2632 = vst [vmem:[#allocation2 + $0xfa] sm:$0xff] %v6351_v45  ;;  %v6362_v47 = vmax.f32 %v2264_v32, %v6353_v10  ;;  %v2265_v35 = vmax.f32 %v2201_v17, %v6338_v42  ;;  %v1824_v36 = vmax.f32 %v1760_v24, %v1792_v39  ;;  %4469 = vmatmul.mubr.f32.gmra.mrb[4].mxu1 %v6351_v45  ;;  %v1984_v55 = vld [vmem:[#allocation2 + $0x16c] sm:$0xff]  ;;  %v2643_v24 = vld [vmem:[#allocation2] sm:$0xff]  ;;  %v2645_v39 = vld [vmem:[#allocation2 + $0x18] sm:$0xff] }
 0x212   : > { %v6368_v25 = vmax.f32 %v1949_v6, %v1981_v1  ;;  %v1950_v43 = vmax.f32 %v1886_v50, %v1918_v49  ;;  %v2266_v21 = vmax.f32 %v2202_v13, %v6353_v10  ;;  %v1887_v14 = vmax.f32 %v1823_v41, %v6175_v57  ;;  %v7023_v57 = vld [vmem:[#allocation30_spill] sm:$0xff]  ;;  %v7024_v17 = vld [vmem:[#allocation29_spill] sm:$0xff]  ;;  %v2677_v50 = vld [vmem:[#allocation2 + $0x19] sm:$0xff] }
 0x213   : > { %4471 = vmatprep.mubr.f32.mxu1 %v6362_v47  ;;  %2633 = vst [vmem:[#allocation2 + $0x10a] sm:$0xff] %v6362_v47  ;;  %4374 = vmatmul.mubr.f32.gmra.mrb[42].mxu0 %v7022_v52  ;;  %v2203_v62 = vmax.f32 %v2139_v37, %v6338_v42  ;;  %v1888_v2 = vmax.f32 %v1824_v36, %v6166_v63  ;;  %v2675_v1 = vld [vmem:[#allocation2 + $0x1] sm:$0xff]  ;;  %v2679_v49 = vld [vmem:[#allocation2 + $0x31] sm:$0xff] }
 0x214   : > { %v2140_v59 = vmax.f32 %v6301_v20, %v6325_v15  ;;  %v6380_v28 = vmax.f32 %v2265_v35, %v6368_v25  ;;  %v2014_v11 = vmax.f32 %v1950_v43, %v1982_v33  ;;  %4376 = vmatprep.mubr.f32.mxu0 %v7023_v57  ;;  %v1951_v26 = vmax.f32 %v1887_v14, %v1919_v5  ;;  %v2647_v35 = vld [vmem:[#allocation2 + $0x30] sm:$0xff]  ;;  %v6403_v37 = vld [vmem:[#allocation2 + $0x8] sm:$0xff]  ;;  %v6405_v36 = vld [vmem:[#allocation2 + $0x20] sm:$0xff] }
 0x215   : > { %v1825_v18 = vmax.f32 %v1761_v34, %v1793_v23  ;;  %v2267_v22 = vmax.f32 %v2203_v62, %v6368_v25  ;;  %v1952_v19 = vmax.f32 %v1888_v2, %v1920_v30  ;;  %v2141_v63 = vmax.f32 %v6316_v0, %v6338_v42  ;;  %v1921_v0 = vld [vmem:[#allocation2 + $0x173] sm:$0xff]  ;;  %v2739_v14 = vld [vmem:[#allocation2 + $0x2] sm:$0xff] }
 0x216   : > { %v2204_v60 = vmax.f32 %v2140_v59, %v6353_v10  ;;  %4472 = vmatmul.mubr.f32.gmra.mrb[6].mxu1 %v6380_v28  ;;  %2634 = vst [vmem:[#allocation2 + $0x112] sm:$0xff] %v6380_v28  ;;  %v6389_v20 = vmax.f32 %v2266_v21, %v2014_v11  ;;  %v2015_v32 = vmax.f32 %v1951_v26, %v1983_v7  ;;  %v2676_v33 = vld [vmem:[#allocation2 + $0x9] sm:$0xff]  ;;  %v2678_v52 = vld [vmem:[#allocation2 + $0x21] sm:$0xff]  ;;  %v2648_v26 = vld [vmem:[#allocation2 + $0x38] sm:$0xff] }
 0x217   : > { %v1889_v58 = vmax.f32 %v1825_v18, %v6205_v46  ;;  %v2142_v56 = vmax.f32 %v6325_v15, %v6353_v10  ;;  %v2016_v53 = vmax.f32 %v1952_v19, %v1984_v55  ;;  %4377 = vmatmul.mubr.f32.gmra.mrb[44].mxu0 %v7024_v17  ;;  %v2205_v61 = vmax.f32 %v2141_v63, %v6368_v25  ;;  %v7025_v15 = vld [vmem:[#allocation33_spill] sm:$0xff]  ;;  %v2741_v57 = vld [vmem:[#allocation2 + $0x1a] sm:$0xff]  ;;  %v2682_v63 = vld [vmem:[#allocation2 + $0x51] sm:$0xff] }
 0x218   : > { %v2268_v54 = vmax.f32 %v2204_v60, %v2014_v11  ;;  %v2143_v6 = vmax.f32 %v6338_v42, %v6368_v25  ;;  %4474 = vmatprep.mubr.f32.mxu1 %v6389_v20  ;;  %2635 = vst [vmem:[#allocation2 + $0x122] sm:$0xff] %v6389_v20  ;;  %v6400_v46 = vmax.f32 %v2267_v22, %v2015_v32  ;;  %v1985_v42 = vld [vmem:[#allocation2 + $0x174] sm:$0xff]  ;;  %v2649_v18 = vld [vmem:[#allocation2 + $0x48] sm:$0xff] }
 0x219   : > { %4379 = vmatprep.mubr.f32.mxu0 %v7025_v15  ;;  %v1953_v13 = vmax.f32 %v1889_v58, %v1921_v0  ;;  %v2206_v41 = vmax.f32 %v2142_v56, %v2014_v11  ;;  %v2269_v23 = vmax.f32 %v2205_v61, %v2015_v32  ;;  %v2144_v21 = vmax.f32 %v6353_v10, %v2014_v11  ;;  %v2680_v30 = vld [vmem:[#allocation2 + $0x39] sm:$0xff]  ;;  %v2681_v19 = vld [vmem:[#allocation2 + $0x49] sm:$0xff] }
 0x21a   : > { %v6407_v34 = vmax.f32 %v2268_v54, %v2016_v53  ;;  %v2207_v43 = vmax.f32 %v2143_v6, %v2015_v32  ;;  %4475 = vmatmul.mubr.f32.gmra.mrb[8].mxu1 %v6400_v46  ;;  %2636 = vst [vmem:[#allocation2 + $0x12a] sm:$0xff] %v6400_v46  ;;  %v2145_v2 = vmax.f32 %v6368_v25, %v2015_v32  ;;  %v7026_v10 = vld [vmem:[#allocation31_spill] sm:$0xff]  ;;  %v2805_v54 = vld [vmem:[#allocation2 + $0x1b] sm:$0xff]  ;;  %v2867_v0 = vld [vmem:[#allocation2 + $0x4] sm:$0xff] }
 0x21b   : > { %v2017_v5 = vmax.f32 %v1953_v13, %v1985_v42  ;;  %v6412_v62 = vmax.f32 %v2206_v41, %v2016_v53  ;;  %v2707_v59 = vmax.f32 %v2643_v24, %v2675_v1  ;;  %4380 = vmatmul.mubr.f32.gmra.mrb[46].mxu0 %v7026_v10  ;;  %v6418_v11 = vmax.f32 %v2144_v21, %v2016_v53  ;;  %v2650_v60 = vld [vmem:[#allocation2 + $0x50] sm:$0xff]  ;;  %v2803_v24 = vld [vmem:[#allocation2 + $0x3] sm:$0xff] }
 0x21c   : > { %4477 = vmatprep.mubr.f32.mxu1 %v6407_v34  ;;  %2637 = vst [vmem:[#allocation2 + $0x13a] sm:$0xff] %v6407_v34  ;;  %v2709_v7 = vmax.f32 %v2645_v39, %v2677_v50  ;;  %v2711_v22 = vmax.f32 %v2647_v35, %v2679_v49  ;;  %v2743_v58 = vld [vmem:[#allocation2 + $0x32] sm:$0xff]  ;;  %v2708_v61 = vmax.f32 %v6403_v37, %v2676_v33  ;;  %v2740_v1 = vld [vmem:[#allocation2 + $0xa] sm:$0xff]  ;;  %v2742_v50 = vld [vmem:[#allocation2 + $0x22] sm:$0xff] }
 0x21d   : > { %v6420_v55 = vmax.f32 %v2269_v23, %v2017_v5  ;;  %2639 = vst [vmem:[#allocation2 + $0x152] sm:$0xff] %v6412_v62  ;;  %v6423_v25 = vmax.f32 %v2207_v43, %v2017_v5  ;;  %v6425_v32 = vmax.f32 %v2145_v2, %v2017_v5  ;;  %v2771_v56 = vmax.f32 %v2707_v59, %v2739_v14  ;;  %v2807_v17 = vld [vmem:[#allocation2 + $0x33] sm:$0xff]  ;;  %v2869_v13 = vld [vmem:[#allocation2 + $0x1c] sm:$0xff]  ;;  %v2804_v42 = vld [vmem:[#allocation2 + $0xb] sm:$0xff] }
 0x21e   : > { %2641 = vst [vmem:[#allocation2 + $0x16a] sm:$0xff] %v6418_v11  ;;  %v2773_v53 = vmax.f32 %v2709_v7, %v2741_v57  ;;  %v2775_v39 = vmax.f32 %v2711_v22, %v2743_v58  ;;  %v2710_v6 = vmax.f32 %v6405_v36, %v2678_v52  ;;  %v2871_v41 = vld [vmem:[#allocation2 + $0x34] sm:$0xff]  ;;  %v2712_v35 = vmax.f32 %v2648_v26, %v2680_v30  ;;  %v2806_v23 = vld [vmem:[#allocation2 + $0x23] sm:$0xff]  ;;  %v2868_v7 = vld [vmem:[#allocation2 + $0xc] sm:$0xff] }
 0x21f   : > { %4478 = vmatmul.mubr.f32.gmra.mrb[10].mxu1 %v6420_v55  ;;  %2638 = vst [vmem:[#allocation2 + $0x142] sm:$0xff] %v6420_v55  ;;  %2640 = vst [vmem:[#allocation2 + $0x15a] sm:$0xff] %v6423_v25  ;;  %v2835_v15 = vmax.f32 %v2771_v56, %v2803_v24  ;;  %v2744_v49 = vld [vmem:[#allocation2 + $0x3a] sm:$0xff]  ;;  %v2713_v37 = vmax.f32 %v2649_v18, %v2681_v19  ;;  %v2714_v43 = vmax.f32 %v2650_v60, %v2682_v63  ;;  %v2745_v5 = vld [vmem:[#allocation2 + $0x4a] sm:$0xff] }
 0x220   : > { %2642 = vst [vmem:[#allocation2 + $0x172] sm:$0xff] %v6425_v32  ;;  %4480 = vmatprep.mubr.f32.mxu1 %v6412_v62  ;;  %v2837_v36 = vmax.f32 %v2773_v53, %v2805_v54  ;;  %v2839_v21 = vmax.f32 %v2775_v39, %v2807_v17  ;;  %v2772_v14 = vmax.f32 %v2708_v61, %v2740_v1  ;;  %v2808_v52 = vld [vmem:[#allocation2 + $0x3b] sm:$0xff]  ;;  %v2870_v22 = vld [vmem:[#allocation2 + $0x24] sm:$0xff]  ;;  %v2810_v53 = vld [vmem:[#allocation2 + $0x53] sm:$0xff] }
 0x221   : > { %v2774_v33 = vmax.f32 %v2710_v6, %v2742_v50  ;;  %v2651_v2 = vld [vmem:[#allocation2 + $0x60] sm:$0xff]  ;;  %v2899_v57 = vmax.f32 %v2835_v15, %v2867_v0  ;;  %v2776_v10 = vmax.f32 %v2712_v35, %v2744_v49  ;;  %v2777_v26 = vmax.f32 %v2713_v37, %v2745_v5  ;;  %v2652_v58 = vld [vmem:[#allocation2 + $0x68] sm:$0xff]  ;;  %v2653_v1 = vld [vmem:[#allocation2 + $0x78] sm:$0xff] }
 0x222   : > { %v2683_v59 = vld [vmem:[#allocation2 + $0x61] sm:$0xff]  ;;  %v2778_v30 = vmax.f32 %v2714_v43, %v6111_v9  ;;  %v2684_v18 = vld [vmem:[#allocation2 + $0x69] sm:$0xff]  ;;  %v2901_v19 = vmax.f32 %v2837_v36, %v2869_v13  ;;  %v6436_v60 = vmax.f32 %v2839_v21, %v2871_v41  ;;  %v2836_v63 = vmax.f32 %v2772_v14, %v2804_v42  ;;  %v2685_v50 = vld [vmem:[#allocation2 + $0x79] sm:$0xff] }
 0x223   : > { %v2838_v56 = vmax.f32 %v2774_v33, %v2806_v23  ;;  %v2872_v24 = vld [vmem:[#allocation2 + $0x3c] sm:$0xff]  ;;  %v2809_v54 = vld [vmem:[#allocation2 + $0x4b] sm:$0xff]  ;;  %4481 = vmatmul.mubr.f32.gmra.mrb[12].mxu1 %v6423_v25  ;;  %v2840_v39 = vmax.f32 %v2776_v10, %v2808_v52  ;;  %v2715_v6 = vmax.f32 %v2651_v2, %v2683_v59  ;;  %v2874_v41 = vld [vmem:[#allocation2 + $0x54] sm:$0xff]  ;;  %v2716_v35 = vmax.f32 %v2652_v58, %v2684_v18 }
 0x224   : > { %v2841_v17 = vmax.f32 %v2777_v26, %v2809_v54  ;;  %v2873_v0 = vld [vmem:[#allocation2 + $0x4c] sm:$0xff]  ;;  %v2842_v61 = vmax.f32 %v2778_v30, %v2810_v53  ;;  %4483 = vmatprep.mubr.f32.mxu1 %v6418_v11  ;;  %v3031_v9 = vmax.f32 %v2899_v57, %v2901_v19  ;;  %v2900_v15 = vmax.f32 %v2836_v63, %v2868_v7  ;;  %v2654_v49 = vld [vmem:[#allocation2 + $0x80] sm:$0xff] }
 0x225   : > { %v2902_v13 = vmax.f32 %v2838_v56, %v2870_v22  ;;  %v2686_v42 = vld [vmem:[#allocation2 + $0x81] sm:$0xff]  ;;  %v6440_v23 = vmax.f32 %v2840_v39, %v2872_v24  ;;  %v2779_v36 = vmax.f32 %v2715_v6, %v6134_v29  ;;  %v2780_v52 = vmax.f32 %v2716_v35, %v6179_v8  ;;  %v2812_v59 = vld [vmem:[#allocation2 + $0x6b] sm:$0xff] }
 0x226   : > { %v6442_v37 = vmax.f32 %v2841_v17, %v2873_v0  ;;  %v6444_v43 = vmax.f32 %v2842_v61, %v2874_v41  ;;  %v3095_v21 = vmax.f32 %v3031_v9, %v6436_v60  ;;  %v2811_v33 = vld [vmem:[#allocation2 + $0x63] sm:$0xff]  ;;  %v2717_v5 = vmax.f32 %v2653_v1, %v2685_v50  ;;  %v2655_v22 = vld [vmem:[#allocation2 + $0x90] sm:$0xff]  ;;  %v2813_v24 = vld [vmem:[#allocation2 + $0x7b] sm:$0xff] }
 0x227   : > { %v3032_v14 = vmax.f32 %v2900_v15, %v2902_v13  ;;  %4484 = vmatmul.mubr.f32.gmra.mrb[14].mxu1 %v6425_v32  ;;  %v2843_v2 = vmax.f32 %v2779_v36, %v2811_v33  ;;  %v3033_v57 = vmax.f32 %v2901_v19, %v6436_v60  ;;  %v2718_v10 = vmax.f32 %v2654_v49, %v2686_v42  ;;  %v2687_v26 = vld [vmem:[#allocation2 + $0x91] sm:$0xff]  ;;  %v2875_v58 = vld [vmem:[#allocation2 + $0x64] sm:$0xff]  ;;  %v2688_v50 = vld [vmem:[#allocation2 + $0x99] sm:$0xff] }
 0x228   : > { %v3034_v7 = vmax.f32 %v2902_v13, %v6440_v23  ;;  %4518 = vmatprep.mubr.f32.mxu1 %v3095_v21  ;;  %v3159_v30 = vmax.f32 %v3095_v21, %v6442_v37  ;;  %v2844_v18 = vmax.f32 %v2780_v52, %v2812_v59  ;;  %v2781_v8 = vmax.f32 %v2717_v5, %v6188_v27  ;;  %v2876_v56 = vld [vmem:[#allocation2 + $0x6c] sm:$0xff]  ;;  %v2814_v61 = vld [vmem:[#allocation2 + $0x83] sm:$0xff]  ;;  %v2656_v1 = vld [vmem:[#allocation2 + $0x98] sm:$0xff] }
 0x229   : > { %v3096_v29 = vmax.f32 %v3032_v14, %v6440_v23  ;;  %v6455_v63 = vmax.f32 %v2843_v2, %v2875_v58  ;;  %v3097_v19 = vmax.f32 %v3033_v57, %v6442_v37  ;;  %v2782_v54 = vmax.f32 %v2718_v10, %v6215_v31  ;;  %v2877_v9 = vld [vmem:[#allocation2 + $0x7c] sm:$0xff]  ;;  %v2657_v41 = vld [vmem:[#allocation2 + $0xa8] sm:$0xff]  ;;  %v2815_v52 = vld [vmem:[#allocation2 + $0x93] sm:$0xff] }
 0x22a   : > { %v3098_v53 = vmax.f32 %v3034_v7, %v6444_v43  ;;  %v6461_v17 = vmax.f32 %v2844_v18, %v2876_v56  ;;  %v2845_v0 = vmax.f32 %v2781_v8, %v2813_v24  ;;  %v2719_v6 = vmax.f32 %v2655_v22, %v2687_v26  ;;  %v2689_v35 = vld [vmem:[#allocation2 + $0xa9] sm:$0xff]  ;;  %v2690_v57 = vld [vmem:[#allocation2 + $0xb1] sm:$0xff]  ;;  %v2816_v24 = vld [vmem:[#allocation2 + $0x9b] sm:$0xff] }
 0x22b   : > { %v3160_v39 = vmax.f32 %v3096_v29, %v6444_v43  ;;  %4519 = vmatmul.mubr.f32.vlgmr.msra.gmra.mrb[16].mxu1 %v3096_v29  ;;  %v3223_v27 = vmax.f32 %v3159_v30, %v6455_v63  ;;  %v3161_v15 = vmax.f32 %v3097_v19, %v6455_v63  ;;  %v2846_v13 = vmax.f32 %v2782_v54, %v2814_v61  ;;  %v2878_v36 = vld [vmem:[#allocation2 + $0x84] sm:$0xff]  ;;  %v2658_v59 = vld [vmem:[#allocation2 + $0xb0] sm:$0xff] }
 0x22c   : > { %v3035_v31 = vmax.f32 %v6436_v60, %v6442_v37  ;;  %4521 = vmatprep.mubr.f32.mxu1 %v3159_v30  ;;  %v6468_v42 = vmax.f32 %v2845_v0, %v2877_v9  ;;  %v3162_v21 = vmax.f32 %v3098_v53, %v6461_v17  ;;  %v2783_v14 = vmax.f32 %v2719_v6, %v6222_v12  ;;  %v2659_v29 = vld [vmem:[#allocation2 + $0xc0] sm:$0xff]  ;;  %v2879_v58 = vld [vmem:[#allocation2 + $0x94] sm:$0xff]  ;;  %v2817_v0 = vld [vmem:[#allocation2 + $0xab] sm:$0xff] }
 0x22d   : > { %v3224_v49 = vmax.f32 %v3160_v39, %v6461_v17  ;;  %v6472_v33 = vmax.f32 %v2846_v13, %v2878_v36  ;;  %v2720_v2 = vmax.f32 %v2656_v1, %v2688_v50  ;;  %v3036_v60 = vmax.f32 %v6440_v23, %v6444_v43  ;;  %v2691_v12 = vld [vmem:[#allocation2 + $0xc1] sm:$0xff]  ;;  %v2692_v1 = vld [vmem:[#allocation2 + $0xc9] sm:$0xff] }
 0x22e   : > { %v3099_v5 = vmax.f32 %v3035_v31, %v6455_v63  ;;  %v3225_v10 = vmax.f32 %v3161_v15, %v6468_v42  ;;  %v2847_v7 = vmax.f32 %v2783_v14, %v2815_v52  ;;  %v2721_v22 = vmax.f32 %v2657_v41, %v2689_v35  ;;  %v2881_v31 = vld [vmem:[#allocation2 + $0xac] sm:$0xff]  ;;  %v2819_v52 = vld [vmem:[#allocation2 + $0xc3] sm:$0xff] }
 0x22f   : > { %v3037_v26 = vmax.f32 %v6442_v37, %v6455_v63  ;;  %4522 = vmatmul.mubr.f32.gmra.mrb[18].mxu1 %v3160_v39  ;;  %v3226_v30 = vmax.f32 %v3162_v21, %v6472_v33  ;;  %v2784_v8 = vmax.f32 %v2720_v2, %v6245_v40  ;;  %v3100_v23 = vmax.f32 %v3036_v60, %v6461_v17  ;;  %v2660_v40 = vld [vmem:[#allocation2 + $0xc8] sm:$0xff]  ;;  %v2818_v41 = vld [vmem:[#allocation2 + $0xb3] sm:$0xff] }
 0x230   : > { %v3163_v18 = vmax.f32 %v3099_v5, %v6468_v42  ;;  %4524 = vmatprep.mubr.f32.mxu1 %v3223_v27  ;;  %v6484_v56 = vmax.f32 %v2847_v7, %v2879_v58  ;;  %v2785_v19 = vmax.f32 %v2721_v22, %v6262_v48  ;;  %v2722_v54 = vmax.f32 %v2658_v59, %v2690_v57  ;;  %v2880_v27 = vld [vmem:[#allocation2 + $0x9c] sm:$0xff]  ;;  %v2882_v59 = vld [vmem:[#allocation2 + $0xb4] sm:$0xff] }
 0x231   : > { %v3101_v37 = vmax.f32 %v3037_v26, %v6468_v42  ;;  %v2848_v53 = vmax.f32 %v2784_v8, %v2816_v24  ;;  %v3164_v39 = vmax.f32 %v3100_v23, %v6472_v33  ;;  %v3038_v61 = vmax.f32 %v6444_v43, %v6461_v17  ;;  %v2693_v2 = vld [vmem:[#allocation2 + $0xd9] sm:$0xff]  ;;  %v2820_v8 = vld [vmem:[#allocation2 + $0xcb] sm:$0xff] }
 0x232   : > { %v2723_v6 = vmax.f32 %v2659_v29, %v2691_v12  ;;  %v3227_v50 = vmax.f32 %v3163_v18, %v6484_v56  ;;  %v2849_v9 = vmax.f32 %v2785_v19, %v2817_v0  ;;  %v2786_v48 = vmax.f32 %v2722_v54, %v6267_v3  ;;  %v2883_v29 = vld [vmem:[#allocation2 + $0xc4] sm:$0xff]  ;;  %v2663_v19 = vld [vmem:[#allocation2 + $0xf0] sm:$0xff]  ;;  %v2664_v0 = vld [vmem:[#allocation2 + $0xf8] sm:$0xff] }
 0x233   : > { %v3165_v15 = vmax.f32 %v3101_v37, %v6484_v56  ;;  %4525 = vmatmul.mubr.f32.gmra.mrb[20].mxu1 %v3224_v49  ;;  %v6494_v13 = vmax.f32 %v2848_v53, %v2880_v27  ;;  %v3102_v35 = vmax.f32 %v3038_v61, %v6472_v33  ;;  %v3039_v36 = vmax.f32 %v6455_v63, %v6468_v42  ;;  %v2661_v49 = vld [vmem:[#allocation2 + $0xd8] sm:$0xff]  ;;  %v2662_v63 = vld [vmem:[#allocation2 + $0xe0] sm:$0xff] }
 0x234   : > { %v2787_v43 = vmax.f32 %v2723_v6, %v6288_v16  ;;  %4527 = vmatprep.mubr.f32.mxu1 %v3225_v10  ;;  %v6500_v21 = vmax.f32 %v2849_v9, %v2881_v31  ;;  %v2850_v14 = vmax.f32 %v2786_v48, %v2818_v41  ;;  %v2724_v5 = vmax.f32 %v2660_v40, %v2692_v1  ;;  %v2694_v10 = vld [vmem:[#allocation2 + $0xe1] sm:$0xff]  ;;  %v2695_v37 = vld [vmem:[#allocation2 + $0xf1] sm:$0xff] }
 0x235   : > { %v3040_v3 = vmax.f32 %v6461_v17, %v6472_v33  ;;  %v3228_v60 = vmax.f32 %v3164_v39, %v6494_v13  ;;  %v3166_v57 = vmax.f32 %v3102_v35, %v6494_v13  ;;  %v3103_v7 = vmax.f32 %v3039_v36, %v6484_v56  ;;  %v2884_v6 = vld [vmem:[#allocation2 + $0xcc] sm:$0xff]  ;;  %v2822_v35 = vld [vmem:[#allocation2 + $0xe3] sm:$0xff] }
 0x236   : > { %v2851_v16 = vmax.f32 %v2787_v43, %v2819_v52  ;;  %v3229_v22 = vmax.f32 %v3165_v15, %v6500_v21  ;;  %v6508_v26 = vmax.f32 %v2850_v14, %v2882_v59  ;;  %v2788_v12 = vmax.f32 %v2724_v5, %v6292_v51  ;;  %v2665_v36 = vld [vmem:[#allocation2 + $0x108] sm:$0xff]  ;;  %v2885_v52 = vld [vmem:[#allocation2 + $0xdc] sm:$0xff] }
 0x237   : > { %v3104_v17 = vmax.f32 %v3040_v3, %v6494_v13  ;;  %4528 = vmatmul.mubr.f32.gmra.mrb[22].mxu1 %v3226_v30  ;;  %v3167_v18 = vmax.f32 %v3103_v7, %v6500_v21  ;;  %v2725_v23 = vmax.f32 %v2661_v49, %v2693_v2  ;;  %v3041_v24 = vmax.f32 %v6468_v42, %v6484_v56  ;;  %v2696_v30 = vld [vmem:[#allocation2 + $0xf9] sm:$0xff]  ;;  %v2697_v14 = vld [vmem:[#allocation2 + $0x109] sm:$0xff] }
 0x238   : > { %v6512_v58 = vmax.f32 %v2851_v16, %v2883_v29  ;;  %4530 = vmatprep.mubr.f32.mxu1 %v3227_v50  ;;  %v3230_v54 = vmax.f32 %v3166_v57, %v6508_v26  ;;  %v2852_v53 = vmax.f32 %v2788_v12, %v2820_v8  ;;  %v2726_v39 = vmax.f32 %v2662_v63, %v2694_v10  ;;  %v2821_v50 = vld [vmem:[#allocation2 + $0xdb] sm:$0xff]  ;;  %v2886_v49 = vld [vmem:[#allocation2 + $0xe4] sm:$0xff]  ;;  %v2698_v29 = vld [vmem:[#allocation2 + $0x111] sm:$0xff] }
 0x239   : > { %v3168_v51 = vmax.f32 %v3104_v17, %v6508_v26  ;;  %v2789_v40 = vmax.f32 %v2725_v23, %v6313_v38  ;;  %v3105_v1 = vmax.f32 %v3041_v24, %v6500_v21  ;;  %v3042_v42 = vmax.f32 %v6472_v33, %v6494_v13  ;;  %v2824_v63 = vld [vmem:[#allocation2 + $0xfb] sm:$0xff] }
 0x23a   : > { %v3231_v61 = vmax.f32 %v3167_v18, %v6512_v58  ;;  %v6524_v27 = vmax.f32 %v2852_v53, %v2884_v6  ;;  %v2790_v9 = vmax.f32 %v2726_v39, %v6330_v4  ;;  %v2727_v15 = vmax.f32 %v2663_v19, %v2695_v37  ;;  %v2887_v17 = vld [vmem:[#allocation2 + $0xf4] sm:$0xff]  ;;  %v2699_v23 = vld [vmem:[#allocation2 + $0x121] sm:$0xff]  ;;  %v2825_v39 = vld [vmem:[#allocation2 + $0x10b] sm:$0xff] }
 0x23b   : > { %v3043_v48 = vmax.f32 %v6484_v56, %v6500_v21  ;;  %4531 = vmatmul.mubr.f32.gmra.mrb[24].mxu1 %v3228_v60  ;;  %v2853_v31 = vmax.f32 %v2789_v40, %v2821_v50  ;;  %v3169_v41 = vmax.f32 %v3105_v1, %v6512_v58  ;;  %v3106_v38 = vmax.f32 %v3042_v42, %v6508_v26  ;;  %v2823_v60 = vld [vmem:[#allocation2 + $0xf3] sm:$0xff]  ;;  %v2888_v37 = vld [vmem:[#allocation2 + $0xfc] sm:$0xff]  ;;  %v2668_v6 = vld [vmem:[#allocation2 + $0x128] sm:$0xff] }
 0x23c   : > { %v2728_v43 = vmax.f32 %v2664_v0, %v2696_v30  ;;  %4533 = vmatprep.mubr.f32.mxu1 %v3229_v22  ;;  %v3232_v33 = vmax.f32 %v3168_v51, %v6524_v27  ;;  %v2854_v5 = vmax.f32 %v2790_v9, %v2822_v35  ;;  %v2791_v4 = vmax.f32 %v2727_v15, %v6336_v44  ;;  %v2666_v22 = vld [vmem:[#allocation2 + $0x110] sm:$0xff]  ;;  %v2701_v9 = vld [vmem:[#allocation2 + $0x139] sm:$0xff] }
 0x23d   : > { %v3107_v3 = vmax.f32 %v3043_v48, %v6512_v58  ;;  %v6534_v56 = vmax.f32 %v2853_v31, %v2885_v52  ;;  %v3170_v2 = vmax.f32 %v3106_v38, %v6524_v27  ;;  %v3044_v57 = vmax.f32 %v6494_v13, %v6508_v26  ;;  %v2667_v13 = vld [vmem:[#allocation2 + $0x120] sm:$0xff]  ;;  %v2889_v48 = vld [vmem:[#allocation2 + $0x10c] sm:$0xff] }
 0x23e   : > { %v2792_v59 = vmax.f32 %v2728_v43, %v6351_v45  ;;  %v6540_v16 = vmax.f32 %v2854_v5, %v2886_v49  ;;  %v2855_v7 = vmax.f32 %v2791_v4, %v2823_v60  ;;  %v2729_v10 = vmax.f32 %v2665_v36, %v2697_v14  ;;  %v2826_v38 = vld [vmem:[#allocation2 + $0x113] sm:$0xff]  ;;  %v2827_v5 = vld [vmem:[#allocation2 + $0x123] sm:$0xff] }
 0x23f   : > { %v3045_v44 = vmax.f32 %v6500_v21, %v6512_v58  ;;  %4534 = vmatmul.mubr.f32.gmra.mrb[26].mxu1 %v3230_v54  ;;  %v3233_v12 = vmax.f32 %v3169_v41, %v6534_v56  ;;  %v3171_v18 = vmax.f32 %v3107_v3, %v6534_v56  ;;  %v3108_v8 = vmax.f32 %v3044_v57, %v6524_v27  ;;  %v2670_v3 = vld [vmem:[#allocation2 + $0x140] sm:$0xff] }
 0x240   : > { %v2856_v45 = vmax.f32 %v2792_v59, %v2824_v63  ;;  %4536 = vmatprep.mubr.f32.mxu1 %v3231_v61  ;;  %v3234_v24 = vmax.f32 %v3170_v2, %v6540_v16  ;;  %v6548_v19 = vmax.f32 %v2855_v7, %v2887_v17  ;;  %v2793_v21 = vmax.f32 %v2729_v10, %v6362_v47  ;;  %v2700_v61 = vld [vmem:[#allocation2 + $0x129] sm:$0xff]  ;;  %v2669_v47 = vld [vmem:[#allocation2 + $0x138] sm:$0xff]  ;;  %v2702_v49 = vld [vmem:[#allocation2 + $0x141] sm:$0xff] }
 0x241   : > { %v3109_v54 = vmax.f32 %v3045_v44, %v6534_v56  ;;  %v3172_v51 = vmax.f32 %v3108_v8, %v6540_v16  ;;  %v2730_v0 = vmax.f32 %v2666_v22, %v2698_v29  ;;  %v3046_v30 = vmax.f32 %v6508_v26, %v6524_v27  ;;  %v2890_v2 = vld [vmem:[#allocation2 + $0x114] sm:$0xff]  ;;  %v2828_v63 = vld [vmem:[#allocation2 + $0x12b] sm:$0xff] }
 0x242   : > { %v6552_v53 = vmax.f32 %v2856_v45, %v2888_v37  ;;  %v3235_v40 = vmax.f32 %v3171_v18, %v6548_v19  ;;  %v2857_v1 = vmax.f32 %v2793_v21, %v2825_v39  ;;  %v2731_v50 = vmax.f32 %v2667_v13, %v2699_v23  ;;  %v2671_v18 = vld [vmem:[#allocation2 + $0x150] sm:$0xff]  ;;  %v2704_v37 = vld [vmem:[#allocation2 + $0x159] sm:$0xff] }
 0x243   : > { %v3173_v42 = vmax.f32 %v3109_v54, %v6548_v19  ;;  %4537 = vmatmul.mubr.f32.gmra.mrb[28].mxu1 %v3232_v33  ;;  %v2794_v31 = vmax.f32 %v2730_v0, %v6380_v28  ;;  %v3110_v41 = vmax.f32 %v3046_v30, %v6540_v16  ;;  %v3047_v26 = vmax.f32 %v6512_v58, %v6534_v56  ;;  %v2703_v45 = vld [vmem:[#allocation2 + $0x151] sm:$0xff] }
 0x244   : > { %v3236_v15 = vmax.f32 %v3172_v51, %v6552_v53  ;;  %4539 = vmatprep.mubr.f32.mxu1 %v3233_v12  ;;  %v6564_v35 = vmax.f32 %v2857_v1, %v2889_v48  ;;  %v2795_v43 = vmax.f32 %v2731_v50, %v6389_v20  ;;  %v2732_v36 = vmax.f32 %v2668_v6, %v2700_v61  ;;  %v2829_v12 = vld [vmem:[#allocation2 + $0x13b] sm:$0xff]  ;;  %v2892_v13 = vld [vmem:[#allocation2 + $0x12c] sm:$0xff]  ;;  %v2830_v6 = vld [vmem:[#allocation2 + $0x143] sm:$0xff] }
 0x245   : > { %v3048_v14 = vmax.f32 %v6524_v27, %v6540_v16  ;;  %v2858_v33 = vmax.f32 %v2794_v31, %v2826_v38  ;;  %v3174_v52 = vmax.f32 %v3110_v41, %v6552_v53  ;;  %v3111_v28 = vmax.f32 %v3047_v26, %v6548_v19  ;;  %v2891_v27 = vld [vmem:[#allocation2 + $0x124] sm:$0xff]  ;;  %v2893_v51 = vld [vmem:[#allocation2 + $0x13c] sm:$0xff]  ;;  %v2674_v48 = vld [vmem:[#allocation2 + $0x170] sm:$0xff] }
 0x246   : > { %v2733_v4 = vmax.f32 %v2669_v47, %v2701_v9  ;;  %v3237_v58 = vmax.f32 %v3173_v42, %v6564_v35  ;;  %v2859_v60 = vmax.f32 %v2795_v43, %v2827_v5  ;;  %v2796_v59 = vmax.f32 %v2732_v36, %v6400_v46  ;;  %v2673_v1 = vld [vmem:[#allocation2 + $0x168] sm:$0xff]  ;;  %v2831_v36 = vld [vmem:[#allocation2 + $0x153] sm:$0xff] }
 0x247   : > { %v3112_v20 = vmax.f32 %v3048_v14, %v6552_v53  ;;  %4540 = vmatmul.mubr.f32.gmra.mrb[30].mxu1 %v3234_v24  ;;  %v6574_v57 = vmax.f32 %v2858_v33, %v2890_v2  ;;  %v3175_v7 = vmax.f32 %v3111_v28, %v6564_v35  ;;  %v3049_v44 = vmax.f32 %v6534_v56, %v6548_v19  ;;  %v2672_v56 = vld [vmem:[#allocation2 + $0x158] sm:$0xff]  ;;  %v2705_v42 = vld [vmem:[#allocation2 + $0x169] sm:$0xff] }
 0x248   : > { %v2797_v10 = vmax.f32 %v2733_v4, %v6407_v34  ;;  %4542 = vmatprep.mubr.f32.mxu1 %v3235_v40  ;;  %v6580_v22 = vmax.f32 %v2859_v60, %v2891_v27  ;;  %v2860_v29 = vmax.f32 %v2796_v59, %v2828_v63  ;;  %v2734_v46 = vmax.f32 %v2670_v3, %v2702_v49  ;;  %v2894_v41 = vld [vmem:[#allocation2 + $0x144] sm:$0xff]  ;;  %v2832_v4 = vld [vmem:[#allocation2 + $0x15b] sm:$0xff] }
 0x249   : > { %v3050_v17 = vmax.f32 %v6540_v16, %v6552_v53  ;;  %v3238_v8 = vmax.f32 %v3174_v52, %v6574_v57  ;;  %v3176_v23 = vmax.f32 %v3112_v20, %v6574_v57  ;;  %v3113_v24 = vmax.f32 %v3049_v44, %v6564_v35  ;;  %v2896_v59 = vld [vmem:[#allocation2 + $0x15c] sm:$0xff]  ;;  %v2834_v44 = vld [vmem:[#allocation2 + $0x173] sm:$0xff] }
 0x24a   : > { %v2861_v34 = vmax.f32 %v2797_v10, %v2829_v12  ;;  %v3239_v21 = vmax.f32 %v3175_v7, %v6580_v22  ;;  %v6588_v54 = vmax.f32 %v2860_v29, %v2892_v13  ;;  %v2798_v39 = vmax.f32 %v2734_v46, %v6420_v55  ;;  %v2897_v46 = vld [vmem:[#allocation2 + $0x16c] sm:$0xff]  ;;  %v2898_v13 = vld [vmem:[#allocation2 + $0x174] sm:$0xff] }
 0x24b   : > { %v3114_v16 = vmax.f32 %v3050_v17, %v6574_v57  ;;  %4543 = vmatmul.mubr.f32.gmra.mrb[0].mxu1 %v3236_v15  ;;  %v3177_v30 = vmax.f32 %v3113_v24, %v6580_v22  ;;  %v2735_v61 = vmax.f32 %v2671_v18, %v2703_v45  ;;  %v3051_v40 = vmax.f32 %v6548_v19, %v6564_v35  ;;  %v2706_v15 = vld [vmem:[#allocation2 + $0x171] sm:$0xff] }
 0x24c   : > { %v6592_v0 = vmax.f32 %v2861_v34, %v2893_v51  ;;  %4545 = vmatprep.mubr.f32.mxu1 %v3237_v58  ;;  %v3240_v50 = vmax.f32 %v3176_v23, %v6588_v54  ;;  %v2862_v47 = vmax.f32 %v2798_v39, %v2830_v6  ;;  %v2736_v9 = vmax.f32 %v2672_v56, %v2704_v37  ;;  %v2895_v58 = vld [vmem:[#allocation2 + $0x154] sm:$0xff] }
 0x24d   : > { %v3178_v55 = vmax.f32 %v3114_v16, %v6588_v54  ;;  %v2799_v26 = vmax.f32 %v2735_v61, %v6412_v62  ;;  %v3115_v38 = vmax.f32 %v3051_v40, %v6580_v22  ;;  %v3052_v19 = vmax.f32 %v6552_v53, %v6574_v57 }
 0x24e   : > { %v3241_v31 = vmax.f32 %v3177_v30, %v6592_v0  ;;  %v2926_v43 = vmax.f32 %v2862_v47, %v2894_v41  ;;  %v2800_v14 = vmax.f32 %v2736_v9, %v6423_v25  ;;  %v2737_v33 = vmax.f32 %v2673_v1, %v2705_v42 }
 0x24f   : > { %v3053_v52 = vmax.f32 %v6564_v35, %v6580_v22  ;;  %4546 = vmatmul.mubr.f32.gmra.mrb[2].mxu1 %v3238_v8  ;;  %v2863_v5 = vmax.f32 %v2799_v26, %v2831_v36  ;;  %v3179_v28 = vmax.f32 %v3115_v38, %v6592_v0  ;;  %v3116_v62 = vmax.f32 %v3052_v19, %v6588_v54  ;;  %v2833_v35 = vld [vmem:[#allocation2 + $0x16b] sm:$0xff] }
 0x250   : > { %v2738_v3 = vmax.f32 %v2674_v48, %v2706_v15  ;;  %4548 = vmatprep.mubr.f32.mxu1 %v3239_v21  ;;  %v3242_v49 = vmax.f32 %v3178_v55, %v2926_v43  ;;  %v2864_v53 = vmax.f32 %v2800_v14, %v2832_v4  ;;  %v2801_v2 = vmax.f32 %v2737_v33, %v6418_v11 }
 0x251   : > { %v3117_v25 = vmax.f32 %v3053_v52, %v6592_v0  ;;  %v2927_v60 = vmax.f32 %v2863_v5, %v2895_v58  ;;  %v3180_v20 = vmax.f32 %v3116_v62, %v2926_v43  ;;  %v3054_v7 = vmax.f32 %v6574_v57, %v6588_v54 }
 0x252   : > { %v2802_v27 = vmax.f32 %v2738_v3, %v6425_v32  ;;  %v2928_v63 = vmax.f32 %v2864_v53, %v2896_v59  ;;  %v2865_v10 = vmax.f32 %v2801_v2, %v2833_v35  ;;  %v3055_v29 = vmax.f32 %v6580_v22, %v6592_v0 }
 0x253   : > { %v3056_v12 = vmax.f32 %v6588_v54, %v2926_v43  ;;  %4549 = vmatmul.mubr.f32.gmra.mrb[4].mxu1 %v3240_v50  ;;  %v3243_v11 = vmax.f32 %v3179_v28, %v2927_v60  ;;  %v3181_v17 = vmax.f32 %v3117_v25, %v2927_v60  ;;  %v3118_v45 = vmax.f32 %v3054_v7, %v2926_v43 }
 0x254   : > { %v2866_v18 = vmax.f32 %v2802_v27, %v2834_v44  ;;  %4551 = vmatprep.mubr.f32.mxu1 %v3241_v31  ;;  %v3244_v8 = vmax.f32 %v3180_v20, %v2928_v63  ;;  %v2929_v32 = vmax.f32 %v2865_v10, %v2897_v46  ;;  %v3119_v23 = vmax.f32 %v3055_v29, %v2927_v60 }
 0x255   : > { %v3120_v57 = vmax.f32 %v3056_v12, %v2928_v63  ;;  %v3182_v24 = vmax.f32 %v3118_v45, %v2928_v63  ;;  %v3057_v56 = vmax.f32 %v6592_v0, %v2927_v60  ;;  %v3058_v37 = vmax.f32 %v2926_v43, %v2928_v63  ;;  %v6662_v60 = vld [vmem:[#allocation10] ss:$0 sm:$0xff] }
 0x256   : > { %v2930_v34 = vmax.f32 %v2866_v18, %v2898_v13  ;;  %v3245_v22 = vmax.f32 %v3181_v17, %v2929_v32  ;;  %v3183_v21 = vmax.f32 %v3119_v23, %v2929_v32 }
 0x257   : > { %4552 = vmatmul.mubr.f32.gmra.mrb[6].mxu1 %v3242_v49  ;;  %v3121_v39 = vmax.f32 %v3057_v56, %v2929_v32 }
 0x258   : > { %v3246_v54 = vmax.f32 %v3182_v24, %v2930_v34  ;;  %v3184_v51 = vmax.f32 %v3120_v57, %v2930_v34  ;;  %v3122_v16 = vmax.f32 %v3058_v37, %v2930_v34  ;;  %4554 = vmatprep.mubr.f32.mxu1 %v3243_v11 }
 0x25b   : > { %4555 = vmatmul.mubr.f32.gmra.mrb[8].mxu1 %v3244_v8 }
 0x25c   : > { %4557 = vmatprep.mubr.f32.mxu1 %v3245_v22 }
 0x25f   : > { %4558 = vmatmul.mubr.f32.gmra.mrb[10].mxu1 %v3246_v54 }
 0x260   : > { %4560 = vmatprep.mubr.f32.mxu1 %v3183_v21 }
 0x263   : > { %4561 = vmatmul.mubr.f32.gmra.mrb[12].mxu1 %v3184_v51 }
 0x264   : > { %4563 = vmatprep.mubr.f32.mxu1 %v3121_v39 }
 0x267   : > { %4564 = vmatmul.mubr.f32.gmra.mrb[14].mxu1 %v3122_v16 }
 0x297   : > { %v6618_v30 = vpop.f32.mrb[48].mxu0 }
 0x298   : > { %v6620_v6 = vpop.f32.mrb[49].mxu0 }
 0x29f   : > { %v6622_v0 = vpop.f32.mrb[50].mxu0 }
 0x2a0   : > { %v6624_v61 = vpop.f32.mrb[51].mxu0 }
 0x2a9   : > { %v6626_v40 = vpop.f32.mrb[52].mxu0 }
 0x2aa   : > { %v6628_v1 = vpop.f32.mrb[53].mxu0 }
 0x2b1   : > { %v6630_v42 = vpop.f32.mrb[54].mxu0 }
 0x2b2   : > { %v6632_v50 = vpop.f32.mrb[55].mxu0 }
 0x2ba   : > { %v6634_v47 = vpop.f32.mrb[56].mxu0 }
 0x2bb   : > { %v6636_v55 = vpop.f32.mrb[57].mxu0 }
 0x2c2   : > { %v6638_v9 = vpop.f32.mrb[58].mxu0 }
 0x2c3   : > { %v6640_v48 = vpop.f32.mrb[59].mxu0 }
 0x2c7   : > { %v6642_v15 = vpop.f32.mrb[60].mxu0 }
 0x2c8   : > { %v6644_v31 = vpop.f32.mrb[61].mxu0 }
 0x2cb   : > { %v6646_v41 = vpop.f32.mrb[62].mxu0 }
 0x2cc   : > { %v6648_v26 = vpop.f32.mrb[63].mxu0 }
 0x2d0   : > { %v4360_v38 = vpop.f32.mrb[32].mxu0 }
 0x2d1   : > { %v1539_v19 = vpop.f32.mrb[33].mxu0 }
 0x2d4   : > { %v4363_v43 = vpop.f32.mrb[34].mxu0 }
 0x2d5   : > { %v1549_v36 = vpop.f32.mrb[35].mxu0 }
 0x2d8   : > { %v4366_v14 = vpop.f32.mrb[36].mxu0 }
 0x2d9   : > { %v1559_v33 = vpop.f32.mrb[37].mxu0 }
 0x2dd   : > { %v4369_v52 = vpop.f32.mrb[38].mxu0 }
 0x2de   : > { %v1569_v5 = vpop.f32.mrb[39].mxu0 }
 0x2e2   : > { %v4372_v28 = vpop.f32.mrb[40].mxu0 }
 0x2e3   : > { %v1579_v4 = vpop.f32.mrb[41].mxu0 }
 0x2e6   : > { %v6650_v62 = vpop.f32.mrb[42].mxu0 }
 0x2e7   : > { %v6652_v3 = vpop.f32.mrb[43].mxu0 }
 0x2ea   : > { %v6654_v49 = vpop.f32.mrb[44].mxu0 }
 0x2eb   : > { %v6656_v58 = vpop.f32.mrb[45].mxu0 }
 0x2ee   : > { %v6658_v53 = vpop.f32.mrb[46].mxu0 }
 0x2ef   : > { %v6660_v2 = vpop.f32.mrb[47].mxu0 }
 0x2fe   : > { %v4520_v25 = vpop.f32.mrb[16].mxu1 }
 0x2ff   : > { %v4742_v59 = vadd.f32 %v4520_v25, %v4360_v38  ;;  %v3333_v20 = vpop.f32.mrb[17].mxu1 }
 0x300   : > { %v4743_v35 = vadd.f32 %v3333_v20, %v1539_v19 }
 0x301   : > { %v6665_v27 = vadd.f32 %v4742_v59, %v6662_v60 }
 0x302   : > { %v6668_v7 = vadd.f32 %v4743_v35, %v6662_v60  ;;  %v4523_v63 = vpop.f32.mrb[18].mxu1 }
 0x303   : > { %v3564_v10 = vsub.f32 0.0, %v6665_v27  ;;  %v4744_v44 = vadd.f32 %v4523_v63, %v4363_v43  ;;  %v3343_v29 = vpop.f32.mrb[19].mxu1 }
 0x304   : > { %v3563_v12 = vsub.f32 0.0, %v6668_v7  ;;  %v4745_v11 = vadd.f32 %v3343_v29, %v1549_v36 }
 0x305   : > { %v3597_v46 = vmul.f32 1.442695, %v3564_v10  ;;  %v6673_v17 = vadd.f32 %v4744_v44, %v6662_v60 }
 0x306   : > { %v3595_v18 = vmul.f32 1.442695, %v3563_v12  ;;  %v6676_v45 = vadd.f32 %v4745_v11, %v6662_v60  ;;  %v4526_v8 = vpop.f32.mrb[20].mxu1 }
 0x307   : > { %4920 = vpow2.f32 %v3597_v46  ;;  %v3566_v32 = vsub.f32 0.0, %v6673_v17  ;;  %v4746_v13 = vadd.f32 %v4526_v8, %v4366_v14  ;;  %v3353_v23 = vpop.f32.mrb[21].mxu1 }
 0x308   : > { %4922 = vpow2.f32 %v3595_v18  ;;  %v3565_v57 = vsub.f32 0.0, %v6676_v45  ;;  %v4747_v34 = vadd.f32 %v3353_v23, %v1559_v33 }
 0x309   : > { %v3601_v24 = vmul.f32 1.442695, %v3566_v32  ;;  %v6681_v56 = vadd.f32 %v4746_v13, %v6662_v60 }
 0x30a   : > { %v3599_v37 = vmul.f32 1.442695, %v3565_v57  ;;  %v6684_v22 = vadd.f32 %v4747_v34, %v6662_v60  ;;  %v4529_v21 = vpop.f32.mrb[22].mxu1 }
 0x30b   : > { %4924 = vpow2.f32 %v3601_v24  ;;  %v3568_v54 = vsub.f32 0.0, %v6681_v56  ;;  %v4748_v51 = vadd.f32 %v4529_v21, %v4369_v52  ;;  %v3363_v39 = vpop.f32.mrb[23].mxu1 }
 0x30c   : > { %4926 = vpow2.f32 %v3599_v37  ;;  %v3567_v16 = vsub.f32 0.0, %v6684_v22  ;;  %v4749_v38 = vadd.f32 %v3363_v39, %v1569_v5 }
 0x30d   : > { %v3605_v19 = vmul.f32 1.442695, %v3568_v54  ;;  %v6689_v43 = vadd.f32 %v4748_v51, %v6662_v60 }
 0x30e   : > { %v3603_v36 = vmul.f32 1.442695, %v3567_v16  ;;  %v6692_v14 = vadd.f32 %v4749_v38, %v6662_v60  ;;  %v4532_v33 = vpop.f32.mrb[24].mxu1 }
 0x30f   : > { %4928 = vpow2.f32 %v3605_v19  ;;  %v3570_v25 = vsub.f32 0.0, %v6689_v43  ;;  %v4750_v59 = vadd.f32 %v4532_v33, %v4372_v28  ;;  %v3373_v20 = vpop.f32.mrb[25].mxu1 }
 0x310   : > { %4930 = vpow2.f32 %v3603_v36  ;;  %v3569_v52 = vsub.f32 0.0, %v6692_v14  ;;  %v4751_v35 = vadd.f32 %v3373_v20, %v1579_v4 }
 0x311   : > { %v4921_v63 = vpop.eup %4920  ;;  %v3609_v5 = vmul.f32 1.442695, %v3570_v25  ;;  %v6697_v10 = vadd.f32 %v4750_v59, %v6662_v60 }
 0x312   : > { %v4923_v44 = vpop.eup %4922  ;;  %v3660_v29 = vadd.f32 1.0, %v4921_v63  ;;  %v3607_v12 = vmul.f32 1.442695, %v3569_v52  ;;  %v6700_v11 = vadd.f32 %v4751_v35, %v6662_v60  ;;  %v4535_v46 = vpop.f32.mrb[26].mxu1 }
 0x313   : > { %v3659_v18 = vadd.f32 1.0, %v4923_v44  ;;  %4932 = vpow2.f32 %v3609_v5  ;;  %v3572_v28 = vsub.f32 0.0, %v6697_v10  ;;  %v4752_v8 = vadd.f32 %v4535_v46, %v6650_v62  ;;  %v3383_v32 = vpop.f32.mrb[27].mxu1 }
 0x314   : > { %4934 = vrcp.f32 %v3660_v29  ;;  %v3571_v4 = vsub.f32 0.0, %v6700_v11  ;;  %v4753_v13 = vadd.f32 %v3383_v32, %v6652_v3 }
 0x315   : > { %v4925_v23 = vpop.eup %4924  ;;  %4936 = vrcp.f32 %v3659_v18  ;;  %v3613_v57 = vmul.f32 1.442695, %v3572_v28  ;;  %v6707_v34 = vadd.f32 %v4752_v8, %v6662_v60 }
 0x316   : > { %v4927_v24 = vpop.eup %4926  ;;  %v3662_v37 = vadd.f32 1.0, %v4925_v23  ;;  %4938 = vpow2.f32 %v3607_v12  ;;  %v3611_v21 = vmul.f32 1.442695, %v3571_v4  ;;  %v6710_v54 = vadd.f32 %v4753_v13, %v6662_v60  ;;  %v4538_v62 = vpop.f32.mrb[28].mxu1 }
 0x317   : > { %v3661_v51 = vadd.f32 1.0, %v4927_v24  ;;  %4940 = vpow2.f32 %v3613_v57  ;;  %v3574_v39 = vsub.f32 0.0, %v6707_v34  ;;  %v4754_v3 = vadd.f32 %v4538_v62, %v6654_v49  ;;  %v3393_v16 = vpop.f32.mrb[29].mxu1 }
 0x318   : > { %4942 = vrcp.f32 %v3662_v37  ;;  %v3573_v38 = vsub.f32 0.0, %v6710_v54  ;;  %v4755_v19 = vadd.f32 %v3393_v16, %v6656_v58 }
 0x319   : > { %v4929_v36 = vpop.eup %4928  ;;  %4944 = vrcp.f32 %v3661_v51  ;;  %v3617_v33 = vmul.f32 1.442695, %v3574_v39  ;;  %v6717_v25 = vadd.f32 %v4754_v3, %v6662_v60 }
 0x31a   : > { %v4931_v59 = vpop.eup %4930  ;;  %v3664_v20 = vadd.f32 1.0, %v4929_v36  ;;  %4946 = vpow2.f32 %v3611_v21  ;;  %v3615_v52 = vmul.f32 1.442695, %v3573_v38  ;;  %v6720_v35 = vadd.f32 %v4755_v19, %v6662_v60  ;;  %v4541_v49 = vpop.f32.mrb[30].mxu1 }
 0x31b   : > { %v3663_v63 = vadd.f32 1.0, %v4931_v59  ;;  %4948 = vpow2.f32 %v3617_v33  ;;  %v3576_v5 = vsub.f32 0.0, %v6717_v25  ;;  %v4756_v58 = vadd.f32 %v4541_v49, %v6658_v53  ;;  %v3403_v44 = vpop.f32.mrb[31].mxu1 }
 0x31c   : > { %4950 = vrcp.f32 %v3664_v20  ;;  %v3575_v29 = vsub.f32 0.0, %v6720_v35  ;;  %v4757_v12 = vadd.f32 %v3403_v44, %v6660_v2 }
 0x31d   : > { %v4933_v46 = vpop.eup %4932  ;;  %4952 = vrcp.f32 %v3663_v63  ;;  %v3621_v18 = vmul.f32 1.442695, %v3576_v5  ;;  %v6727_v28 = vadd.f32 %v4756_v58, %v6662_v60 }
 0x31e   : > { %v4935_v8 = vpop.eup %4934  ;;  %v3666_v32 = vadd.f32 1.0, %v4933_v46  ;;  %4954 = vpow2.f32 %v3615_v52  ;;  %v3619_v4 = vmul.f32 1.442695, %v3575_v29  ;;  %v6730_v13 = vadd.f32 %v4757_v12, %v6662_v60  ;;  %v4544_v53 = vpop.f32.mrb[0].mxu1 }
 0x31f   : > { %v4937_v23 = vpop.eup %4936  ;;  %v3724_v57 = vmul.f32 %v4935_v8, %v6665_v27  ;;  %4956 = vpow2.f32 %v3621_v18  ;;  %v3578_v2 = vsub.f32 0.0, %v6727_v28  ;;  %v4758_v24 = vadd.f32 %v4544_v53, %v6618_v30  ;;  %v3413_v37 = vpop.f32.mrb[1].mxu1 }
 0x320   : > { %v4939_v21 = vpop.eup %4938  ;;  %v3723_v62 = vmul.f32 %v4937_v23, %v6668_v7  ;;  %4958 = vrcp.f32 %v3666_v32  ;;  %v3577_v51 = vsub.f32 0.0, %v6730_v13  ;;  %v4759_v39 = vadd.f32 %v3413_v37, %v6620_v6 }
 0x321   : > { %v4941_v3 = vpop.eup %4940  ;;  %3756 = vst [vmem:[%s6740_s21 + $0x8] sm:$0xff] %v3724_v57  ;;  %v3665_v27 = vadd.f32 1.0, %v4939_v21  ;;  %4960 = vpow2.f32 %v3619_v4  ;;  %v3625_v16 = vmul.f32 1.442695, %v3578_v2  ;;  %v6744_v30 = vadd.f32 %v4758_v24, %v6662_v60 }
 0x322   : > { %v4943_v38 = vpop.eup %4942  ;;  %3755 = vst [vmem:[%s6740_s21] sm:$0xff] %v3723_v62  ;;  %v3668_v7 = vadd.f32 1.0, %v4941_v3  ;;  %v3623_v19 = vmul.f32 1.442695, %v3577_v51  ;;  %v6748_v6 = vadd.f32 %v4759_v39, %v6662_v60  ;;  %v4547_v36 = vpop.f32.mrb[2].mxu1 }
 0x323   : > { %v4945_v33 = vpop.eup %4944  ;;  %v3726_v59 = vmul.f32 %v4943_v38, %v6673_v17  ;;  %4962 = vrcp.f32 %v3665_v27  ;;  %v3580_v20 = vsub.f32 0.0, %v6744_v30  ;;  %v4760_v52 = vadd.f32 %v4547_v36, %v6622_v0  ;;  %v3423_v49 = vpop.f32.mrb[3].mxu1 }
 0x324   : > { %v4947_v63 = vpop.eup %4946  ;;  %v3725_v5 = vmul.f32 %v4945_v33, %v6676_v45  ;;  %4964 = vrcp.f32 %v3668_v7  ;;  %v3579_v58 = vsub.f32 0.0, %v6748_v6  ;;  %v4761_v44 = vadd.f32 %v3423_v49, %v6624_v61 }
 0x325   : > { %v4949_v29 = vpop.eup %4948  ;;  %3758 = vst [vmem:[%s6740_s21 + $0x18] sm:$0xff] %v3726_v59  ;;  %v3667_v12 = vadd.f32 1.0, %v4947_v63  ;;  %4966 = vpow2.f32 %v3625_v16  ;;  %v3629_v17 = vmul.f32 1.442695, %v3580_v20  ;;  %v6758_v46 = vadd.f32 %v4760_v52, %v6662_v60 }
 0x326   : > { %v4951_v18 = vpop.eup %4950  ;;  %3757 = vst [vmem:[%s6740_s21 + $0x10] sm:$0xff] %v3725_v5  ;;  %v3670_v0 = vadd.f32 1.0, %v4949_v29  ;;  %4968 = vpow2.f32 %v3623_v19  ;;  %v3627_v8 = vmul.f32 1.442695, %v3579_v58  ;;  %v6762_v45 = vadd.f32 %v4761_v44, %v6662_v60  ;;  %v4550_v32 = vpop.f32.mrb[4].mxu1 }
 0x327   : > { %v4953_v4 = vpop.eup %4952  ;;  %v3728_v61 = vmul.f32 %v4951_v18, %v6681_v56  ;;  %4970 = vrcp.f32 %v3667_v12  ;;  %v3582_v53 = vsub.f32 0.0, %v6758_v46  ;;  %v4762_v23 = vadd.f32 %v4550_v32, %v6626_v40  ;;  %v3433_v57 = vpop.f32.mrb[5].mxu1 }
 0x328   : > { %v4955_v2 = vpop.eup %4954  ;;  %v3727_v24 = vmul.f32 %v4953_v4, %v6684_v22  ;;  %4972 = vrcp.f32 %v3670_v0  ;;  %v3581_v37 = vsub.f32 0.0, %v6762_v45  ;;  %v4763_v21 = vadd.f32 %v3433_v57, %v6628_v1 }
 0x329   : > { %v4957_v62 = vpop.eup %4956  ;;  %3760 = vst [vmem:[%s6740_s21 + $0x28] sm:$0xff] %v3728_v61  ;;  %v3669_v51 = vadd.f32 1.0, %v4955_v2  ;;  %4974 = vpow2.f32 %v3629_v17  ;;  %v3633_v56 = vmul.f32 1.442695, %v3582_v53  ;;  %v6772_v39 = vadd.f32 %v4762_v23, %v6662_v60 }
 0x32a   : > { %v4959_v3 = vpop.eup %4958  ;;  %3759 = vst [vmem:[%s6740_s21 + $0x20] sm:$0xff] %v3727_v24  ;;  %v3672_v40 = vadd.f32 1.0, %v4957_v62  ;;  %4976 = vpow2.f32 %v3627_v8  ;;  %v3631_v27 = vmul.f32 1.442695, %v3581_v37  ;;  %v6776_v22 = vadd.f32 %v4763_v21, %v6662_v60  ;;  %v4553_v16 = vpop.f32.mrb[6].mxu1 }
 0x32b   : > { %v4961_v38 = vpop.eup %4960  ;;  %v3730_v1 = vmul.f32 %v4959_v3, %v6689_v43  ;;  %4978 = vrcp.f32 %v3669_v51  ;;  %v3584_v7 = vsub.f32 0.0, %v6772_v39  ;;  %v4764_v19 = vadd.f32 %v4553_v16, %v6630_v42  ;;  %v3443_v36 = vpop.f32.mrb[7].mxu1 }
 0x32c   : > { %4980 = vrcp.f32 %v3672_v40  ;;  %v3671_v33 = vadd.f32 1.0, %v4961_v38  ;;  %v3583_v59 = vsub.f32 0.0, %v6776_v22  ;;  %v4765_v20 = vadd.f32 %v3443_v36, %v6632_v50 }
 0x32d   : > { %v4963_v52 = vpop.eup %4962  ;;  %3762 = vst [vmem:[%s6740_s21 + $0x38] sm:$0xff] %v3730_v1  ;;  %4982 = vpow2.f32 %v3633_v56  ;;  %v3637_v49 = vmul.f32 1.442695, %v3584_v7  ;;  %v6785_v63 = vadd.f32 %v4764_v19, %v6662_v60 }
 0x32e   : > { %v4965_v43 = vpop.eup %4964  ;;  %v3729_v5 = vmul.f32 %v4963_v52, %v6692_v14  ;;  %4984 = vrcp.f32 %v3671_v33  ;;  %v3635_v42 = vmul.f32 1.442695, %v3583_v59  ;;  %v6789_v58 = vadd.f32 %v4765_v20, %v6662_v60  ;;  %v4556_v44 = vpop.f32.mrb[8].mxu1 }
 0x32f   : > { %v4967_v29 = vpop.eup %4966  ;;  %v3732_v50 = vmul.f32 %v4965_v43, %v6697_v10  ;;  %4986 = vpow2.f32 %v3631_v27  ;;  %v3586_v12 = vsub.f32 0.0, %v6785_v63  ;;  %v4766_v17 = vadd.f32 %v4556_v44, %v6634_v47  ;;  %v3453_v18 = vpop.f32.mrb[9].mxu1 }
 0x330   : > { %v4969_v0 = vpop.eup %4968  ;;  %3761 = vst [vmem:[%s6740_s21 + $0x30] sm:$0xff] %v3729_v5  ;;  %v3674_v8 = vadd.f32 1.0, %v4967_v29  ;;  %4988 = vpow2.f32 %v3637_v49  ;;  %v3585_v14 = vsub.f32 0.0, %v6789_v58  ;;  %v4767_v32 = vadd.f32 %v3453_v18, %v6636_v55 }
 0x331   : > { %v4971_v4 = vpop.eup %4970  ;;  %3764 = vst [vmem:[%s6740_s21 + $0x48] sm:$0xff] %v3732_v50  ;;  %v3673_v61 = vadd.f32 1.0, %v4969_v0  ;;  %4990 = vpow2.f32 %v3635_v42  ;;  %v3641_v10 = vmul.f32 1.442695, %v3586_v12  ;;  %v6799_v53 = vadd.f32 %v4766_v17, %v6662_v60 }
 0x332   : > { %v4973_v23 = vpop.eup %4972  ;;  %v3731_v47 = vmul.f32 %v4971_v4, %v6700_v11  ;;  %4992 = vrcp.f32 %v3674_v8  ;;  %v3639_v57 = vmul.f32 1.442695, %v3585_v14  ;;  %v6803_v2 = vadd.f32 %v4767_v32, %v6662_v60  ;;  %v4559_v24 = vpop.f32.mrb[10].mxu1 }
 0x333   : > { %v4975_v55 = vpop.eup %4974  ;;  %v3734_v37 = vmul.f32 %v4973_v23, %v6707_v34  ;;  %4994 = vrcp.f32 %v3673_v61  ;;  %v3588_v21 = vsub.f32 0.0, %v6799_v53  ;;  %v4768_v62 = vadd.f32 %v4559_v24, %v6638_v9  ;;  %v3463_v51 = vpop.f32.mrb[11].mxu1 }
 0x334   : > { %v4977_v56 = vpop.eup %4976  ;;  %3763 = vst [vmem:[%s6740_s21 + $0x40] sm:$0xff] %v3731_v47  ;;  %v3676_v3 = vadd.f32 1.0, %v4975_v55  ;;  %4996 = vpow2.f32 %v3641_v10  ;;  %v3587_v11 = vsub.f32 0.0, %v6803_v2  ;;  %v4769_v40 = vadd.f32 %v3463_v51, %v6640_v48 }
 0x335   : > { %v4979_v27 = vpop.eup %4978  ;;  %3766 = vst [vmem:[%s6740_s21 + $0x58] sm:$0xff] %v3734_v37  ;;  %v3675_v16 = vadd.f32 1.0, %v4977_v56  ;;  %4998 = vpow2.f32 %v3639_v57  ;;  %v3645_v34 = vmul.f32 1.442695, %v3588_v21  ;;  %v6813_v38 = vadd.f32 %v4768_v62, %v6662_v60 }
 0x336   : > { %v4981_v1 = vpop.eup %4980  ;;  %v3733_v9 = vmul.f32 %v4979_v27, %v6710_v54  ;;  %5000 = vrcp.f32 %v3676_v3  ;;  %v3643_v7 = vmul.f32 1.442695, %v3587_v11  ;;  %v6817_v19 = vadd.f32 %v4769_v40, %v6662_v60  ;;  %v4562_v36 = vpop.f32.mrb[12].mxu1 }
 0x337   : > { %v4983_v48 = vpop.eup %4982  ;;  %v3736_v33 = vmul.f32 %v4981_v1, %v6717_v25  ;;  %5002 = vrcp.f32 %v3675_v16  ;;  %v3590_v59 = vsub.f32 0.0, %v6813_v38  ;;  %v4770_v20 = vadd.f32 %v4562_v36, %v6642_v15  ;;  %v3473_v52 = vpop.f32.mrb[13].mxu1 }
 0x338   : > { %v4985_v49 = vpop.eup %4984  ;;  %3765 = vst [vmem:[%s6740_s21 + $0x50] sm:$0xff] %v3733_v9  ;;  %v3678_v43 = vadd.f32 1.0, %v4983_v48  ;;  %5004 = vpow2.f32 %v3645_v34  ;;  %v3589_v54 = vsub.f32 0.0, %v6817_v19  ;;  %v4771_v5 = vadd.f32 %v3473_v52, %v6644_v31 }
 0x339   : > { %v4987_v42 = vpop.eup %4986  ;;  %3768 = vst [vmem:[%s6740_s21 + $0x68] sm:$0xff] %v3736_v33  ;;  %v3735_v44 = vmul.f32 %v4985_v49, %v6720_v35  ;;  %5006 = vpow2.f32 %v3643_v7  ;;  %v3649_v25 = vmul.f32 1.442695, %v3590_v59  ;;  %v6828_v29 = vadd.f32 %v4770_v20, %v6662_v60 }
 0x33a   : > { %v4989_v15 = vpop.eup %4988  ;;  %5008 = vrcp.f32 %v3678_v43  ;;  %v3677_v50 = vadd.f32 1.0, %v4987_v42  ;;  %v3647_v12 = vmul.f32 1.442695, %v3589_v54  ;;  %v6831_v17 = vadd.f32 %v4771_v5, %v6662_v60  ;;  %v4565_v18 = vpop.f32.mrb[14].mxu1 }
 0x33b   : > { %v4991_v0 = vpop.eup %4990  ;;  %3767 = vst [vmem:[%s6740_s21 + $0x60] sm:$0xff] %v3735_v44  ;;  %v3680_v31 = vadd.f32 1.0, %v4989_v15  ;;  %5010 = vpow2.f32 %v3649_v25  ;;  %v3592_v8 = vsub.f32 0.0, %v6828_v29  ;;  %v4772_v35 = vadd.f32 %v4565_v18, %v6646_v41  ;;  %v3483_v14 = vpop.f32.mrb[15].mxu1 }
 0x33c   : > { %v4993_v32 = vpop.eup %4992  ;;  %5012 = vrcp.f32 %v3677_v50  ;;  %v3679_v4 = vadd.f32 1.0, %v4991_v0  ;;  %v3591_v61 = vsub.f32 0.0, %v6831_v17  ;;  %v4773_v10 = vadd.f32 %v3483_v14, %v6648_v26 }
 0x33d   : > { %v4995_v23 = vpop.eup %4994  ;;  %v3738_v47 = vmul.f32 %v4993_v32, %v6727_v28  ;;  %5014 = vrcp.f32 %v3680_v31  ;;  %v3653_v57 = vmul.f32 1.442695, %v3592_v8  ;;  %v6840_v24 = vadd.f32 %v4772_v35, %v6662_v60 }
 0x33e   : > { %v4997_v55 = vpop.eup %4996  ;;  %v3737_v41 = vmul.f32 %v4995_v23, %v6730_v13  ;;  %5016 = vrcp.f32 %v3679_v4  ;;  %v6844_v37 = vadd.f32 %v4773_v10, %v6662_v60  ;;  %v3651_v26 = vmul.f32 1.442695, %v3591_v61 }
 0x33f   : > { %v4999_v21 = vpop.eup %4998  ;;  %3770 = vst [vmem:[%s6740_s21 + $0x78] sm:$0xff] %v3738_v47  ;;  %v3682_v62 = vadd.f32 1.0, %v4997_v55  ;;  %5018 = vpow2.f32 %v3647_v12  ;;  %v3594_v28 = vsub.f32 0.0, %v6840_v24 }
 0x340   : > { %v5001_v51 = vpop.eup %5000  ;;  %3769 = vst [vmem:[%s6740_s21 + $0x70] sm:$0xff] %v3737_v41  ;;  %v3681_v56 = vadd.f32 1.0, %v4999_v21  ;;  %5020 = vpow2.f32 %v3653_v57  ;;  %v3593_v3 = vsub.f32 0.0, %v6844_v37 }
 0x341   : > { %v5003_v13 = vpop.eup %5002  ;;  %v3740_v11 = vmul.f32 %v5001_v51, %v6744_v30  ;;  %5022 = vrcp.f32 %v3682_v62  ;;  %v3657_v60 = vmul.f32 1.442695, %v3594_v28 }
 0x342   : > { %v5005_v40 = vpop.eup %5004  ;;  %v3739_v27 = vmul.f32 %v5003_v13, %v6748_v6  ;;  %5024 = vrcp.f32 %v3681_v56  ;;  %v3655_v1 = vmul.f32 1.442695, %v3593_v3 }
 0x343   : > { %v5007_v16 = vpop.eup %5006  ;;  %3772 = vst [vmem:[%s6740_s21 + $0x88] sm:$0xff] %v3740_v11  ;;  %v3684_v34 = vadd.f32 1.0, %v5005_v40  ;;  %5026 = vpow2.f32 %v3651_v26 }
 0x344   : > { %v5009_v9 = vpop.eup %5008  ;;  %3771 = vst [vmem:[%s6740_s21 + $0x80] sm:$0xff] %v3739_v27  ;;  %v3683_v7 = vadd.f32 1.0, %v5007_v16  ;;  %5028 = vpow2.f32 %v3657_v60 }
 0x345   : > { %v5011_v36 = vpop.eup %5010  ;;  %v3742_v30 = vmul.f32 %v5009_v9, %v6758_v46  ;;  %5030 = vrcp.f32 %v3684_v34 }
 0x346   : > { %v5013_v48 = vpop.eup %5012  ;;  %5032 = vrcp.f32 %v3683_v7  ;;  %v3686_v6 = vadd.f32 1.0, %v5011_v36 }
 0x347   : > { %v5015_v33 = vpop.eup %5014  ;;  %3774 = vst [vmem:[%s6740_s21 + $0x98] sm:$0xff] %v3742_v30  ;;  %v3741_v59 = vmul.f32 %v5013_v48, %v6762_v45  ;;  %5034 = vpow2.f32 %v3655_v1 }
 0x348   : > { %v5017_v20 = vpop.eup %5016  ;;  %v3744_v52 = vmul.f32 %v5015_v33, %v6772_v39  ;;  %5036 = vrcp.f32 %v3686_v6 }
 0x349   : > { %v5019_v49 = vpop.eup %5018  ;;  %3773 = vst [vmem:[%s6740_s21 + $0x90] sm:$0xff] %v3741_v59  ;;  %v3743_v46 = vmul.f32 %v5017_v20, %v6776_v22 }
 0x34a   : > { %v5021_v43 = vpop.eup %5020  ;;  %3776 = vst [vmem:[%s6740_s21 + $0xa8] sm:$0xff] %v3744_v52  ;;  %v3685_v54 = vadd.f32 1.0, %v5019_v49 }
 0x34b   : > { %v5023_v5 = vpop.eup %5022  ;;  %3775 = vst [vmem:[%s6740_s21 + $0xa0] sm:$0xff] %v3743_v46  ;;  %v3688_v42 = vadd.f32 1.0, %v5021_v43 }
 0x34c   : > { %v5025_v44 = vpop.eup %5024  ;;  %v3746_v45 = vmul.f32 %v5023_v5, %v6785_v63  ;;  %5038 = vrcp.f32 %v3685_v54 }
 0x34d   : > { %v5027_v25 = vpop.eup %5026  ;;  %v3745_v39 = vmul.f32 %v5025_v44, %v6789_v58  ;;  %5040 = vrcp.f32 %v3688_v42 }
 0x34e   : > { %v5029_v15 = vpop.eup %5028  ;;  %3778 = vst [vmem:[%s6740_s21 + $0xb8] sm:$0xff] %v3746_v45  ;;  %v3687_v22 = vadd.f32 1.0, %v5027_v25 }
 0x34f   : > { %v5031_v50 = vpop.eup %5030  ;;  %3777 = vst [vmem:[%s6740_s21 + $0xb0] sm:$0xff] %v3745_v39  ;;  %v3690_v12 = vadd.f32 1.0, %v5029_v15 }
 0x350   : > { %v5033_v18 = vpop.eup %5032  ;;  %v3748_v0 = vmul.f32 %v5031_v50, %v6799_v53  ;;  %5042 = vrcp.f32 %v3687_v22 }
 0x351   : > { %v5035_v63 = vpop.eup %5034  ;;  %v3747_v31 = vmul.f32 %v5033_v18, %v6803_v2  ;;  %5044 = vrcp.f32 %v3690_v12 }
 0x352   : > { %v5037_v58 = vpop.eup %5036  ;;  %3780 = vst [vmem:[%s6740_s21 + $0xc8] sm:$0xff] %v3748_v0  ;;  %v3689_v8 = vadd.f32 1.0, %v5035_v63 }
 0x353   : > { %3779 = vst [vmem:[%s6740_s21 + $0xc0] sm:$0xff] %v3747_v31  ;;  %v3750_v35 = vmul.f32 %v5037_v58, %v6813_v38 }
 0x354   : > { %5046 = vrcp.f32 %v3689_v8 }
 0x355   : > { %3782 = vst [vmem:[%s6740_s21 + $0xd8] sm:$0xff] %v3750_v35 }
 0x356   : > { %v5039_v53 = vpop.eup %5038 }
 0x357   : > { %v5041_v14 = vpop.eup %5040  ;;  %v3749_v32 = vmul.f32 %v5039_v53, %v6817_v19 }
 0x358   : > { %v3752_v2 = vmul.f32 %v5041_v14, %v6828_v29 }
 0x359   : > { %3781 = vst [vmem:[%s6740_s21 + $0xd0] sm:$0xff] %v3749_v32 }
 0x35a   : > { %v5043_v4 = vpop.eup %5042  ;;  %3784 = vst [vmem:[%s6740_s21 + $0xe8] sm:$0xff] %v3752_v2 }
 0x35b   : > { %v5045_v61 = vpop.eup %5044  ;;  %v3751_v10 = vmul.f32 %v5043_v4, %v6831_v17 }
 0x35c   : > { %v3754_v38 = vmul.f32 %v5045_v61, %v6840_v24 }
 0x35d   : > { %3783 = vst [vmem:[%s6740_s21 + $0xe0] sm:$0xff] %v3751_v10 }
 0x35e   : > { %v5047_v23 = vpop.eup %5046  ;;  %3786 = vst [vmem:[%s6740_s21 + $0xf8] sm:$0xff] %v3754_v38 }
 0x35f   : > { %v3753_v19 = vmul.f32 %v5047_v23, %v6844_v37 }
 0x361   : > { %3785 = vst [vmem:[%s6740_s21 + $0xf0] sm:$0xff] %v3753_v19 }
 0x362   : > { %5175 = shalt.err (!%p5172_p4)
}
 0x363   : > { %s5176_s6 = scalar_lea.hbm %s6885_s9, 4096  ;;  %s5180_s26 = scalar_lea.hbm %s6937_s4, 8192 }
 0x364   : > { %p5177_p9 = scmp.ne.s32.totalorder %s6885_s9, %s5176_s6  ;;  %p5181_p8 = scmp.lt.u32.totalorder %s6885_s9, %s6937_s4 }
 0x365   : > { %p5182_p13 = scmp.lt.u32.totalorder %s5180_s26, %s5176_s6  ;;  %p5184_p10 = scmp.lt.u32.totalorder %s5176_s6, %s6885_s9 }
 0x366   : > { %p5178_p0 = pnand %p5177_p9, %p5424_p5 }
 0x367   : > { %p5183_p6 = por %p5182_p13, %p5181_p8 }
 0x368   : > { %p5179_p11 = pneg %p5178_p0 }
 0x369   : > { %p5185_p3 = por %p5184_p10, %p5183_p6 }
 0x36b   : > { %p5186_p7 = pnand %p5185_p3, %p5179_p11 }
 0x36d   : > { %5189 = shalt.err (!%p5186_p7)
}
 0x36e   : > { %s5246_s21 = smov 128   ;;  %s5247_s23 = smov 8  }
 0x36f   : > { %4852 = dma.vmem_to_hbm [thread:$0]  (%p5424_p5), %s6887_s14, 4096, %s6885_s9, %s3788_s19, %s5246_s21, %s5246_s21, %s5247_s23  }
 0x370 PF: > { %s3816_s20 = sand.u32 1, %s5224_s15   ;;  %p7027_p12 = scmp.ne.s32.totalorder %s6966_s22, 0 }
 0x371   : > { %p7028_p1 = scmp.ge.s32.totalorder %s5236_s18, 2  ;;  %s3817_s7 = scalar_lea.sflag [#allocation6], %s3816_s20 }
 0x373   : > { %p4869_p2 = pnand %p7028_p1, %p7027_p12 }
 0x375   : > { %5219 = dma.done.wait (!%p4869_p2), %s3817_s7, 4096  }
 0x376   : > { %5221 = vsyncadd (!%p4869_p2), %s3817_s7, 4294963200  ;;  %p19_p4 = scmp.ge.s32.totalorder %s5410_s10, 4   ;;  %s7029_s15 = smov %s5228_s16 }
 0x377   : > { %s7030_s16 = smov %s5232_s17  ;;  %s7031_s17 = smov %s5420_s13 }
 0x378   : > { %s7032_s18 = smov %s5410_s10  ;;  %21 = sbr.rel (!%p19_p4) target bundleno = 7 (0x7), region = 98 }
 0x37f   :  { %3822 = vsyncpa [#allocation5], 1 }
 0x380   :  { %3824 = vsyncpa [#allocation5 + $0x1], 1 }
 0x381   :  { %3825 = vsyncpa [#allocation8], 1 }
 0x382   :  { %3826 = vsyncpa [#allocation11], 1 }
 0x383   :  { %3827 = vsyncpa [#allocation6], 1 }
 0x384   :  { %3829 = vsyncpa [#allocation6 + $0x1], 1 }

</bundles_post_ra>
